<compile_context>
chip_gen: v7x
topology: tpu7x:2x2x1
jax: 0.10.0
libtpu: 0.0.40
codegen_flags: <defaults>
</compile_context>

<pallas_src>
import functools
import math

import jax
import jax.numpy as jnp
from jax.experimental import pallas as pl
from jax.experimental.pallas import tpu as pltpu

LEAKY_SLOPE = 0.2
BN_EPS = 0.8            # nn.BatchNorm1d(out_feat, 0.8) -> second positional arg is eps
_MiB = 1024 * 1024


def _round_up(x, m):
    return (x + m - 1) // m * m


def _leaky_relu(x):
    return jnp.where(x >= 0, x, LEAKY_SLOPE * x)


# ------------------------- stage 1: hidden trunk (layers 1-4) ---------------- #

def _linear(x_f32, w_ref, b_ref):
    # bf16 x bf16 products, f32 accumulation on the MXU, f32 bias add.
    y = jnp.dot(x_f32.astype(w_ref.dtype), w_ref[...],
                preferred_element_type=jnp.float32)
    return y + b_ref[...]


def _batchnorm(y, g_ref, beta_ref):
    # Fused BN: one stats pass (sum and sum-of-squares together), then a
    # single folded scale/shift apply.  Whole-batch training-mode stats,
    # biased variance, eps=0.8.
    inv_b = 1.0 / y.shape[0]
    mean = jnp.sum(y, axis=0, keepdims=True) * inv_b
    mean_sq = jnp.sum(y * y, axis=0, keepdims=True) * inv_b
    var = mean_sq - mean * mean
    scale = g_ref[...] * jax.lax.rsqrt(var + BN_EPS)
    shift = beta_ref[...] - mean * scale
    return y * scale + shift


def hidden_trunk_kernel(z_ref,
                        w1_ref, b1_ref,
                        w2_ref, b2_ref, g2_ref, be2_ref,
                        w3_ref, b3_ref, g3_ref, be3_ref,
                        w4_ref, b4_ref, g4_ref, be4_ref,
                        h_ref):
    h = _leaky_relu(_linear(z_ref[...], w1_ref, b1_ref))
    h = _leaky_relu(_batchnorm(_linear(h, w2_ref, b2_ref), g2_ref, be2_ref))
    h = _leaky_relu(_batchnorm(_linear(h, w3_ref, b3_ref), g3_ref, be3_ref))
    h = _leaky_relu(_batchnorm(_linear(h, w4_ref, b4_ref), g4_ref, be4_ref))
    h_ref[...] = h.astype(h_ref.dtype)   # bf16 (same rounding point as before)


# ------------------------- stage 2: output layer + tanh ---------------------- #

def output_layer_kernel(h_ref, w5_ref, b5_ref, o_ref):
    y = jnp.dot(h_ref[...], w5_ref[...],
                preferred_element_type=jnp.float32) + b5_ref[...]
    o_ref[...] = jnp.tanh(y).astype(o_ref.dtype)


# --------------------------- generation-aware tiling ------------------------- #

def _tpu_vmem_capacity_bytes():
    try:
        info = pltpu.get_tpu_info()
        for name in ("vmem_capacity_bytes", "vmem_size_bytes", "vmem_bytes"):
            v = getattr(info, name, None)
            if v:
                return int(v)
    except Exception:
        pass
    return 64 * _MiB   # conservative fallback: assume v7x-class (smallest VMEM)


def _generation_config():
    vmem = _tpu_vmem_capacity_bytes()
    if vmem <= 64 * _MiB:
        # v7x-class: 64 MiB VMEM/TC, 2 TensorCores -> cap tiles at 4096 and
        # make sure there are >=2 (even) column tiles so both cores get work.
        return dict(tile_cap=4096, num_cores=2, vmem_cap=40 * _MiB)
    # v5e / v6e: 128 MiB VMEM, single TensorCore -> bigger tiles, fewer steps.
    return dict(tile_cap=8192, num_cores=1, vmem_cap=96 * _MiB)


def _choose_tile_n(n_pad, tile_cap, num_cores):
    # tile_n is always a divisor of n_pad (multiple of 128) -> never streams
    # dead columns beyond the 128-lane round-up.
    divisors = [d for d in range(128, n_pad + 1, 128) if n_pad % d == 0]
    for pred in (lambda s: s >= num_cores and s % num_cores == 0,
                 lambda s: s >= num_cores,
                 lambda s: True):
        cands = [d for d in divisors if d <= tile_cap and pred(n_pad // d)]
        if cands:
            return max(cands)
    return 128


# --------------------------- pallas wrapper ---------------------------------- #

def generator_forward(z, params, img_shape):
    """z: (B, latent_dim) float32 -> img: (B, *img_shape) float32."""
    B, latent = z.shape
    out_dim = math.prod(img_shape)

    w1, b1 = params["l1"]
    w2, b2, g2, be2 = params["l2"]
    w3, b3, g3, be3 = params["l3"]
    w4, b4, g4, be4 = params["l4"]
    w5, b5 = params["l5"]

    n_pad = _round_up(out_dim, 128)
    if w5.shape[1] != n_pad:
        # TODO(synk): pre-pad W5/b5 at init (init_params does); this fallback
        # costs an extra W5 HBM pass per call under jit.
        w5 = jnp.pad(w5, ((0, 0), (0, n_pad - w5.shape[1])))
        b5 = jnp.pad(b5, ((0, 0), (0, n_pad - b5.shape[1])))

    cfg = _generation_config()
    tile_n = _choose_tile_n(n_pad, cfg["tile_cap"], cfg["num_cores"])
    num_tiles = n_pad // tile_n
    hidden = w4.shape[1]   # 1024

    # ---- stage 1: layers 1-4, run ONCE (everything fits in VMEM) ----------- #
    trunk_args = (z, w1, b1, w2, b2, g2, be2, w3, b3, g3, be3, w4, b4, g4, be4)
    trunk_flops = 2 * B * (latent * 128 + 128 * 256 + 256 * 512 + 512 * 1024)
    h = pl.pallas_call(
        hidden_trunk_kernel,
        out_shape=jax.ShapeDtypeStruct((B, hidden), jnp.bfloat16),
        cost_estimate=pl.CostEstimate(
            flops=trunk_flops,
            transcendentals=256 + 512 + 1024,              # rsqrt per BN feature
            bytes_accessed=int(sum(a.size * a.dtype.itemsize for a in trunk_args)
                               + B * hidden * 2)),
    )(*trunk_args)

    # ---- stage 2: stream W5 column tiles; pure "h @ W5_tile + b5, tanh" ---- #
    w5_buffers = 3 if num_tiles >= 3 else 2   # deepen pipeline only if useful

    def _spec(shape, index_map, buffers=2):
        if buffers == 2:
            return pl.BlockSpec(shape, index_map)
        return pl.BlockSpec(shape, index_map, pipeline_mode=pl.Buffered(buffers))

    in_specs = [
        _spec((B, hidden), lambda j: (0, 0)),                 # h: VMEM-resident
        _spec((hidden, tile_n), lambda j: (0, j), w5_buffers),
        _spec((1, tile_n), lambda j: (0, j), w5_buffers),
    ]
    out_spec = pl.BlockSpec((B, tile_n), lambda j: (0, j))    # lane-dense output

    needed_vmem = (w5_buffers * hidden * tile_n * 2           # W5 tiles (bf16)
                   + w5_buffers * tile_n * 4                  # b5 tiles
                   + 2 * B * tile_n * 4                       # output tiles
                   + 2 * B * hidden * 2)                      # h
    vmem_limit = int(min(cfg["vmem_cap"], needed_vmem + 16 * _MiB))

    out = pl.pallas_call(
        output_layer_kernel,
        out_shape=jax.ShapeDtypeStruct((B, n_pad), jnp.float32),
        grid_spec=pltpu.PrefetchScalarGridSpec(
            num_scalar_prefetch=0,
            grid=(num_tiles,),
            in_specs=in_specs,
            out_specs=out_spec),
        compiler_params=pltpu.CompilerParams(
            dimension_semantics=("parallel",),
            vmem_limit_bytes=vmem_limit),
        cost_estimate=pl.CostEstimate(
            flops=2 * B * hidden * n_pad,
            transcendentals=B * n_pad,
            bytes_accessed=int(w5.size * w5.dtype.itemsize + b5.size * 4
                               + B * hidden * 2 + B * n_pad * 4)),
    )(h, w5, b5)

    return out[:, :out_dim].reshape((B,) + tuple(img_shape))


# --------------------------- parameter init ---------------------------------- #

def init_params(key, latent_dim, img_shape):
    out_dim = math.prod(img_shape)
    n_pad = _round_up(out_dim, 128)
    dims = [latent_dim, 128, 256, 512, 1024, out_dim]
    names = ["l1", "l2", "l3", "l4", "l5"]
    params = {}
    for i, name in enumerate(names):
        fan_in, fan_out = dims[i], dims[i + 1]
        key, kw, kb = jax.random.split(key, 3)
        bound = 1.0 / math.sqrt(fan_in)
        w = jax.random.uniform(kw, (fan_in, fan_out), jnp.float32, -bound, bound)
        b = jax.random.uniform(kb, (1, fan_out), jnp.float32, -bound, bound)
        if name == "l5" and fan_out != n_pad:
            # Pre-pad ONCE at init so the jitted forward never re-pads W5
            # (padded columns yield tanh(0)=0 and are sliced off post-kernel).
            w = jnp.pad(w, ((0, 0), (0, n_pad - fan_out)))
            b = jnp.pad(b, ((0, 0), (0, n_pad - fan_out)))
        # Weights streamed in bf16; MXU accumulates in f32 (biases stay f32).
        w = w.astype(jnp.bfloat16)
        if name in ("l2", "l3", "l4"):
            params[name] = (w, b,
                            jnp.ones((1, fan_out), jnp.float32),
                            jnp.zeros((1, fan_out), jnp.float32))
        else:
            params[name] = (w, b)
    return params


# --------------------------- pure-JAX reference ------------------------------ #

def reference_forward(z, params, img_shape):
    # Mirrors the kernels' precision choices (bf16 weights & matmul inputs,
    # f32 accumulation / BN / activations); BN uses the standard centered
    # two-pass formula (differences vs the kernel's fused form are ~1e-7).
    out_dim = math.prod(img_shape)

    def linear(x, w_bf16, b):
        xb = x.astype(jnp.bfloat16).astype(jnp.float32)
        return xb @ w_bf16.astype(jnp.float32) + b

    def bn(y, g, beta):
        m = jnp.mean(y, axis=0, keepdims=True)
        v = jnp.mean(jnp.square(y - m), axis=0, keepdims=True)
        return g * ((y - m) * jax.lax.rsqrt(v + BN_EPS)) + beta

    w, b = params["l1"]
    h = _leaky_relu(linear(z, w, b))
    for name in ("l2", "l3", "l4"):
        w, b, g, beta = params[name]
        h = _leaky_relu(bn(linear(h, w, b), g, beta))
    w, b = params["l5"]
    img = jnp.tanh(linear(h, w, b))[:, :out_dim]
    return img.reshape((z.shape[0],) + tuple(img_shape))


# --------------------------------- main -------------------------------------- #

if __name__ == "__main__":
    latent_dim = 32
    img_shape = (1, 16, 16)   # C, H, W  -> prod = 256
    batch = 8

    key = jax.random.PRNGKey(0)
    key, kz, kp = jax.random.split(key, 3)
    z = jax.random.normal(kz, (batch, latent_dim), jnp.float32)
    params = init_params(kp, latent_dim, img_shape)

    fwd = jax.jit(functools.partial(generator_forward, img_shape=img_shape))
    img = fwd(z, params)
    jax.block_until_ready(img)

    ref = reference_forward(z, params, img_shape)
    assert img.shape == (batch,) + img_shape, img.shape
    max_err = float(jnp.max(jnp.abs(img - ref)))
    assert jnp.allclose(img, ref, atol=5e-3, rtol=5e-3), max_err

    print("KERNEL_OK")
</pallas_src>

<mosaic_0001>
module attributes {stable_mosaic.version = 11 : i64} {
  func.func @output_layer_kernel(%arg0: i32, %arg1: memref<8x1024xbf16, #tpu.memory_space<vmem>>, %arg2: memref<1024x128xbf16, #tpu.memory_space<vmem>>, %arg3: memref<1x128xf32, #tpu.memory_space<vmem>>, %arg4: memref<8x128xf32, #tpu.memory_space<vmem>>) attributes {dimension_semantics = [#tpu.dimension_semantics<parallel>], iteration_bounds = array<i64: 2>, scalar_prefetch = 0 : i64, scratch_operands = 0 : i64, tpu.core_type = #tpu.core_type<tc>, window_params = [{pipeline_mode = #tpu.pipeline_mode<synchronous>, transform_indices = @transform_0, window_bounds = array<i64: 8, 1024>}, {transform_indices = @transform_1, window_bounds = array<i64: 1024, 128>}, {transform_indices = @transform_2, window_bounds = array<i64: 1, 128>}, {transform_indices = @transform_3, window_bounds = array<i64: 8, 128>}]} {
    %c0 = arith.constant 0 : index
    %c0_0 = arith.constant 0 : index
    %0 = vector.load %arg1[%c0, %c0_0] : memref<8x1024xbf16, #tpu.memory_space<vmem>>, vector<8x1024xbf16>
    %c0_1 = arith.constant 0 : index
    %c0_2 = arith.constant 0 : index
    %1 = vector.load %arg2[%c0_1, %c0_2] : memref<1024x128xbf16, #tpu.memory_space<vmem>>, vector<1024x128xbf16>
    %cst = arith.constant dense<0.000000e+00> : vector<8x128xf32>
    %2 = tpu.matmul %0, %1, %cst {dimension_numbers = #tpu.dot_dimension_numbers<[1], [0], [0], [1], [0, 0, 1, 1], [], []>} : vector<8x1024xbf16>, vector<1024x128xbf16>, vector<8x128xf32> -> vector<8x128xf32>
    %c0_3 = arith.constant 0 : index
    %c0_4 = arith.constant 0 : index
    %3 = vector.load %arg3[%c0_3, %c0_4] : memref<1x128xf32, #tpu.memory_space<vmem>>, vector<1x128xf32>
    %4 = vector.broadcast %3 : vector<1x128xf32> to vector<8x128xf32>
    %5 = arith.addf %2, %4 : vector<8x128xf32>
    %6 = math.tanh %5 : vector<8x128xf32>
    %c0_5 = arith.constant 0 : index
    %c0_6 = arith.constant 0 : index
    %7 = vector.load %arg4[%c0_5, %c0_6] : memref<8x128xf32, #tpu.memory_space<vmem>>, vector<8x128xf32>
    tpu.vector_store %arg4[%c0_5, %c0_6], %6 {strides = array<i32>} : memref<8x128xf32, #tpu.memory_space<vmem>>, vector<8x128xf32>,
    return
  }
  func.func @transform_0(%arg0: i32) -> (i32, i32) {
    %c0_i32 = arith.constant 0 : i32
    %c0_i32_0 = arith.constant 0 : i32
    %c0_i32_1 = arith.constant 0 : i32
    return %c0_i32, %c0_i32_0 : i32, i32
  }
  func.func @transform_1(%arg0: i32) -> (i32, i32) {
    %c0_i32 = arith.constant 0 : i32
    %c0_i32_0 = arith.constant 0 : i32
    return %c0_i32, %arg0 : i32, i32
  }
  func.func @transform_2(%arg0: i32) -> (i32, i32) {
    %c0_i32 = arith.constant 0 : i32
    %c0_i32_0 = arith.constant 0 : i32
    return %c0_i32, %arg0 : i32, i32
  }
  func.func @transform_3(%arg0: i32) -> (i32, i32) {
    %c0_i32 = arith.constant 0 : i32
    %c0_i32_0 = arith.constant 0 : i32
    return %c0_i32, %arg0 : i32, i32
  }
}

module attributes {stable_mosaic.version = 11 : i64} {
  func.func @hidden_trunk_kernel(%arg0: memref<8x32xf32, #tpu.memory_space<vmem>>, %arg1: memref<32x128xbf16, #tpu.memory_space<vmem>>, %arg2: memref<1x128xf32, #tpu.memory_space<vmem>>, %arg3: memref<128x256xbf16, #tpu.memory_space<vmem>>, %arg4: memref<1x256xf32, #tpu.memory_space<vmem>>, %arg5: memref<1x256xf32, #tpu.memory_space<vmem>>, %arg6: memref<1x256xf32, #tpu.memory_space<vmem>>, %arg7: memref<256x512xbf16, #tpu.memory_space<vmem>>, %arg8: memref<1x512xf32, #tpu.memory_space<vmem>>, %arg9: memref<1x512xf32, #tpu.memory_space<vmem>>, %arg10: memref<1x512xf32, #tpu.memory_space<vmem>>, %arg11: memref<512x1024xbf16, #tpu.memory_space<vmem>>, %arg12: memref<1x1024xf32, #tpu.memory_space<vmem>>, %arg13: memref<1x1024xf32, #tpu.memory_space<vmem>>, %arg14: memref<1x1024xf32, #tpu.memory_space<vmem>>, %arg15: memref<8x1024xbf16, #tpu.memory_space<vmem>>) attributes {dimension_semantics = [], scalar_prefetch = 0 : i64, scratch_operands = 0 : i64, tpu.core_type = #tpu.core_type<tc>} {
    %c0 = arith.constant 0 : index
    %c0_0 = arith.constant 0 : index
    %0 = vector.load %arg0[%c0, %c0_0] : memref<8x32xf32, #tpu.memory_space<vmem>>, vector<8x32xf32>
    %1 = arith.truncf %0 : vector<8x32xf32> to vector<8x32xbf16>
    %c0_1 = arith.constant 0 : index
    %c0_2 = arith.constant 0 : index
    %2 = vector.load %arg1[%c0_1, %c0_2] : memref<32x128xbf16, #tpu.memory_space<vmem>>, vector<32x128xbf16>
    %cst = arith.constant dense<0.000000e+00> : vector<8x128xf32>
    %3 = tpu.matmul %1, %2, %cst {dimension_numbers = #tpu.dot_dimension_numbers<[1], [0], [0], [1], [0, 0, 1, 1], [], []>} : vector<8x32xbf16>, vector<32x128xbf16>, vector<8x128xf32> -> vector<8x128xf32>
    %c0_3 = arith.constant 0 : index
    %c0_4 = arith.constant 0 : index
    %4 = vector.load %arg2[%c0_3, %c0_4] : memref<1x128xf32, #tpu.memory_space<vmem>>, vector<1x128xf32>
    %5 = vector.broadcast %4 : vector<1x128xf32> to vector<8x128xf32>
    %6 = arith.addf %3, %5 : vector<8x128xf32>
    %cst_5 = arith.constant 0.000000e+00 : f32
    %7 = vector.broadcast %cst_5 : f32 to vector<8x128xf32>
    %8 = arith.cmpf oge, %6, %7 : vector<8x128xf32>
    %cst_6 = arith.constant 2.000000e-01 : f32
    %9 = vector.broadcast %cst_6 : f32 to vector<8x128xf32>
    %10 = arith.mulf %9, %6 : vector<8x128xf32>
    %11 = arith.select %8, %6, %10 : vector<8x128xi1>, vector<8x128xf32>
    %12 = arith.truncf %11 : vector<8x128xf32> to vector<8x128xbf16>
    %c0_7 = arith.constant 0 : index
    %c0_8 = arith.constant 0 : index
    %13 = vector.load %arg3[%c0_7, %c0_8] : memref<128x256xbf16, #tpu.memory_space<vmem>>, vector<128x256xbf16>
    %cst_9 = arith.constant dense<0.000000e+00> : vector<8x256xf32>
    %14 = tpu.matmul %12, %13, %cst_9 {dimension_numbers = #tpu.dot_dimension_numbers<[1], [0], [0], [1], [0, 0, 1, 1], [], []>} : vector<8x128xbf16>, vector<128x256xbf16>, vector<8x256xf32> -> vector<8x256xf32>
    %c0_10 = arith.constant 0 : index
    %c0_11 = arith.constant 0 : index
    %15 = vector.load %arg4[%c0_10, %c0_11] : memref<1x256xf32, #tpu.memory_space<vmem>>, vector<1x256xf32>
    %16 = vector.broadcast %15 : vector<1x256xf32> to vector<8x256xf32>
    %17 = arith.addf %14, %16 : vector<8x256xf32>
    %cst_12 = arith.constant dense<0.000000e+00> : vector<256xf32>
    %18 = vector.multi_reduction <add>, %17, %cst_12 [0] : vector<8x256xf32> to vector<256xf32>
    %19 = vector.shape_cast %18 : vector<256xf32> to vector<1x256xf32>
    %cst_13 = arith.constant 1.250000e-01 : f32
    %20 = vector.broadcast %cst_13 : f32 to vector<1x256xf32>
    %21 = arith.mulf %19, %20 : vector<1x256xf32>
    %22 = arith.mulf %17, %17 : vector<8x256xf32>
    %cst_14 = arith.constant dense<0.000000e+00> : vector<256xf32>
    %23 = vector.multi_reduction <add>, %22, %cst_14 [0] : vector<8x256xf32> to vector<256xf32>
    %24 = vector.shape_cast %23 : vector<256xf32> to vector<1x256xf32>
    %cst_15 = arith.constant 1.250000e-01 : f32
    %25 = vector.broadcast %cst_15 : f32 to vector<1x256xf32>
    %26 = arith.mulf %24, %25 : vector<1x256xf32>
    %27 = arith.mulf %21, %21 : vector<1x256xf32>
    %28 = arith.subf %26, %27 : vector<1x256xf32>
    %c0_16 = arith.constant 0 : index
    %c0_17 = arith.constant 0 : index
    %29 = vector.load %arg5[%c0_16, %c0_17] : memref<1x256xf32, #tpu.memory_space<vmem>>, vector<1x256xf32>
    %cst_18 = arith.constant 8.000000e-01 : f32
    %30 = vector.broadcast %cst_18 : f32 to vector<1x256xf32>
    %31 = arith.addf %28, %30 : vector<1x256xf32>
    %32 = math.rsqrt %31 : vector<1x256xf32>
    %33 = arith.mulf %29, %32 : vector<1x256xf32>
    %c0_19 = arith.constant 0 : index
    %c0_20 = arith.constant 0 : index
    %34 = vector.load %arg6[%c0_19, %c0_20] : memref<1x256xf32, #tpu.memory_space<vmem>>, vector<1x256xf32>
    %35 = arith.mulf %21, %33 : vector<1x256xf32>
    %36 = arith.subf %34, %35 : vector<1x256xf32>
    %37 = vector.broadcast %33 : vector<1x256xf32> to vector<8x256xf32>
    %38 = arith.mulf %17, %37 : vector<8x256xf32>
    %39 = vector.broadcast %36 : vector<1x256xf32> to vector<8x256xf32>
    %40 = arith.addf %38, %39 : vector<8x256xf32>
    %cst_21 = arith.constant 0.000000e+00 : f32
    %41 = vector.broadcast %cst_21 : f32 to vector<8x256xf32>
    %42 = arith.cmpf oge, %40, %41 : vector<8x256xf32>
    %cst_22 = arith.constant 2.000000e-01 : f32
    %43 = vector.broadcast %cst_22 : f32 to vector<8x256xf32>
    %44 = arith.mulf %43, %40 : vector<8x256xf32>
    %45 = arith.select %42, %40, %44 : vector<8x256xi1>, vector<8x256xf32>
    %46 = arith.truncf %45 : vector<8x256xf32> to vector<8x256xbf16>
    %c0_23 = arith.constant 0 : index
    %c0_24 = arith.constant 0 : index
    %47 = vector.load %arg7[%c0_23, %c0_24] : memref<256x512xbf16, #tpu.memory_space<vmem>>, vector<256x512xbf16>
    %cst_25 = arith.constant dense<0.000000e+00> : vector<8x512xf32>
    %48 = tpu.matmul %46, %47, %cst_25 {dimension_numbers = #tpu.dot_dimension_numbers<[1], [0], [0], [1], [0, 0, 1, 1], [], []>} : vector<8x256xbf16>, vector<256x512xbf16>, vector<8x512xf32> -> vector<8x512xf32>
    %c0_26 = arith.constant 0 : index
    %c0_27 = arith.constant 0 : index
    %49 = vector.load %arg8[%c0_26, %c0_27] : memref<1x512xf32, #tpu.memory_space<vmem>>, vector<1x512xf32>
    %50 = vector.broadcast %49 : vector<1x512xf32> to vector<8x512xf32>
    %51 = arith.addf %48, %50 : vector<8x512xf32>
    %cst_28 = arith.constant dense<0.000000e+00> : vector<512xf32>
    %52 = vector.multi_reduction <add>, %51, %cst_28 [0] : vector<8x512xf32> to vector<512xf32>
    %53 = vector.shape_cast %52 : vector<512xf32> to vector<1x512xf32>
    %cst_29 = arith.constant 1.250000e-01 : f32
    %54 = vector.broadcast %cst_29 : f32 to vector<1x512xf32>
    %55 = arith.mulf %53, %54 : vector<1x512xf32>
    %56 = arith.mulf %51, %51 : vector<8x512xf32>
    %cst_30 = arith.constant dense<0.000000e+00> : vector<512xf32>
    %57 = vector.multi_reduction <add>, %56, %cst_30 [0] : vector<8x512xf32> to vector<512xf32>
    %58 = vector.shape_cast %57 : vector<512xf32> to vector<1x512xf32>
    %cst_31 = arith.constant 1.250000e-01 : f32
    %59 = vector.broadcast %cst_31 : f32 to vector<1x512xf32>
    %60 = arith.mulf %58, %59 : vector<1x512xf32>
    %61 = arith.mulf %55, %55 : vector<1x512xf32>
    %62 = arith.subf %60, %61 : vector<1x512xf32>
    %c0_32 = arith.constant 0 : index
    %c0_33 = arith.constant 0 : index
    %63 = vector.load %arg9[%c0_32, %c0_33] : memref<1x512xf32, #tpu.memory_space<vmem>>, vector<1x512xf32>
    %cst_34 = arith.constant 8.000000e-01 : f32
    %64 = vector.broadcast %cst_34 : f32 to vector<1x512xf32>
    %65 = arith.addf %62, %64 : vector<1x512xf32>
    %66 = math.rsqrt %65 : vector<1x512xf32>
    %67 = arith.mulf %63, %66 : vector<1x512xf32>
    %c0_35 = arith.constant 0 : index
    %c0_36 = arith.constant 0 : index
    %68 = vector.load %arg10[%c0_35, %c0_36] : memref<1x512xf32, #tpu.memory_space<vmem>>, vector<1x512xf32>
    %69 = arith.mulf %55, %67 : vector<1x512xf32>
    %70 = arith.subf %68, %69 : vector<1x512xf32>
    %71 = vector.broadcast %67 : vector<1x512xf32> to vector<8x512xf32>
    %72 = arith.mulf %51, %71 : vector<8x512xf32>
    %73 = vector.broadcast %70 : vector<1x512xf32> to vector<8x512xf32>
    %74 = arith.addf %72, %73 : vector<8x512xf32>
    %cst_37 = arith.constant 0.000000e+00 : f32
    %75 = vector.broadcast %cst_37 : f32 to vector<8x512xf32>
    %76 = arith.cmpf oge, %74, %75 : vector<8x512xf32>
    %cst_38 = arith.constant 2.000000e-01 : f32
    %77 = vector.broadcast %cst_38 : f32 to vector<8x512xf32>
    %78 = arith.mulf %77, %74 : vector<8x512xf32>
    %79 = arith.select %76, %74, %78 : vector<8x512xi1>, vector<8x512xf32>
    %80 = arith.truncf %79 : vector<8x512xf32> to vector<8x512xbf16>
    %c0_39 = arith.constant 0 : index
    %c0_40 = arith.constant 0 : index
    %81 = vector.load %arg11[%c0_39, %c0_40] : memref<512x1024xbf16, #tpu.memory_space<vmem>>, vector<512x1024xbf16>
    %cst_41 = arith.constant dense<0.000000e+00> : vector<8x1024xf32>
    %82 = tpu.matmul %80, %81, %cst_41 {dimension_numbers = #tpu.dot_dimension_numbers<[1], [0], [0], [1], [0, 0, 1, 1], [], []>} : vector<8x512xbf16>, vector<512x1024xbf16>, vector<8x1024xf32> -> vector<8x1024xf32>
    %c0_42 = arith.constant 0 : index
    %c0_43 = arith.constant 0 : index
    %83 = vector.load %arg12[%c0_42, %c0_43] : memref<1x1024xf32, #tpu.memory_space<vmem>>, vector<1x1024xf32>
    %84 = vector.broadcast %83 : vector<1x1024xf32> to vector<8x1024xf32>
    %85 = arith.addf %82, %84 : vector<8x1024xf32>
    %cst_44 = arith.constant dense<0.000000e+00> : vector<1024xf32>
    %86 = vector.multi_reduction <add>, %85, %cst_44 [0] : vector<8x1024xf32> to vector<1024xf32>
    %87 = vector.shape_cast %86 : vector<1024xf32> to vector<1x1024xf32>
    %cst_45 = arith.constant 1.250000e-01 : f32
    %88 = vector.broadcast %cst_45 : f32 to vector<1x1024xf32>
    %89 = arith.mulf %87, %88 : vector<1x1024xf32>
    %90 = arith.mulf %85, %85 : vector<8x1024xf32>
    %cst_46 = arith.constant dense<0.000000e+00> : vector<1024xf32>
    %91 = vector.multi_reduction <add>, %90, %cst_46 [0] : vector<8x1024xf32> to vector<1024xf32>
    %92 = vector.shape_cast %91 : vector<1024xf32> to vector<1x1024xf32>
    %cst_47 = arith.constant 1.250000e-01 : f32
    %93 = vector.broadcast %cst_47 : f32 to vector<1x1024xf32>
    %94 = arith.mulf %92, %93 : vector<1x1024xf32>
    %95 = arith.mulf %89, %89 : vector<1x1024xf32>
    %96 = arith.subf %94, %95 : vector<1x1024xf32>
    %c0_48 = arith.constant 0 : index
    %c0_49 = arith.constant 0 : index
    %97 = vector.load %arg13[%c0_48, %c0_49] : memref<1x1024xf32, #tpu.memory_space<vmem>>, vector<1x1024xf32>
    %cst_50 = arith.constant 8.000000e-01 : f32
    %98 = vector.broadcast %cst_50 : f32 to vector<1x1024xf32>
    %99 = arith.addf %96, %98 : vector<1x1024xf32>
    %100 = math.rsqrt %99 : vector<1x1024xf32>
    %101 = arith.mulf %97, %100 : vector<1x1024xf32>
    %c0_51 = arith.constant 0 : index
    %c0_52 = arith.constant 0 : index
    %102 = vector.load %arg14[%c0_51, %c0_52] : memref<1x1024xf32, #tpu.memory_space<vmem>>, vector<1x1024xf32>
    %103 = arith.mulf %89, %101 : vector<1x1024xf32>
    %104 = arith.subf %102, %103 : vector<1x1024xf32>
    %105 = vector.broadcast %101 : vector<1x1024xf32> to vector<8x1024xf32>
    %106 = arith.mulf %85, %105 : vector<8x1024xf32>
    %107 = vector.broadcast %104 : vector<1x1024xf32> to vector<8x1024xf32>
    %108 = arith.addf %106, %107 : vector<8x1024xf32>
    %cst_53 = arith.constant 0.000000e+00 : f32
    %109 = vector.broadcast %cst_53 : f32 to vector<8x1024xf32>
    %110 = arith.cmpf oge, %108, %109 : vector<8x1024xf32>
    %cst_54 = arith.constant 2.000000e-01 : f32
    %111 = vector.broadcast %cst_54 : f32 to vector<8x1024xf32>
    %112 = arith.mulf %111, %108 : vector<8x1024xf32>
    %113 = arith.select %110, %108, %112 : vector<8x1024xi1>, vector<8x1024xf32>
    %114 = arith.truncf %113 : vector<8x1024xf32> to vector<8x1024xbf16>
    %c0_55 = arith.constant 0 : index
    %c0_56 = arith.constant 0 : index
    %115 = vector.load %arg15[%c0_55, %c0_56] : memref<8x1024xbf16, #tpu.memory_space<vmem>>, vector<8x1024xbf16>
    tpu.vector_store %arg15[%c0_55, %c0_56], %114 {strides = array<i32>} : memref<8x1024xbf16, #tpu.memory_space<vmem>>, vector<8x1024xbf16>,
    return
  }
}

</mosaic_0001>

<bundles_post_ra>
// kernel: generator_forward.3
= control target key start
LH: loop header
LB: loop body
LE: loop exit
PB: predicated region body
PF: predicated region fallthrough
CT: control target
= control target key end

     0   :  { %s1828_s12 = smov 0   ;;  %s1830_s13 = smov 0   ;;  %s2251_s0 = inlined_call_operand.vmem [shape: bf16[8,1024], index: 0, kind: input, shape index: {}]   ;;  %s2252_s1 = inlined_call_operand.vmem [shape: bf16[1024,256], index: 1, kind: input, shape index: {}]   ;;  %s2253_s2 = inlined_call_operand.vmem [shape: f32[1,256], index: 2, kind: input, shape index: {}]   ;;  %s2254_s3 = inlined_call_operand.vmem [shape: f32[8,256], index: 3, kind: output, shape index: {}]  }
   0x1   :  { %s1832_s14 = smov 0  }
   0x2 LB: > { %s1514_s15 = sadd.s32 4294967295, %s1806_s14   ;;  %s1845_s16 = sadd.s32 1, %s1806_s14   ;;  %s1806_s14 = sphi %s1832_s14, %s2257_s14   ;;  %s1802_s13 = sphi %s1830_s13, %s2256_s13   ;;  %s1798_s12 = sphi %s1828_s12, %s2255_s12  }
   0x3   : > { %s38_s17 = ssub.s32 %s1806_s14, %s1845_s16  ;;  %s41_s18 = sadd.s32 1, %s1802_s13 }
   0x4   : > { %p39_p0 = scmp.eq.s32.totalorder %s38_s17, 0  ;;  %p48_p1 = scmp.ne.s32.totalorder %s1802_s13, %s1798_s12 }
   0x5   : > { %p49_p2 = scmp.eq.s32.totalorder %s1806_s14, 0  ;;  %p1517_p4 = scmp.ge.s32.totalorder %s1806_s14, 2 }
   0x6   : > { %s1854_s19 = scalar_select %p39_p0, %s1802_s13, %s41_s18  }
   0x7   : > { %p50_p3 = por %p49_p2, %p48_p1  ;;  %129 = sbr.rel (%p1517_p4) target bundleno = 103 (0x67), region = 20 }
   0xe   : > { %132 = sbr.rel (!%p50_p3) target bundleno = 103 (0x67), region = 24  ;;  %s134_s20 = sand.u32 (%p50_p3), 1, %s1802_s13  }
   0xf   : > { %s1519_s21 = sshll.u32 (%p50_p3), %s1806_s14, 2  ;;  %s1518_s22 = sshll.u32 (%p50_p3), %s134_s20, 9 }
  0x10   : > { %s1862_s25 = scalar_lea.vmem (%p50_p3), %s2252_s1, %s1519_s21  ;;  %s1866_s26 = scalar_lea.vmem (%p50_p3), [#allocation2], %s1518_s22 }
  0x11   : > { %v154_v0 = vld [vmem:[%s1862_s25] sm:$0xf] (%p50_p3)  ;;  %v156_v1 = vld [vmem:[%s1862_s25 + $0x8] sm:$0xf] (%p50_p3)  ;;  %v158_v2 = vld [vmem:[%s1862_s25 + $0x10] sm:$0xf] (%p50_p3) }
  0x12   : > { %155 = vst [vmem:[%s1866_s26] sm:$0xf] (%p50_p3), %v154_v0  ;;  %157 = vst [vmem:[%s1866_s26 + $0x4] sm:$0xf] (%p50_p3), %v156_v1  ;;  %v160_v3 = vld [vmem:[%s1862_s25 + $0x18] sm:$0xf] (%p50_p3) }
  0x13   : > { %v162_v4 = vld [vmem:[%s1862_s25 + $0x20] sm:$0xf] (%p50_p3)  ;;  %159 = vst [vmem:[%s1866_s26 + $0x8] sm:$0xf] (%p50_p3), %v158_v2  ;;  %161 = vst [vmem:[%s1866_s26 + $0xc] sm:$0xf] (%p50_p3), %v160_v3 }
  0x14   : > { %163 = vst [vmem:[%s1866_s26 + $0x10] sm:$0xf] (%p50_p3), %v162_v4  ;;  %v164_v5 = vld [vmem:[%s1862_s25 + $0x28] sm:$0xf] (%p50_p3)  ;;  %v166_v6 = vld [vmem:[%s1862_s25 + $0x30] sm:$0xf] (%p50_p3) }
  0x15   : > { %v168_v7 = vld [vmem:[%s1862_s25 + $0x38] sm:$0xf]  ;;  %165 = vst [vmem:[%s1866_s26 + $0x14] sm:$0xf] %v164_v5  ;;  %167 = vst [vmem:[%s1866_s26 + $0x18] sm:$0xf] %v166_v6 }
  0x16   : > { %169 = vst [vmem:[%s1866_s26 + $0x1c] sm:$0xf] %v168_v7  ;;  %v170_v8 = vld [vmem:[%s1862_s25 + $0x40] sm:$0xf]  ;;  %v172_v9 = vld [vmem:[%s1862_s25 + $0x48] sm:$0xf] }
  0x17   : > { %v174_v10 = vld [vmem:[%s1862_s25 + $0x50] sm:$0xf]  ;;  %171 = vst [vmem:[%s1866_s26 + $0x20] sm:$0xf] %v170_v8  ;;  %173 = vst [vmem:[%s1866_s26 + $0x24] sm:$0xf] %v172_v9 }
  0x18   : > { %175 = vst [vmem:[%s1866_s26 + $0x28] sm:$0xf] %v174_v10  ;;  %v176_v11 = vld [vmem:[%s1862_s25 + $0x58] sm:$0xf]  ;;  %v178_v12 = vld [vmem:[%s1862_s25 + $0x60] sm:$0xf] }
  0x19   : > { %v180_v13 = vld [vmem:[%s1862_s25 + $0x68] sm:$0xf]  ;;  %177 = vst [vmem:[%s1866_s26 + $0x2c] sm:$0xf] %v176_v11  ;;  %179 = vst [vmem:[%s1866_s26 + $0x30] sm:$0xf] %v178_v12 }
  0x1a   : > { %181 = vst [vmem:[%s1866_s26 + $0x34] sm:$0xf] %v180_v13  ;;  %v182_v14 = vld [vmem:[%s1862_s25 + $0x70] sm:$0xf]  ;;  %v184_v15 = vld [vmem:[%s1862_s25 + $0x78] sm:$0xf] }
  0x1b   : > { %v186_v16 = vld [vmem:[%s1862_s25 + $0x80] sm:$0xf]  ;;  %183 = vst [vmem:[%s1866_s26 + $0x38] sm:$0xf] %v182_v14  ;;  %185 = vst [vmem:[%s1866_s26 + $0x3c] sm:$0xf] %v184_v15 }
  0x1c   : > { %187 = vst [vmem:[%s1866_s26 + $0x40] sm:$0xf] %v186_v16  ;;  %v188_v17 = vld [vmem:[%s1862_s25 + $0x88] sm:$0xf]  ;;  %v190_v18 = vld [vmem:[%s1862_s25 + $0x90] sm:$0xf] }
  0x1d   : > { %v192_v19 = vld [vmem:[%s1862_s25 + $0x98] sm:$0xf]  ;;  %189 = vst [vmem:[%s1866_s26 + $0x44] sm:$0xf] %v188_v17  ;;  %191 = vst [vmem:[%s1866_s26 + $0x48] sm:$0xf] %v190_v18 }
  0x1e   : > { %193 = vst [vmem:[%s1866_s26 + $0x4c] sm:$0xf] %v192_v19  ;;  %v194_v20 = vld [vmem:[%s1862_s25 + $0xa0] sm:$0xf]  ;;  %v196_v21 = vld [vmem:[%s1862_s25 + $0xa8] sm:$0xf] }
  0x1f   : > { %v198_v22 = vld [vmem:[%s1862_s25 + $0xb0] sm:$0xf]  ;;  %195 = vst [vmem:[%s1866_s26 + $0x50] sm:$0xf] %v194_v20  ;;  %197 = vst [vmem:[%s1866_s26 + $0x54] sm:$0xf] %v196_v21 }
  0x20   : > { %199 = vst [vmem:[%s1866_s26 + $0x58] sm:$0xf] %v198_v22  ;;  %v200_v23 = vld [vmem:[%s1862_s25 + $0xb8] sm:$0xf]  ;;  %v202_v24 = vld [vmem:[%s1862_s25 + $0xc0] sm:$0xf] }
  0x21   : > { %v204_v25 = vld [vmem:[%s1862_s25 + $0xc8] sm:$0xf]  ;;  %201 = vst [vmem:[%s1866_s26 + $0x5c] sm:$0xf] %v200_v23  ;;  %203 = vst [vmem:[%s1866_s26 + $0x60] sm:$0xf] %v202_v24 }
  0x22   : > { %205 = vst [vmem:[%s1866_s26 + $0x64] sm:$0xf] %v204_v25  ;;  %v206_v26 = vld [vmem:[%s1862_s25 + $0xd0] sm:$0xf]  ;;  %v208_v27 = vld [vmem:[%s1862_s25 + $0xd8] sm:$0xf] }
  0x23   : > { %v210_v28 = vld [vmem:[%s1862_s25 + $0xe0] sm:$0xf]  ;;  %207 = vst [vmem:[%s1866_s26 + $0x68] sm:$0xf] %v206_v26  ;;  %209 = vst [vmem:[%s1866_s26 + $0x6c] sm:$0xf] %v208_v27 }
  0x24   : > { %211 = vst [vmem:[%s1866_s26 + $0x70] sm:$0xf] %v210_v28  ;;  %v212_v29 = vld [vmem:[%s1862_s25 + $0xe8] sm:$0xf]  ;;  %v214_v30 = vld [vmem:[%s1862_s25 + $0xf0] sm:$0xf] }
  0x25   : > { %v216_v31 = vld [vmem:[%s1862_s25 + $0xf8] sm:$0xf]  ;;  %213 = vst [vmem:[%s1866_s26 + $0x74] sm:$0xf] %v212_v29  ;;  %215 = vst [vmem:[%s1866_s26 + $0x78] sm:$0xf] %v214_v30 }
  0x26   : > { %217 = vst [vmem:[%s1866_s26 + $0x7c] sm:$0xf] %v216_v31  ;;  %v218_v32 = vld [vmem:[%s1862_s25 + $0x100] sm:$0xf]  ;;  %v220_v33 = vld [vmem:[%s1862_s25 + $0x108] sm:$0xf] }
  0x27   : > { %v222_v34 = vld [vmem:[%s1862_s25 + $0x110] sm:$0xf]  ;;  %219 = vst [vmem:[%s1866_s26 + $0x80] sm:$0xf] %v218_v32  ;;  %221 = vst [vmem:[%s1866_s26 + $0x84] sm:$0xf] %v220_v33 }
  0x28   : > { %223 = vst [vmem:[%s1866_s26 + $0x88] sm:$0xf] %v222_v34  ;;  %v224_v35 = vld [vmem:[%s1862_s25 + $0x118] sm:$0xf]  ;;  %v226_v36 = vld [vmem:[%s1862_s25 + $0x120] sm:$0xf] }
  0x29   : > { %v228_v37 = vld [vmem:[%s1862_s25 + $0x128] sm:$0xf]  ;;  %225 = vst [vmem:[%s1866_s26 + $0x8c] sm:$0xf] %v224_v35  ;;  %227 = vst [vmem:[%s1866_s26 + $0x90] sm:$0xf] %v226_v36 }
  0x2a   : > { %229 = vst [vmem:[%s1866_s26 + $0x94] sm:$0xf] %v228_v37  ;;  %v230_v38 = vld [vmem:[%s1862_s25 + $0x130] sm:$0xf]  ;;  %v232_v39 = vld [vmem:[%s1862_s25 + $0x138] sm:$0xf] }
  0x2b   : > { %v234_v40 = vld [vmem:[%s1862_s25 + $0x140] sm:$0xf]  ;;  %231 = vst [vmem:[%s1866_s26 + $0x98] sm:$0xf] %v230_v38  ;;  %233 = vst [vmem:[%s1866_s26 + $0x9c] sm:$0xf] %v232_v39 }
  0x2c   : > { %235 = vst [vmem:[%s1866_s26 + $0xa0] sm:$0xf] %v234_v40  ;;  %v236_v41 = vld [vmem:[%s1862_s25 + $0x148] sm:$0xf]  ;;  %v238_v42 = vld [vmem:[%s1862_s25 + $0x150] sm:$0xf] }
  0x2d   : > { %v240_v43 = vld [vmem:[%s1862_s25 + $0x158] sm:$0xf]  ;;  %237 = vst [vmem:[%s1866_s26 + $0xa4] sm:$0xf] %v236_v41  ;;  %239 = vst [vmem:[%s1866_s26 + $0xa8] sm:$0xf] %v238_v42 }
  0x2e   : > { %241 = vst [vmem:[%s1866_s26 + $0xac] sm:$0xf] %v240_v43  ;;  %v242_v44 = vld [vmem:[%s1862_s25 + $0x160] sm:$0xf]  ;;  %v244_v45 = vld [vmem:[%s1862_s25 + $0x168] sm:$0xf] }
  0x2f   : > { %v246_v46 = vld [vmem:[%s1862_s25 + $0x170] sm:$0xf]  ;;  %243 = vst [vmem:[%s1866_s26 + $0xb0] sm:$0xf] %v242_v44  ;;  %245 = vst [vmem:[%s1866_s26 + $0xb4] sm:$0xf] %v244_v45 }
  0x30   : > { %247 = vst [vmem:[%s1866_s26 + $0xb8] sm:$0xf] %v246_v46  ;;  %v248_v47 = vld [vmem:[%s1862_s25 + $0x178] sm:$0xf]  ;;  %v250_v48 = vld [vmem:[%s1862_s25 + $0x180] sm:$0xf] }
  0x31   : > { %v252_v49 = vld [vmem:[%s1862_s25 + $0x188] sm:$0xf]  ;;  %249 = vst [vmem:[%s1866_s26 + $0xbc] sm:$0xf] %v248_v47  ;;  %251 = vst [vmem:[%s1866_s26 + $0xc0] sm:$0xf] %v250_v48 }
  0x32   : > { %253 = vst [vmem:[%s1866_s26 + $0xc4] sm:$0xf] %v252_v49  ;;  %v254_v50 = vld [vmem:[%s1862_s25 + $0x190] sm:$0xf]  ;;  %v256_v51 = vld [vmem:[%s1862_s25 + $0x198] sm:$0xf] }
  0x33   : > { %v258_v52 = vld [vmem:[%s1862_s25 + $0x1a0] sm:$0xf]  ;;  %255 = vst [vmem:[%s1866_s26 + $0xc8] sm:$0xf] %v254_v50  ;;  %257 = vst [vmem:[%s1866_s26 + $0xcc] sm:$0xf] %v256_v51 }
  0x34   : > { %259 = vst [vmem:[%s1866_s26 + $0xd0] sm:$0xf] %v258_v52  ;;  %v260_v53 = vld [vmem:[%s1862_s25 + $0x1a8] sm:$0xf]  ;;  %v262_v54 = vld [vmem:[%s1862_s25 + $0x1b0] sm:$0xf] }
  0x35   : > { %v264_v55 = vld [vmem:[%s1862_s25 + $0x1b8] sm:$0xf]  ;;  %261 = vst [vmem:[%s1866_s26 + $0xd4] sm:$0xf] %v260_v53  ;;  %263 = vst [vmem:[%s1866_s26 + $0xd8] sm:$0xf] %v262_v54 }
  0x36   : > { %265 = vst [vmem:[%s1866_s26 + $0xdc] sm:$0xf] %v264_v55  ;;  %v266_v56 = vld [vmem:[%s1862_s25 + $0x1c0] sm:$0xf]  ;;  %v268_v57 = vld [vmem:[%s1862_s25 + $0x1c8] sm:$0xf] }
  0x37   : > { %v270_v58 = vld [vmem:[%s1862_s25 + $0x1d0] sm:$0xf]  ;;  %267 = vst [vmem:[%s1866_s26 + $0xe0] sm:$0xf] %v266_v56  ;;  %269 = vst [vmem:[%s1866_s26 + $0xe4] sm:$0xf] %v268_v57 }
  0x38   : > { %271 = vst [vmem:[%s1866_s26 + $0xe8] sm:$0xf] %v270_v58  ;;  %v272_v59 = vld [vmem:[%s1862_s25 + $0x1d8] sm:$0xf]  ;;  %v274_v60 = vld [vmem:[%s1862_s25 + $0x1e0] sm:$0xf] }
  0x39   : > { %v276_v61 = vld [vmem:[%s1862_s25 + $0x1e8] sm:$0xf]  ;;  %273 = vst [vmem:[%s1866_s26 + $0xec] sm:$0xf] %v272_v59  ;;  %275 = vst [vmem:[%s1866_s26 + $0xf0] sm:$0xf] %v274_v60 }
  0x3a   : > { %277 = vst [vmem:[%s1866_s26 + $0xf4] sm:$0xf] %v276_v61  ;;  %v278_v62 = vld [vmem:[%s1862_s25 + $0x1f0] sm:$0xf]  ;;  %v280_v63 = vld [vmem:[%s1862_s25 + $0x1f8] sm:$0xf] }
  0x3b   : > { %v282_v0 = vld [vmem:[%s1862_s25 + $0x200] sm:$0xf]  ;;  %279 = vst [vmem:[%s1866_s26 + $0xf8] sm:$0xf] %v278_v62  ;;  %281 = vst [vmem:[%s1866_s26 + $0xfc] sm:$0xf] %v280_v63 }
  0x3c   : > { %283 = vst [vmem:[%s1866_s26 + $0x100] sm:$0xf] %v282_v0  ;;  %v284_v1 = vld [vmem:[%s1862_s25 + $0x208] sm:$0xf]  ;;  %v286_v2 = vld [vmem:[%s1862_s25 + $0x210] sm:$0xf] }
  0x3d   : > { %v288_v3 = vld [vmem:[%s1862_s25 + $0x218] sm:$0xf]  ;;  %285 = vst [vmem:[%s1866_s26 + $0x104] sm:$0xf] %v284_v1  ;;  %287 = vst [vmem:[%s1866_s26 + $0x108] sm:$0xf] %v286_v2 }
  0x3e   : > { %289 = vst [vmem:[%s1866_s26 + $0x10c] sm:$0xf] %v288_v3  ;;  %v290_v4 = vld [vmem:[%s1862_s25 + $0x220] sm:$0xf]  ;;  %v292_v5 = vld [vmem:[%s1862_s25 + $0x228] sm:$0xf] }
  0x3f   : > { %v294_v6 = vld [vmem:[%s1862_s25 + $0x230] sm:$0xf]  ;;  %291 = vst [vmem:[%s1866_s26 + $0x110] sm:$0xf] %v290_v4  ;;  %293 = vst [vmem:[%s1866_s26 + $0x114] sm:$0xf] %v292_v5 }
  0x40   : > { %295 = vst [vmem:[%s1866_s26 + $0x118] sm:$0xf] %v294_v6  ;;  %v296_v7 = vld [vmem:[%s1862_s25 + $0x238] sm:$0xf]  ;;  %v298_v8 = vld [vmem:[%s1862_s25 + $0x240] sm:$0xf] }
  0x41   : > { %v300_v9 = vld [vmem:[%s1862_s25 + $0x248] sm:$0xf]  ;;  %297 = vst [vmem:[%s1866_s26 + $0x11c] sm:$0xf] %v296_v7  ;;  %299 = vst [vmem:[%s1866_s26 + $0x120] sm:$0xf] %v298_v8 }
  0x42   : > { %301 = vst [vmem:[%s1866_s26 + $0x124] sm:$0xf] %v300_v9  ;;  %v302_v10 = vld [vmem:[%s1862_s25 + $0x250] sm:$0xf]  ;;  %v304_v11 = vld [vmem:[%s1862_s25 + $0x258] sm:$0xf] }
  0x43   : > { %v306_v12 = vld [vmem:[%s1862_s25 + $0x260] sm:$0xf]  ;;  %303 = vst [vmem:[%s1866_s26 + $0x128] sm:$0xf] %v302_v10  ;;  %305 = vst [vmem:[%s1866_s26 + $0x12c] sm:$0xf] %v304_v11 }
  0x44   : > { %307 = vst [vmem:[%s1866_s26 + $0x130] sm:$0xf] %v306_v12  ;;  %v308_v13 = vld [vmem:[%s1862_s25 + $0x268] sm:$0xf]  ;;  %v310_v14 = vld [vmem:[%s1862_s25 + $0x270] sm:$0xf] }
  0x45   : > { %v312_v15 = vld [vmem:[%s1862_s25 + $0x278] sm:$0xf]  ;;  %309 = vst [vmem:[%s1866_s26 + $0x134] sm:$0xf] %v308_v13  ;;  %311 = vst [vmem:[%s1866_s26 + $0x138] sm:$0xf] %v310_v14 }
  0x46   : > { %313 = vst [vmem:[%s1866_s26 + $0x13c] sm:$0xf] %v312_v15  ;;  %v314_v16 = vld [vmem:[%s1862_s25 + $0x280] sm:$0xf]  ;;  %v316_v17 = vld [vmem:[%s1862_s25 + $0x288] sm:$0xf] }
  0x47   : > { %v318_v18 = vld [vmem:[%s1862_s25 + $0x290] sm:$0xf]  ;;  %315 = vst [vmem:[%s1866_s26 + $0x140] sm:$0xf] %v314_v16  ;;  %317 = vst [vmem:[%s1866_s26 + $0x144] sm:$0xf] %v316_v17 }
  0x48   : > { %319 = vst [vmem:[%s1866_s26 + $0x148] sm:$0xf] %v318_v18  ;;  %v320_v19 = vld [vmem:[%s1862_s25 + $0x298] sm:$0xf]  ;;  %v322_v20 = vld [vmem:[%s1862_s25 + $0x2a0] sm:$0xf] }
  0x49   : > { %v324_v21 = vld [vmem:[%s1862_s25 + $0x2a8] sm:$0xf]  ;;  %321 = vst [vmem:[%s1866_s26 + $0x14c] sm:$0xf] %v320_v19  ;;  %323 = vst [vmem:[%s1866_s26 + $0x150] sm:$0xf] %v322_v20 }
  0x4a   : > { %325 = vst [vmem:[%s1866_s26 + $0x154] sm:$0xf] %v324_v21  ;;  %v326_v22 = vld [vmem:[%s1862_s25 + $0x2b0] sm:$0xf]  ;;  %v328_v23 = vld [vmem:[%s1862_s25 + $0x2b8] sm:$0xf] }
  0x4b   : > { %v330_v24 = vld [vmem:[%s1862_s25 + $0x2c0] sm:$0xf]  ;;  %327 = vst [vmem:[%s1866_s26 + $0x158] sm:$0xf] %v326_v22  ;;  %329 = vst [vmem:[%s1866_s26 + $0x15c] sm:$0xf] %v328_v23 }
  0x4c   : > { %331 = vst [vmem:[%s1866_s26 + $0x160] sm:$0xf] %v330_v24  ;;  %v332_v25 = vld [vmem:[%s1862_s25 + $0x2c8] sm:$0xf]  ;;  %v334_v26 = vld [vmem:[%s1862_s25 + $0x2d0] sm:$0xf] }
  0x4d   : > { %v336_v27 = vld [vmem:[%s1862_s25 + $0x2d8] sm:$0xf]  ;;  %333 = vst [vmem:[%s1866_s26 + $0x164] sm:$0xf] %v332_v25  ;;  %335 = vst [vmem:[%s1866_s26 + $0x168] sm:$0xf] %v334_v26 }
  0x4e   : > { %337 = vst [vmem:[%s1866_s26 + $0x16c] sm:$0xf] %v336_v27  ;;  %v338_v28 = vld [vmem:[%s1862_s25 + $0x2e0] sm:$0xf]  ;;  %v340_v29 = vld [vmem:[%s1862_s25 + $0x2e8] sm:$0xf] }
  0x4f   : > { %v342_v30 = vld [vmem:[%s1862_s25 + $0x2f0] sm:$0xf]  ;;  %339 = vst [vmem:[%s1866_s26 + $0x170] sm:$0xf] %v338_v28  ;;  %341 = vst [vmem:[%s1866_s26 + $0x174] sm:$0xf] %v340_v29 }
  0x50   : > { %343 = vst [vmem:[%s1866_s26 + $0x178] sm:$0xf] %v342_v30  ;;  %v344_v31 = vld [vmem:[%s1862_s25 + $0x2f8] sm:$0xf]  ;;  %v346_v32 = vld [vmem:[%s1862_s25 + $0x300] sm:$0xf] }
  0x51   : > { %v348_v33 = vld [vmem:[%s1862_s25 + $0x308] sm:$0xf]  ;;  %345 = vst [vmem:[%s1866_s26 + $0x17c] sm:$0xf] %v344_v31  ;;  %347 = vst [vmem:[%s1866_s26 + $0x180] sm:$0xf] %v346_v32 }
  0x52   : > { %349 = vst [vmem:[%s1866_s26 + $0x184] sm:$0xf] %v348_v33  ;;  %v350_v34 = vld [vmem:[%s1862_s25 + $0x310] sm:$0xf]  ;;  %v352_v35 = vld [vmem:[%s1862_s25 + $0x318] sm:$0xf] }
  0x53   : > { %v354_v36 = vld [vmem:[%s1862_s25 + $0x320] sm:$0xf]  ;;  %351 = vst [vmem:[%s1866_s26 + $0x188] sm:$0xf] %v350_v34  ;;  %353 = vst [vmem:[%s1866_s26 + $0x18c] sm:$0xf] %v352_v35 }
  0x54   : > { %355 = vst [vmem:[%s1866_s26 + $0x190] sm:$0xf] %v354_v36  ;;  %v356_v37 = vld [vmem:[%s1862_s25 + $0x328] sm:$0xf]  ;;  %v358_v38 = vld [vmem:[%s1862_s25 + $0x330] sm:$0xf] }
  0x55   : > { %v360_v39 = vld [vmem:[%s1862_s25 + $0x338] sm:$0xf]  ;;  %357 = vst [vmem:[%s1866_s26 + $0x194] sm:$0xf] %v356_v37  ;;  %359 = vst [vmem:[%s1866_s26 + $0x198] sm:$0xf] %v358_v38 }
  0x56   : > { %361 = vst [vmem:[%s1866_s26 + $0x19c] sm:$0xf] %v360_v39  ;;  %v362_v40 = vld [vmem:[%s1862_s25 + $0x340] sm:$0xf]  ;;  %v364_v41 = vld [vmem:[%s1862_s25 + $0x348] sm:$0xf] }
  0x57   : > { %v366_v42 = vld [vmem:[%s1862_s25 + $0x350] sm:$0xf]  ;;  %363 = vst [vmem:[%s1866_s26 + $0x1a0] sm:$0xf] %v362_v40  ;;  %365 = vst [vmem:[%s1866_s26 + $0x1a4] sm:$0xf] %v364_v41 }
  0x58   : > { %367 = vst [vmem:[%s1866_s26 + $0x1a8] sm:$0xf] %v366_v42  ;;  %v368_v43 = vld [vmem:[%s1862_s25 + $0x358] sm:$0xf]  ;;  %v370_v44 = vld [vmem:[%s1862_s25 + $0x360] sm:$0xf] }
  0x59   : > { %v372_v45 = vld [vmem:[%s1862_s25 + $0x368] sm:$0xf]  ;;  %369 = vst [vmem:[%s1866_s26 + $0x1ac] sm:$0xf] %v368_v43  ;;  %371 = vst [vmem:[%s1866_s26 + $0x1b0] sm:$0xf] %v370_v44 }
  0x5a   : > { %373 = vst [vmem:[%s1866_s26 + $0x1b4] sm:$0xf] %v372_v45  ;;  %v374_v46 = vld [vmem:[%s1862_s25 + $0x370] sm:$0xf]  ;;  %v376_v47 = vld [vmem:[%s1862_s25 + $0x378] sm:$0xf] }
  0x5b   : > { %v378_v48 = vld [vmem:[%s1862_s25 + $0x380] sm:$0xf]  ;;  %375 = vst [vmem:[%s1866_s26 + $0x1b8] sm:$0xf] %v374_v46  ;;  %377 = vst [vmem:[%s1866_s26 + $0x1bc] sm:$0xf] %v376_v47 }
  0x5c   : > { %379 = vst [vmem:[%s1866_s26 + $0x1c0] sm:$0xf] %v378_v48  ;;  %v380_v49 = vld [vmem:[%s1862_s25 + $0x388] sm:$0xf]  ;;  %v382_v50 = vld [vmem:[%s1862_s25 + $0x390] sm:$0xf] }
  0x5d   : > { %v384_v51 = vld [vmem:[%s1862_s25 + $0x398] sm:$0xf]  ;;  %381 = vst [vmem:[%s1866_s26 + $0x1c4] sm:$0xf] %v380_v49  ;;  %383 = vst [vmem:[%s1866_s26 + $0x1c8] sm:$0xf] %v382_v50 }
  0x5e   : > { %385 = vst [vmem:[%s1866_s26 + $0x1cc] sm:$0xf] %v384_v51  ;;  %v386_v52 = vld [vmem:[%s1862_s25 + $0x3a0] sm:$0xf]  ;;  %v388_v53 = vld [vmem:[%s1862_s25 + $0x3a8] sm:$0xf] }
  0x5f   : > { %v390_v54 = vld [vmem:[%s1862_s25 + $0x3b0] sm:$0xf]  ;;  %387 = vst [vmem:[%s1866_s26 + $0x1d0] sm:$0xf] %v386_v52  ;;  %389 = vst [vmem:[%s1866_s26 + $0x1d4] sm:$0xf] %v388_v53 }
  0x60   : > { %391 = vst [vmem:[%s1866_s26 + $0x1d8] sm:$0xf] %v390_v54  ;;  %v392_v55 = vld [vmem:[%s1862_s25 + $0x3b8] sm:$0xf]  ;;  %v394_v56 = vld [vmem:[%s1862_s25 + $0x3c0] sm:$0xf] }
  0x61   : > { %v396_v57 = vld [vmem:[%s1862_s25 + $0x3c8] sm:$0xf]  ;;  %393 = vst [vmem:[%s1866_s26 + $0x1dc] sm:$0xf] %v392_v55  ;;  %395 = vst [vmem:[%s1866_s26 + $0x1e0] sm:$0xf] %v394_v56 }
  0x62   : > { %397 = vst [vmem:[%s1866_s26 + $0x1e4] sm:$0xf] %v396_v57  ;;  %v398_v58 = vld [vmem:[%s1862_s25 + $0x3d0] sm:$0xf]  ;;  %v400_v59 = vld [vmem:[%s1862_s25 + $0x3d8] sm:$0xf] }
  0x63   : > { %v402_v60 = vld [vmem:[%s1862_s25 + $0x3e0] sm:$0xf]  ;;  %399 = vst [vmem:[%s1866_s26 + $0x1e8] sm:$0xf] %v398_v58  ;;  %401 = vst [vmem:[%s1866_s26 + $0x1ec] sm:$0xf] %v400_v59 }
  0x64   : > { %403 = vst [vmem:[%s1866_s26 + $0x1f0] sm:$0xf] %v402_v60  ;;  %v404_v61 = vld [vmem:[%s1862_s25 + $0x3e8] sm:$0xf]  ;;  %v406_v62 = vld [vmem:[%s1862_s25 + $0x3f0] sm:$0xf] }
  0x65   : > { %v408_v63 = vld [vmem:[%s1862_s25 + $0x3f8] sm:$0xf]  ;;  %405 = vst [vmem:[%s1866_s26 + $0x1f4] sm:$0xf] %v404_v61  ;;  %407 = vst [vmem:[%s1866_s26 + $0x1f8] sm:$0xf] %v406_v62 }
  0x66   : > { %409 = vst [vmem:[%s1866_s26 + $0x1fc] sm:$0xf] %v408_v63 }
  0x67 PF: > { %p1520_p5 = scmp.ge.s32.totalorder %s1806_s14, 1  ;;  %p693_p6 = scmp.lt.s32.totalorder %s1806_s14, 3 }
  0x69   : > { %p694_p7 = pnand %p1520_p5, %p693_p6 }
  0x6a   : > { %s700_s27 = sand.u32 (!%p694_p7), 1, %s1798_s12   ;;  %v2128_v0 = vld [vmem:[%s2251_s0] sm:$0xff] (!%p694_p7)  ;;  %v2133_v1 = vld [vmem:[%s2251_s0 + $0x8] sm:$0xff] (!%p694_p7)  ;;  %v2173_v33 = vld [vmem:[%s2251_s0 + $0x10] sm:$0xff] (!%p694_p7)  ;;  %p725_p8 = scmp.lt.s32.totalorder (!%p694_p7), %s1514_s15, 1 }
  0x6b   : > { %697 = sbr.rel (%p694_p7) target bundleno = 406 (0x196), region = 69  ;;  %s1521_s5 = sshll.u32 (!%p694_p7), %s700_s27, 9  ;;  %v1525_v2 = vcombine.high (!%p694_p7), %v2128_v0, %v2128_v0  ;;  %v1527_v3 = vcombine.high (!%p694_p7), %v2133_v1, %v2133_v1  ;;  %v2179_v35 = vld [vmem:[%s2251_s0 + $0x18] sm:$0xff] (!%p694_p7)  ;;  %v1524_v38 = vcombine.low (!%p694_p7), %v2128_v0, %v2128_v0  ;;  %v1526_v39 = vcombine.low (!%p694_p7), %v2133_v1, %v2133_v1 }
  0x6c   : > { %s2139_s6 = scalar_lea.vmem (!%p694_p7), [#allocation2], %s1521_s5  ;;  %v1529_v42 = vcombine.high (!%p694_p7), %v2173_v33, %v2173_v33  ;;  %v1531_v44 = vcombine.high (!%p694_p7), %v2179_v35, %v2179_v35 }
  0x6d   : > { %v1710_v4 = vld [vmem:[%s2139_s6 + $0x40] sm:$0xff] (!%p694_p7)   ;;  %1316 = vmatprep.mubr.bf16.mxu0 (!%p694_p7), %v1525_v2  ;;  %1356 = vmatprep.mubr.bf16.mxu1 (!%p694_p7), %v1527_v3  ;;  %v1714_v8 = vld [vmem:[%s2139_s6 + $0x48] sm:$0xff] (!%p694_p7)   ;;  %v1718_v12 = vld [vmem:[%s2139_s6 + $0x50] sm:$0xff] (!%p694_p7)  }
  0x6e   : > { %v1711_v5 = vld [vmem:[%s2139_s6 + $0xc0] sm:$0xff] (!%p694_p7)   ;;  %1598 = vmatprep.subr.bf16.mxu0 (!%p694_p7), %v1710_v4  ;;  %v1715_v9 = vld [vmem:[%s2139_s6 + $0xc8] sm:$0xff] (!%p694_p7)   ;;  %v1719_v13 = vld [vmem:[%s2139_s6 + $0xd0] sm:$0xff] (!%p694_p7)  }
  0x6f   : > { %v1712_v6 = vld [vmem:[%s2139_s6] sm:$0xff] (!%p694_p7)   ;;  %1620 = vmatprep.subr.bf16.mxu1 (!%p694_p7), %v1711_v5  ;;  %v1716_v10 = vld [vmem:[%s2139_s6 + $0x8] sm:$0xff] (!%p694_p7)   ;;  %v1720_v14 = vld [vmem:[%s2139_s6 + $0x10] sm:$0xff] (!%p694_p7)  }
  0x70   : > { %v1713_v7 = vld [vmem:[%s2139_s6 + $0x80] sm:$0xff] (!%p694_p7)   ;;  %1599 = vmatpush3.bf16.msra.mxu0 (!%p694_p7), %v1712_v6  ;;  %v1717_v11 = vld [vmem:[%s2139_s6 + $0x88] sm:$0xff] (!%p694_p7)   ;;  %v1721_v15 = vld [vmem:[%s2139_s6 + $0x90] sm:$0xff] (!%p694_p7)  }
  0x71   : > { %1621 = vmatpush3.bf16.msra.mxu1 (!%p694_p7), %v1713_v7  ;;  %1600 = vmatprep.subr.bf16.mxu0 (!%p694_p7), %v1714_v8  ;;  %v1722_v16 = vld [vmem:[%s2139_s6 + $0x58] sm:$0xff] (!%p694_p7)   ;;  %v1726_v20 = vld [vmem:[%s2139_s6 + $0x60] sm:$0xff] (!%p694_p7)   ;;  %v1730_v24 = vld [vmem:[%s2139_s6 + $0x68] sm:$0xff] (!%p694_p7)  }
  0x72   : > { %1622 = vmatprep.subr.bf16.mxu1 %v1715_v9  ;;  %v1723_v17 = vld [vmem:[%s2139_s6 + $0xd8] sm:$0xff]   ;;  %v1727_v21 = vld [vmem:[%s2139_s6 + $0xe0] sm:$0xff]   ;;  %v1731_v25 = vld [vmem:[%s2139_s6 + $0xe8] sm:$0xff]   ;;  %s2259_s15 = smov (!%p725_p8, %s1514_s15), 1 }
  0x73   : > { %v1724_v18 = vld [vmem:[%s2139_s6 + $0x18] sm:$0xff]   ;;  %v1728_v22 = vld [vmem:[%s2139_s6 + $0x20] sm:$0xff]   ;;  %v1732_v26 = vld [vmem:[%s2139_s6 + $0x28] sm:$0xff]   ;;  %s727_s17 = scalar_lea.vmem %s2253_s2, %s2259_s15  ;;  %s1522_s14 = sshll.u32 %s2259_s15, 3 }
  0x74   : > { %1601 = vmatpush3.bf16.msra.mxu0 %v1716_v10  ;;  %v1725_v19 = vld [vmem:[%s2139_s6 + $0x98] sm:$0xff]   ;;  %v1729_v23 = vld [vmem:[%s2139_s6 + $0xa0] sm:$0xff]   ;;  %v1733_v27 = vld [vmem:[%s2139_s6 + $0xa8] sm:$0xff]   ;;  %v1528_v10 = vcombine.low %v2173_v33, %v2173_v33  ;;  %s731_s21 = scalar_lea.vmem %s2254_s3, %s1522_s14 }
  0x75   : > { %1623 = vmatpush3.bf16.msra.mxu1 %v1717_v11  ;;  %1602 = vmatprep.subr.bf16.mxu0 %v1718_v12  ;;  %v1734_v28 = vld [vmem:[%s2139_s6 + $0x70] sm:$0xff]   ;;  %v1738_v32 = vld [vmem:[%s2139_s6 + $0x78] sm:$0xff]   ;;  %v1746_v40 = vld [vmem:[%s2139_s6 + $0x140] sm:$0xff]   ;;  %v1530_v11 = vcombine.low %v2179_v35, %v2179_v35 }
  0x76   : > { %1624 = vmatprep.subr.bf16.mxu1 %v1719_v13  ;;  %v1735_v29 = vld [vmem:[%s2139_s6 + $0xf0] sm:$0xff]   ;;  %v1739_v34 = vld [vmem:[%s2139_s6 + $0xf8] sm:$0xff]   ;;  %v1747_v41 = vld [vmem:[%s2139_s6 + $0x1c0] sm:$0xff]  }
  0x77   : > { %v1736_v30 = vld [vmem:[%s2139_s6 + $0x30] sm:$0xff]   ;;  %v1740_v36 = vld [vmem:[%s2139_s6 + $0x38] sm:$0xff]   ;;  %v1748_v43 = vld [vmem:[%s2139_s6 + $0x100] sm:$0xff]  }
  0x78   : > { %1603 = vmatpush3.bf16.msra.mxu0 %v1720_v14  ;;  %v1737_v31 = vld [vmem:[%s2139_s6 + $0xb0] sm:$0xff]   ;;  %v1741_v37 = vld [vmem:[%s2139_s6 + $0xb8] sm:$0xff]   ;;  %v1749_v45 = vld [vmem:[%s2139_s6 + $0x180] sm:$0xff]  }
  0x79   : > { %1625 = vmatpush3.bf16.msra.mxu1 %v1721_v15  ;;  %1604 = vmatprep.subr.bf16.mxu0 %v1722_v16  ;;  %v1750_v46 = vld [vmem:[%s2139_s6 + $0x148] sm:$0xff]   ;;  %v1754_v50 = vld [vmem:[%s2139_s6 + $0x150] sm:$0xff]   ;;  %v1758_v54 = vld [vmem:[%s2139_s6 + $0x158] sm:$0xff]  }
  0x7a   : > { %1626 = vmatprep.subr.bf16.mxu1 %v1723_v17  ;;  %v1751_v47 = vld [vmem:[%s2139_s6 + $0x1c8] sm:$0xff]   ;;  %v1755_v51 = vld [vmem:[%s2139_s6 + $0x1d0] sm:$0xff]   ;;  %v1759_v55 = vld [vmem:[%s2139_s6 + $0x1d8] sm:$0xff]  }
  0x7b   : > { %v1752_v48 = vld [vmem:[%s2139_s6 + $0x108] sm:$0xff]   ;;  %v1756_v52 = vld [vmem:[%s2139_s6 + $0x110] sm:$0xff]   ;;  %v1760_v56 = vld [vmem:[%s2139_s6 + $0x118] sm:$0xff]  }
  0x7c   : > { %1605 = vmatpush3.bf16.msra.mxu0 %v1724_v18  ;;  %v1753_v49 = vld [vmem:[%s2139_s6 + $0x188] sm:$0xff]   ;;  %v1757_v53 = vld [vmem:[%s2139_s6 + $0x190] sm:$0xff]   ;;  %v1761_v57 = vld [vmem:[%s2139_s6 + $0x198] sm:$0xff]  }
  0x7d   : > { %1627 = vmatpush3.bf16.msra.mxu1 %v1725_v19  ;;  %1606 = vmatprep.subr.bf16.mxu0 %v1726_v20  ;;  %v1762_v58 = vld [vmem:[%s2139_s6 + $0x160] sm:$0xff]   ;;  %v1766_v62 = vld [vmem:[%s2139_s6 + $0x168] sm:$0xff]   ;;  %v1770_v2 = vld [vmem:[%s2139_s6 + $0x170] sm:$0xff]  }
  0x7e   : > { %1628 = vmatprep.subr.bf16.mxu1 %v1727_v21  ;;  %v1763_v59 = vld [vmem:[%s2139_s6 + $0x1e0] sm:$0xff]   ;;  %v1767_v63 = vld [vmem:[%s2139_s6 + $0x1e8] sm:$0xff]   ;;  %v1771_v3 = vld [vmem:[%s2139_s6 + $0x1f0] sm:$0xff]  }
  0x7f   : > { %v1764_v60 = vld [vmem:[%s2139_s6 + $0x120] sm:$0xff]   ;;  %v1768_v0 = vld [vmem:[%s2139_s6 + $0x128] sm:$0xff]   ;;  %v1772_v4 = vld [vmem:[%s2139_s6 + $0x130] sm:$0xff]  }
  0x80   : > { %1607 = vmatpush3.bf16.msra.mxu0 %v1728_v22  ;;  %v1765_v61 = vld [vmem:[%s2139_s6 + $0x1a0] sm:$0xff]   ;;  %v1769_v1 = vld [vmem:[%s2139_s6 + $0x1a8] sm:$0xff]   ;;  %v1773_v5 = vld [vmem:[%s2139_s6 + $0x1b0] sm:$0xff]  }
  0x81   : > { %1629 = vmatpush3.bf16.msra.mxu1 %v1729_v23  ;;  %1608 = vmatprep.subr.bf16.mxu0 %v1730_v24  ;;  %v1774_v6 = vld [vmem:[%s2139_s6 + $0x178] sm:$0xff]   ;;  %v1523_v14 = vld [vmem:[%s727_s17] ss:$0 sm:$0xff] }
  0x82   : > { %1630 = vmatprep.subr.bf16.mxu1 %v1731_v25  ;;  %v1775_v7 = vld [vmem:[%s2139_s6 + $0x1f8] sm:$0xff]  }
  0x83   : > { %v1776_v8 = vld [vmem:[%s2139_s6 + $0x138] sm:$0xff]  }
  0x84   : > { %1609 = vmatpush3.bf16.msra.mxu0 %v1732_v26  ;;  %v1777_v9 = vld [vmem:[%s2139_s6 + $0x1b8] sm:$0xff]  }
  0x85   : > { %1631 = vmatpush3.bf16.msra.mxu1 %v1733_v27  ;;  %1610 = vmatprep.subr.bf16.mxu0 %v1734_v28 }
  0x86   : > { %1632 = vmatprep.subr.bf16.mxu1 %v1735_v29 }
  0x88   : > { %1611 = vmatpush3.bf16.msra.mxu0 %v1736_v30 }
  0x89   : > { %1633 = vmatpush3.bf16.msra.mxu1 %v1737_v31  ;;  %1612 = vmatprep.subr.bf16.mxu0 %v1738_v32 }
  0x8a   : > { %1634 = vmatprep.subr.bf16.mxu1 %v1739_v34 }
  0x8c   : > { %1613 = vmatpush3.bf16.msra.mxu0 %v1740_v36 }
  0x8d   : > { %1635 = vmatpush3.bf16.msra.mxu1 %v1741_v37  ;;  %1642 = vmatprep.subr.bf16.mxu0 %v1746_v40 }
  0x8e   : > { %1664 = vmatprep.subr.bf16.mxu1 %v1747_v41 }
  0x8f   : > { %1317 = vmatmul.mubr.bf16.vlgmr.msra.gmra.mrb[0].mxu0 %v1524_v38 }
  0x90   : > { %1357 = vmatmul.mubr.bf16.vlgmr.msra.gmra.mrb[0].mxu1 %v1526_v39  ;;  %1643 = vmatpush3.bf16.msra.mxu0 %v1748_v43 }
  0x91   : > { %1665 = vmatpush3.bf16.msra.mxu1 %v1749_v45  ;;  %1396 = vmatprep.mubr.bf16.mxu0 %v1529_v42 }
  0x92   : > { %1644 = vmatprep.subr.bf16.mxu0 %v1750_v46  ;;  %1436 = vmatprep.mubr.bf16.mxu1 %v1531_v44 }
  0x93   : > { %1666 = vmatprep.subr.bf16.mxu1 %v1751_v47 }
  0x94   : > { %1645 = vmatpush3.bf16.msra.mxu0 %v1752_v48 }
  0x95   : > { %1667 = vmatpush3.bf16.msra.mxu1 %v1753_v49  ;;  %1646 = vmatprep.subr.bf16.mxu0 %v1754_v50 }
  0x96   : > { %1668 = vmatprep.subr.bf16.mxu1 %v1755_v51 }
  0x98   : > { %1647 = vmatpush3.bf16.msra.mxu0 %v1756_v52 }
  0x99   : > { %1669 = vmatpush3.bf16.msra.mxu1 %v1757_v53  ;;  %1648 = vmatprep.subr.bf16.mxu0 %v1758_v54 }
  0x9a   : > { %1670 = vmatprep.subr.bf16.mxu1 %v1759_v55 }
  0x9c   : > { %1649 = vmatpush3.bf16.msra.mxu0 %v1760_v56 }
  0x9d   : > { %1671 = vmatpush3.bf16.msra.mxu1 %v1761_v57  ;;  %1650 = vmatprep.subr.bf16.mxu0 %v1762_v58 }
  0x9e   : > { %1672 = vmatprep.subr.bf16.mxu1 %v1763_v59 }
  0xa0   : > { %1651 = vmatpush3.bf16.msra.mxu0 %v1764_v60 }
  0xa1   : > { %1673 = vmatpush3.bf16.msra.mxu1 %v1765_v61  ;;  %1652 = vmatprep.subr.bf16.mxu0 %v1766_v62 }
  0xa2   : > { %1674 = vmatprep.subr.bf16.mxu1 %v1767_v63 }
  0xa4   : > { %1653 = vmatpush3.bf16.msra.mxu0 %v1768_v0 }
  0xa5   : > { %1675 = vmatpush3.bf16.msra.mxu1 %v1769_v1  ;;  %1654 = vmatprep.subr.bf16.mxu0 %v1770_v2 }
  0xa6   : > { %1676 = vmatprep.subr.bf16.mxu1 %v1771_v3 }
  0xa8   : > { %1655 = vmatpush3.bf16.msra.mxu0 %v1772_v4 }
  0xa9   : > { %1677 = vmatpush3.bf16.msra.mxu1 %v1773_v5  ;;  %1656 = vmatprep.subr.bf16.mxu0 %v1774_v6 }
  0xaa   : > { %1678 = vmatprep.subr.bf16.mxu1 %v1775_v7 }
  0xac   : > { %1657 = vmatpush3.bf16.msra.mxu0 %v1776_v8 }
  0xad   : > { %1679 = vmatpush3.bf16.msra.mxu1 %v1777_v9 }
  0xaf   : > { %1397 = vmatmul.mubr.bf16.vlgmr.msra.gmra.mrb[4].mxu0 %v1528_v10 }
  0xb0   : > { %1437 = vmatmul.mubr.bf16.vlgmr.msra.gmra.mrb[4].mxu1 %v1530_v11 }
 0x162   : > { %v1614_v12 = vpop.f32.mrb[0].mxu0 }
 0x163   : > { %v1636_v13 = vpop.f32.mrb[0].mxu1  ;;  %v1615_v15 = vpop.f32.mrb[1].mxu0 }
 0x164   : > { %v1616_v16 = vadd.f32 %v1615_v15, %v1614_v12  ;;  %v1637_v17 = vpop.f32.mrb[1].mxu1  ;;  %v1617_v18 = vpop.f32.mrb[2].mxu0 }
 0x165   : > { %v1638_v19 = vadd.f32 %v1637_v17, %v1636_v13  ;;  %v1639_v20 = vpop.f32.mrb[2].mxu1  ;;  %v1618_v21 = vpop.f32.mrb[3].mxu0 }
 0x166   : > { %v1319_v22 = vadd.f32 %v1616_v16, %v1523_v14  ;;  %v1640_v23 = vpop.f32.mrb[3].mxu1 }
 0x168   : > { %v1359_v24 = vadd.f32 %v1638_v19, %v1319_v22 }
 0x182   : > { %v1658_v25 = vpop.f32.mrb[4].mxu0 }
 0x183   : > { %v1680_v26 = vpop.f32.mrb[4].mxu1  ;;  %v1659_v27 = vpop.f32.mrb[5].mxu0 }
 0x184   : > { %v1660_v28 = vadd.f32 %v1659_v27, %v1658_v25  ;;  %v1681_v29 = vpop.f32.mrb[5].mxu1  ;;  %v1661_v30 = vpop.f32.mrb[6].mxu0 }
 0x185   : > { %v1682_v31 = vadd.f32 %v1681_v29, %v1680_v26  ;;  %v1683_v32 = vpop.f32.mrb[6].mxu1  ;;  %v1662_v33 = vpop.f32.mrb[7].mxu0 }
 0x186   : > { %v1399_v34 = vadd.f32 %v1660_v28, %v1359_v24  ;;  %v1684_v35 = vpop.f32.mrb[7].mxu1 }
 0x188   : > { %v1439_v36 = vadd.f32 %v1682_v31, %v1399_v34 }
 0x18a   : > { %1782 = vtanh.f32 %v1439_v36 }
 0x194   : > { %v1783_v37 = vpop.eup %1782 }
 0x195   : > { %1445 = vst [vmem:[%s731_s21] sm:$0xff] %v1783_v37 }
 0x196 PF: > { %p10_p9 = scmp.ge.s32.totalorder %s1845_s16, 4   ;;  %s2255_s12 = smov %s1802_s13 }
 0x197   : > { %s2256_s13 = smov %s1854_s19  ;;  %s2257_s14 = smov %s1845_s16 }
 0x198   :  { %12 = sbr.rel (!%p10_p9) target bundleno = 2 (0x2), region = 111 }

// kernel: generator_forward.2
= control target key start
LH: loop header
LB: loop body
LE: loop exit
PB: predicated region body
PF: predicated region fallthrough
CT: control target
= control target key end

     0   :  { %s4780_s0 = inlined_call_operand.hbm [shape: f32[8,32], index: 0, kind: input, shape index: {}]   ;;  %s4781_s1 = inlined_call_operand.hbm [shape: bf16[32,128], index: 1, kind: input, shape index: {}]   ;;  %s4782_s2 = inlined_call_operand.vmem [shape: f32[1,128], index: 2, kind: input, shape index: {}]   ;;  %s4783_s3 = inlined_call_operand.hbm [shape: bf16[128,256], index: 3, kind: input, shape index: {}]   ;;  %s4784_s4 = inlined_call_operand.hbm [shape: f32[1,256], index: 4, kind: input, shape index: {}]   ;;  %s4785_s5 = inlined_call_operand.hbm [shape: f32[1,256], index: 5, kind: input, shape index: {}]   ;;  %s4786_s6 = inlined_call_operand.hbm [shape: f32[1,256], index: 6, kind: input, shape index: {}]   ;;  %s4787_s7 = inlined_call_operand.hbm [shape: bf16[256,512], index: 7, kind: input, shape index: {}]   ;;  %s4788_s8 = inlined_call_operand.vmem [shape: f32[1,512], index: 8, kind: input, shape index: {}]   ;;  %s4789_s9 = inlined_call_operand.vmem [shape: f32[1,512], index: 9, kind: input, shape index: {}]   ;;  %s4790_s10 = inlined_call_operand.vmem [shape: f32[1,512], index: 10, kind: input, shape index: {}]   ;;  %s4791_s11 = inlined_call_operand.hbm [shape: bf16[512,1024], index: 11, kind: input, shape index: {}]   ;;  %s4792_s12 = inlined_call_operand.vmem [shape: f32[1,1024], index: 12, kind: input, shape index: {}]   ;;  %s4793_s13 = inlined_call_operand.vmem [shape: f32[1,1024], index: 13, kind: input, shape index: {}]   ;;  %s4794_s14 = inlined_call_operand.vmem [shape: f32[1,1024], index: 14, kind: input, shape index: {}]   ;;  %s4795_s15 = inlined_call_operand.vmem [shape: bf16[8,1024], index: 15, kind: output, shape index: {}]  }
   0x1   :  { %4797 = sst [smem:[#allocation20_spill]] %s4795_s15 }
   0x2   :  { %20 = vsyncpa [#allocation3], 0 }
   0x3   :  { %21 = vsyncpa [#allocation5], 0 }
   0x4   :  { %22 = vsyncpa [#allocation8], 0 }
   0x5   :  { %23 = vsyncpa [#allocation11], 0 }
   0x6   :  { %24 = vsyncpa [#allocation14], 0  ;;  %s4276_s18 = smov [#allocation4]   ;;  %s4090_s22 = scalar_lea.hbm %s4781_s1, 256 }
   0x7   :  { %s40_s19 = sshll.u32 %s4276_s18, 4  ;;  %p4091_p0 = scmp.ne.s32.totalorder %s4781_s1, %s4090_s22  ;;  %s41_s19 = int_to_ptr.vmem [resolvable:$true] %s40_s19 }
   0x8   :  { %p4094_p1 = scmp.lt.u32.totalorder %s4090_s22, %s4781_s1 }
   0xa   :  { %p4096_p2 = pnand %p4094_p1, %p4091_p0 }
   0xc   :  { %4099 = shalt.err (!%p4096_p2)
}
   0xd   :  { %s4100_s27 = scalar_lea.vmem %s41_s19, 256  ;;  %p4105_p4 = scmp.lt.s32.totalorder %s41_s19, %s41_s19 }
   0xe   :  { %p4101_p3 = scmp.ne.s32.totalorder %s41_s19, %s4100_s27  ;;  %p4106_p5 = scmp.lt.s32.totalorder %s4100_s27, %s4100_s27 }
  0x10   :  { %p4107_p6 = por %p4106_p5, %p4105_p4 }
  0x12   :  { %p4108_p7 = pnand %p4107_p6, %p4101_p3 }
  0x14   :  { %4111 = shalt.err (!%p4108_p7)
}
  0x15   :  { %s4277_s28 = smov 64   ;;  %s4278_s29 = smov 4  }
  0x16   :  { %46 = dma.hbm_to_vmem [thread:$0]  %s4781_s1, 256, %s41_s19, [#allocation5], %s4277_s28, %s4277_s28, %s4278_s29  }
  0x17   :  { %s4279_s17 = smov [#allocation7]   ;;  %s4280_s20 = smov [#allocation10]  }
  0x18   :  { %s67_s18 = sshll.u32 %s4279_s17, 4  ;;  %s87_s21 = sshll.u32 %s4280_s20, 4  ;;  %s68_s18 = int_to_ptr.vmem [resolvable:$true] %s67_s18  ;;  %s88_s21 = int_to_ptr.vmem [resolvable:$true] %s87_s21 }
  0x19   :  { %s4112_s24 = scalar_lea.hbm %s4784_s4, 32 }
  0x1a   :  { %p4113_p8 = scmp.ne.s32.totalorder %s4784_s4, %s4112_s24  ;;  %p4116_p9 = scmp.lt.u32.totalorder %s4112_s24, %s4784_s4 }
  0x1c   :  { %p4118_p10 = pnand %p4116_p9, %p4113_p8 }
  0x1e   :  { %4121 = shalt.err (!%p4118_p10)
}
  0x1f   :  { %s4122_s1 = scalar_lea.vmem %s68_s18, 32  ;;  %p4127_p12 = scmp.lt.s32.totalorder %s68_s18, %s68_s18 }
  0x20   :  { %p4123_p11 = scmp.ne.s32.totalorder %s68_s18, %s4122_s1  ;;  %p4128_p13 = scmp.lt.s32.totalorder %s4122_s1, %s4122_s1 }
  0x22   :  { %p4129_p0 = por %p4128_p13, %p4127_p12 }
  0x24   :  { %p4130_p1 = pnand %p4129_p0, %p4123_p11 }
  0x26   :  { %4133 = shalt.err (!%p4130_p1)
}
  0x27   :  { %70 = dma.hbm_to_vmem [thread:$0]  %s4784_s4, 32, %s68_s18, [#allocation8]  }
  0x28   :  { %s4134_s16 = scalar_lea.hbm %s4786_s6, 32 }
  0x29   :  { %p4135_p2 = scmp.ne.s32.totalorder %s4786_s6, %s4134_s16  ;;  %p4138_p3 = scmp.lt.u32.totalorder %s4134_s16, %s4786_s6 }
  0x2b   :  { %p4140_p4 = pnand %p4138_p3, %p4135_p2 }
  0x2d   :  { %4143 = shalt.err (!%p4140_p4)
}
  0x2e   :  { %s4144_s23 = scalar_lea.vmem %s88_s21, 32  ;;  %p4149_p6 = scmp.lt.s32.totalorder %s88_s21, %s88_s21 }
  0x2f   :  { %p4145_p5 = scmp.ne.s32.totalorder %s88_s21, %s4144_s23  ;;  %p4150_p7 = scmp.lt.s32.totalorder %s4144_s23, %s4144_s23 }
  0x31   :  { %p4151_p8 = por %p4150_p7, %p4149_p6 }
  0x33   :  { %p4152_p9 = pnand %p4151_p8, %p4145_p5 }
  0x35   :  { %4155 = shalt.err (!%p4152_p9)
}
  0x36   :  { %90 = dma.hbm_to_vmem [thread:$0]  %s4786_s6, 32, %s88_s21, [#allocation11]  }
  0x37   :  { %s4281_s24 = smov [#allocation2]   ;;  %s4282_s26 = smov [#allocation6]  }
  0x38   :  { %s31_s25 = sshll.u32 %s4281_s24, 4  ;;  %s54_s27 = sshll.u32 %s4282_s26, 4  ;;  %s32_s25 = int_to_ptr.vmem [resolvable:$true] %s31_s25  ;;  %s55_s27 = int_to_ptr.vmem [resolvable:$true] %s54_s27 }
  0x39   :  { %s4156_s28 = scalar_lea.hbm %s4780_s0, 128 }
  0x3a   :  { %p4157_p10 = scmp.ne.s32.totalorder %s4780_s0, %s4156_s28  ;;  %p4160_p11 = scmp.lt.u32.totalorder %s4156_s28, %s4780_s0 }
  0x3c   :  { %p4162_p12 = pnand %p4160_p11, %p4157_p10 }
  0x3e   :  { %4165 = shalt.err (!%p4162_p12)
}
  0x3f   :  { %s4166_s6 = scalar_lea.vmem %s32_s25, 128  ;;  %p4171_p0 = scmp.lt.s32.totalorder %s32_s25, %s32_s25 }
  0x40   :  { %p4167_p13 = scmp.ne.s32.totalorder %s32_s25, %s4166_s6  ;;  %p4172_p1 = scmp.lt.s32.totalorder %s4166_s6, %s4166_s6 }
  0x42   :  { %p4173_p2 = por %p4172_p1, %p4171_p0 }
  0x44   :  { %p4174_p3 = pnand %p4173_p2, %p4167_p13 }
  0x46   :  { %4177 = shalt.err (!%p4174_p3)
}
  0x47   :  { %34 = dma.hbm_to_vmem [thread:$0]  %s4780_s0, 128, %s32_s25, [#allocation3]  }
  0x48   :  { %s4178_s23 = scalar_lea.hbm %s4783_s3, 2048 }
  0x49   :  { %p4179_p4 = scmp.ne.s32.totalorder %s4783_s3, %s4178_s23  ;;  %p4182_p5 = scmp.lt.u32.totalorder %s4178_s23, %s4783_s3 }
  0x4b   :  { %p4184_p6 = pnand %p4182_p5, %p4179_p4 }
  0x4d   :  { %4187 = shalt.err (!%p4184_p6)
}
  0x4e   :  { %s4188_s1 = scalar_lea.vmem %s55_s27, 2048  ;;  %p4193_p8 = scmp.lt.s32.totalorder %s55_s27, %s55_s27 }
  0x4f   :  { %p4189_p7 = scmp.ne.s32.totalorder %s55_s27, %s4188_s1  ;;  %p4194_p9 = scmp.lt.s32.totalorder %s4188_s1, %s4188_s1 }
  0x51   :  { %p4195_p10 = por %p4194_p9, %p4193_p8 }
  0x53   :  { %p4196_p11 = pnand %p4195_p10, %p4189_p7 }
  0x55   :  { %4199 = shalt.err (!%p4196_p11)
}
  0x56   :  { %s4283_s0 = smov 128   ;;  %s4284_s25 = smov 8  }
  0x57   :  { %60 = dma.hbm_to_vmem [thread:$0]  %s4783_s3, 2048, %s55_s27, [#allocation5], %s4283_s0, %s4283_s0, %s4284_s25  }
  0x58   :  { %s4285_s29 = smov [#allocation9]   ;;  %s4286_s16 = smov [#allocation12]  }
  0x59   :  { %s77_s30 = sshll.u32 %s4285_s29, 4  ;;  %s96_s15 = sshll.u32 %s4286_s16, 4  ;;  %s78_s30 = int_to_ptr.vmem [resolvable:$true] %s77_s30  ;;  %s97_s15 = int_to_ptr.vmem [resolvable:$true] %s96_s15 }
  0x5a   :  { %s4200_s17 = scalar_lea.hbm %s4785_s5, 32 }
  0x5b   :  { %p4201_p12 = scmp.ne.s32.totalorder %s4785_s5, %s4200_s17  ;;  %p4204_p13 = scmp.lt.u32.totalorder %s4200_s17, %s4785_s5 }
  0x5d   :  { %p4206_p0 = pnand %p4204_p13, %p4201_p12 }
  0x5f   :  { %4209 = shalt.err (!%p4206_p0)
}
  0x60   :  { %s4210_s3 = scalar_lea.vmem %s78_s30, 32  ;;  %p4215_p2 = scmp.lt.s32.totalorder %s78_s30, %s78_s30 }
  0x61   :  { %p4211_p1 = scmp.ne.s32.totalorder %s78_s30, %s4210_s3  ;;  %p4216_p3 = scmp.lt.s32.totalorder %s4210_s3, %s4210_s3 }
  0x63   :  { %p4217_p4 = por %p4216_p3, %p4215_p2 }
  0x65   :  { %p4218_p5 = pnand %p4217_p4, %p4211_p1 }
  0x67   :  { %4221 = shalt.err (!%p4218_p5)
}
  0x68   :  { %80 = dma.hbm_to_vmem [thread:$0]  %s4785_s5, 32, %s78_s30, [#allocation8]  }
  0x69   :  { %s4222_s1 = scalar_lea.hbm %s4787_s7, 8192 }
  0x6a   :  { %p4223_p6 = scmp.ne.s32.totalorder %s4787_s7, %s4222_s1  ;;  %p4226_p7 = scmp.lt.u32.totalorder %s4222_s1, %s4787_s7 }
  0x6c   :  { %p4228_p8 = pnand %p4226_p7, %p4223_p6 }
  0x6e   :  { %4231 = shalt.err (!%p4228_p8)
}
  0x6f   :  { %s4232_s29 = scalar_lea.vmem %s97_s15, 8192  ;;  %p4237_p10 = scmp.lt.s32.totalorder %s97_s15, %s97_s15 }
  0x70   :  { %p4233_p9 = scmp.ne.s32.totalorder %s97_s15, %s4232_s29  ;;  %p4238_p11 = scmp.lt.s32.totalorder %s4232_s29, %s4232_s29 }
  0x72   :  { %p4239_p12 = por %p4238_p11, %p4237_p10 }
  0x74   :  { %p4240_p13 = pnand %p4239_p12, %p4233_p9 }
  0x76   :  { %4243 = shalt.err (!%p4240_p13)
}
  0x77   :  { %s4287_s5 = smov 256   ;;  %s4288_s30 = smov 16  }
  0x78   :  { %102 = dma.hbm_to_vmem [thread:$0]  %s4787_s7, 8192, %s97_s15, [#allocation11], %s4287_s5, %s4287_s5, %s4288_s30  }
  0x79   :  { %s4289_s21 = smov [#allocation13]   ;;  %s4244_s23 = scalar_lea.hbm %s4791_s11, 32768 }
  0x7a   :  { %s114_s17 = sshll.u32 %s4289_s21, 4  ;;  %p4245_p0 = scmp.ne.s32.totalorder %s4791_s11, %s4244_s23  ;;  %s115_s17 = int_to_ptr.vmem [resolvable:$true] %s114_s17 }
  0x7b   :  { %p4248_p1 = scmp.lt.u32.totalorder %s4244_s23, %s4791_s11 }
  0x7d   :  { %p4250_p2 = pnand %p4248_p1, %p4245_p0 }
  0x7f   :  { %4253 = shalt.err (!%p4250_p2)
}
  0x80   :  { %s4254_s24 = scalar_lea.vmem %s115_s17, 32768  ;;  %p4259_p4 = scmp.lt.s32.totalorder %s115_s17, %s115_s17 }
  0x81   :  { %p4255_p3 = scmp.ne.s32.totalorder %s115_s17, %s4254_s24  ;;  %p4260_p5 = scmp.lt.s32.totalorder %s4254_s24, %s4254_s24 }
  0x83   :  { %p4261_p6 = por %p4260_p5, %p4259_p4 }
  0x85   :  { %p4262_p7 = pnand %p4261_p6, %p4255_p3 }
  0x87   :  { %4265 = shalt.err (!%p4262_p7)
}
  0x88   :  { %s4290_s7 = smov 512   ;;  %s4291_s15 = smov 32  }
  0x89   :  { %120 = dma.hbm_to_vmem [thread:$0]  %s4791_s11, 32768, %s115_s17, [#allocation14], %s4290_s7, %s4290_s7, %s4291_s15  }
  0x8a   :  { %4266 = dma.done.wait [#allocation3], 128  }
  0x8b   :  { %4267 = vsyncadd [#allocation3], 4294967168 }
  0x8c   :  { %4268 = dma.done.wait [#allocation5], 2304  }
  0x8d   :  { %4269 = vsyncadd [#allocation5], 4294964992 }
  0x8e   :  { %4270 = dma.done.wait [#allocation8], 64  }
  0x8f   :  { %4271 = vsyncadd [#allocation8], 4294967232 }
  0x90   :  { %4272 = dma.done.wait [#allocation11], 8224  }
  0x91   :  { %4273 = vsyncadd [#allocation11], 4294959072 }
  0x92   :  { %4274 = dma.done.wait [#allocation14], 32768  }
  0x93   :  { %4275 = vsyncadd [#allocation14], 4294934528  ;;  %v4292_v0 = vmov 0.0   ;;  %vm4293_vm0 = vmmov 0   ;;  %v3940_v1 = vld [vmem:[#allocation4] sm:$0xff]   ;;  %v3941_v2 = vld [vmem:[#allocation4 + $0x8] sm:$0xff]  }
  0x94   :  { %3888 = vmatprep.subr.bf16.mxu0 %v4292_v0  ;;  %3892 = vmatprep.mubr.msk.bf16.mxu0 %vm4293_vm0, %v4292_v0  ;;  %v152_v3 = vld [vmem:[#allocation2] sm:$0xff]  ;;  %v3945_v6 = vld [vmem:[#allocation6 + $0x14] ss:$8 sps:$4 sm:$0xff]   ;;  %vm177_vm1 = vcmask 261120   ;;  %v3947_v8 = vld [vmem:[#allocation6 + $0x10] ss:$8 sps:$4 sm:$0xff]  }
  0x95   :  { %3889 = vmatpush3.bf16.msra.mxu0 %v3940_v1  ;;  %v3942_v4 = vld [vmem:[#allocation6 + $0x4] ss:$8 sps:$4 sm:$0xff]   ;;  %v3944_v5 = vld [vmem:[#allocation6] ss:$8 sps:$4 sm:$0xff]   ;;  %v153_v7 = vpack.c.bf16 %v152_v3, %v152_v3  ;;  %v3951_v11 = vld [vmem:[#allocation6 + $0x34] ss:$8 sps:$4 sm:$0xff]  }
  0x96   :  { %3890 = vmatprep.subr.bf16.mxu0 %v4292_v0  ;;  %333 = vmatprep.subr.bf16.mxu1 %v3942_v4  ;;  %v3948_v9 = vld [vmem:[#allocation6 + $0x24] ss:$8 sps:$4 sm:$0xff]   ;;  %v3950_v10 = vld [vmem:[#allocation6 + $0x20] ss:$8 sps:$4 sm:$0xff]   ;;  %v3953_v12 = vld [vmem:[#allocation6 + $0x30] ss:$8 sps:$4 sm:$0xff]  }
  0x97   :  { %334 = vmatpush1.bf16.msra.mxu1 %v3944_v5  ;;  %v3954_v13 = vld [vmem:[#allocation6 + $0x44] ss:$8 sps:$4 sm:$0xff]   ;;  %v3956_v14 = vld [vmem:[#allocation6 + $0x40] ss:$8 sps:$4 sm:$0xff]   ;;  %v3957_v15 = vld [vmem:[#allocation6 + $0x54] ss:$8 sps:$4 sm:$0xff]  }
  0x98   :  { %335 = vmatprep.subr.bf16.mxu1 %v3945_v6  ;;  %v3959_v16 = vld [vmem:[#allocation6 + $0x50] ss:$8 sps:$4 sm:$0xff]   ;;  %v3960_v17 = vld [vmem:[#allocation6 + $0x64] ss:$8 sps:$4 sm:$0xff]   ;;  %v3962_v18 = vld [vmem:[#allocation6 + $0x60] ss:$8 sps:$4 sm:$0xff]  }
  0x99   :  { %3891 = vmatpush3.bf16.msra.mxu0 %v3941_v2  ;;  %v3963_v19 = vld [vmem:[#allocation6 + $0x74] ss:$8 sps:$4 sm:$0xff]   ;;  %v3965_v20 = vld [vmem:[#allocation6 + $0x70] ss:$8 sps:$4 sm:$0xff]   ;;  %v4294_v21 = vmov 0   ;;  %s4798_s6 = sld [smem:[#allocation20_spill]] }
  0x9a   :  { %365 = vmatprep.mubr.bf16.mxu1 %v4294_v21  ;;  %v3537_v22 = vld [vmem:[%s4782_s2] ss:$0 sm:$0xff]  ;;  %v3968_v31 = vld [vmem:[#allocation12 + $0x4] ss:$16 sps:$4 sm:$0xff]   ;;  %v3971_v32 = vld [vmem:[#allocation12 + $0xc] ss:$16 sps:$4 sm:$0xff]  }
  0x9b   :  { %336 = vmatpush1.bf16.msra.mxu1 %v3947_v8  ;;  %v3966_v33 = vld [vmem:[#allocation12] ss:$16 sps:$4 sm:$0xff]   ;;  %v3969_v34 = vld [vmem:[#allocation12 + $0x8] ss:$16 sps:$4 sm:$0xff]   ;;  %894 = vmatprep.subr.bf16.mxu0 %v3968_v31  ;;  %v3974_v35 = vld [vmem:[#allocation12 + $0x24] ss:$16 sps:$4 sm:$0xff]   ;;  %v243_v31 = vlaneseq }
  0x9c   :  { %3893 = vmatmul.mubr.msk.bf16.vlgmr.msra.gmra.mrb[0].mxu0 %vm177_vm1, %v153_v7  ;;  %337 = vmatprep.subr.bf16.mxu1 %v3948_v9  ;;  %v3977_v36 = vld [vmem:[#allocation12 + $0x2c] ss:$16 sps:$4 sm:$0xff]   ;;  %v3972_v37 = vld [vmem:[#allocation12 + $0x20] ss:$16 sps:$4 sm:$0xff]   ;;  %v3975_v38 = vld [vmem:[#allocation12 + $0x28] ss:$16 sps:$4 sm:$0xff]  }
  0x9d   :  { %895 = vmatpush1.bf16.msra.mxu0 %v3966_v33  ;;  %v3980_v39 = vld [vmem:[#allocation12 + $0x44] ss:$16 sps:$4 sm:$0xff]   ;;  %v3983_v40 = vld [vmem:[#allocation12 + $0x4c] ss:$16 sps:$4 sm:$0xff]   ;;  %v3978_v41 = vld [vmem:[#allocation12 + $0x40] ss:$16 sps:$4 sm:$0xff]  }
  0x9e   :  { %896 = vmatprep.subr.bf16.mxu0 %v3974_v35  ;;  %v3981_v42 = vld [vmem:[#allocation12 + $0x48] ss:$16 sps:$4 sm:$0xff]   ;;  %v3986_v43 = vld [vmem:[#allocation12 + $0x64] ss:$16 sps:$4 sm:$0xff]   ;;  %v3989_v44 = vld [vmem:[#allocation12 + $0x6c] ss:$16 sps:$4 sm:$0xff]  }
  0x9f   :  { %338 = vmatpush1.bf16.msra.mxu1 %v3950_v10  ;;  %v3984_v45 = vld [vmem:[#allocation12 + $0x60] ss:$16 sps:$4 sm:$0xff]   ;;  %v3987_v46 = vld [vmem:[#allocation12 + $0x68] ss:$16 sps:$4 sm:$0xff]   ;;  %v3992_v47 = vld [vmem:[#allocation12 + $0x84] ss:$16 sps:$4 sm:$0xff]  }
  0xa0   :  { %339 = vmatprep.subr.bf16.mxu1 %v3951_v11  ;;  %v3995_v48 = vld [vmem:[#allocation12 + $0x8c] ss:$16 sps:$4 sm:$0xff]   ;;  %v3990_v49 = vld [vmem:[#allocation12 + $0x80] ss:$16 sps:$4 sm:$0xff]   ;;  %v3993_v50 = vld [vmem:[#allocation12 + $0x88] ss:$16 sps:$4 sm:$0xff]  }
  0xa1   :  { %897 = vmatpush1.bf16.msra.mxu0 %v3972_v37  ;;  %v3998_v51 = vld [vmem:[#allocation12 + $0xa4] ss:$16 sps:$4 sm:$0xff]   ;;  %v4001_v52 = vld [vmem:[#allocation12 + $0xac] ss:$16 sps:$4 sm:$0xff]   ;;  %v3996_v53 = vld [vmem:[#allocation12 + $0xa0] ss:$16 sps:$4 sm:$0xff]  }
  0xa2   :  { %898 = vmatprep.subr.bf16.mxu0 %v3980_v39  ;;  %v3999_v54 = vld [vmem:[#allocation12 + $0xa8] ss:$16 sps:$4 sm:$0xff]   ;;  %v4004_v55 = vld [vmem:[#allocation12 + $0xc4] ss:$16 sps:$4 sm:$0xff]   ;;  %v4002_v56 = vld [vmem:[#allocation12 + $0xc0] ss:$16 sps:$4 sm:$0xff]  }
  0xa3   :  { %340 = vmatpush1.bf16.msra.mxu1 %v3953_v12  ;;  %v4005_v57 = vld [vmem:[#allocation12 + $0xc8] ss:$16 sps:$4 sm:$0xff]   ;;  %v4007_v58 = vld [vmem:[#allocation12 + $0xcc] ss:$16 sps:$4 sm:$0xff]   ;;  %v4010_v59 = vld [vmem:[#allocation12 + $0xe4] ss:$16 sps:$4 sm:$0xff]  }
  0xa4   :  { %341 = vmatprep.subr.bf16.mxu1 %v3954_v13  ;;  %v4013_v60 = vld [vmem:[#allocation12 + $0xec] ss:$16 sps:$4 sm:$0xff]   ;;  %v4008_v61 = vld [vmem:[#allocation12 + $0xe0] ss:$16 sps:$4 sm:$0xff]   ;;  %v4011_v62 = vld [vmem:[#allocation12 + $0xe8] ss:$16 sps:$4 sm:$0xff]  }
  0xa5   :  { %899 = vmatpush1.bf16.msra.mxu0 %v3978_v41  ;;  %v4016_v63 = vld [vmem:[#allocation12 + $0x104] ss:$16 sps:$4 sm:$0xff]   ;;  %v4019_v0 = vld [vmem:[#allocation12 + $0x10c] ss:$16 sps:$4 sm:$0xff]   ;;  %v4014_v1 = vld [vmem:[#allocation12 + $0x100] ss:$16 sps:$4 sm:$0xff]  }
  0xa6   :  { %900 = vmatprep.subr.bf16.mxu0 %v3986_v43  ;;  %v4017_v2 = vld [vmem:[#allocation12 + $0x108] ss:$16 sps:$4 sm:$0xff]   ;;  %v4022_v3 = vld [vmem:[#allocation12 + $0x124] ss:$16 sps:$4 sm:$0xff]   ;;  %v4025_v4 = vld [vmem:[#allocation12 + $0x12c] ss:$16 sps:$4 sm:$0xff]  }
  0xa7   :  { %342 = vmatpush1.bf16.msra.mxu1 %v3956_v14  ;;  %v4020_v5 = vld [vmem:[#allocation12 + $0x120] ss:$16 sps:$4 sm:$0xff]   ;;  %v4023_v6 = vld [vmem:[#allocation12 + $0x128] ss:$16 sps:$4 sm:$0xff]   ;;  %v4028_v7 = vld [vmem:[#allocation12 + $0x144] ss:$16 sps:$4 sm:$0xff]  }
  0xa8   :  { %343 = vmatprep.subr.bf16.mxu1 %v3957_v15  ;;  %v4031_v8 = vld [vmem:[#allocation12 + $0x14c] ss:$16 sps:$4 sm:$0xff]   ;;  %v4026_v9 = vld [vmem:[#allocation12 + $0x140] ss:$16 sps:$4 sm:$0xff]   ;;  %v4029_v10 = vld [vmem:[#allocation12 + $0x148] ss:$16 sps:$4 sm:$0xff]  }
  0xa9   :  { %901 = vmatpush1.bf16.msra.mxu0 %v3984_v45  ;;  %v4034_v11 = vld [vmem:[#allocation12 + $0x164] ss:$16 sps:$4 sm:$0xff]   ;;  %v4037_v12 = vld [vmem:[#allocation12 + $0x16c] ss:$16 sps:$4 sm:$0xff]   ;;  %v4032_v13 = vld [vmem:[#allocation12 + $0x160] ss:$16 sps:$4 sm:$0xff]  }
  0xaa   :  { %902 = vmatprep.subr.bf16.mxu0 %v3992_v47  ;;  %v4035_v14 = vld [vmem:[#allocation12 + $0x168] ss:$16 sps:$4 sm:$0xff]   ;;  %v4040_v15 = vld [vmem:[#allocation12 + $0x184] ss:$16 sps:$4 sm:$0xff]   ;;  %v4049_v21 = vld [vmem:[#allocation12 + $0x1ac] ss:$16 sps:$4 sm:$0xff]  }
  0xab   :  { %344 = vmatpush1.bf16.msra.mxu1 %v3959_v16  ;;  %v4043_v16 = vld [vmem:[#allocation12 + $0x18c] ss:$16 sps:$4 sm:$0xff]  }
  0xac   :  { %345 = vmatprep.subr.bf16.mxu1 %v3960_v17  ;;  %v4038_v17 = vld [vmem:[#allocation12 + $0x180] ss:$16 sps:$4 sm:$0xff]  }
  0xad   :  { %903 = vmatpush1.bf16.msra.mxu0 %v3990_v49 }
  0xae   :  { %904 = vmatprep.subr.bf16.mxu0 %v3998_v51 }
  0xaf   :  { %346 = vmatpush1.bf16.msra.mxu1 %v3962_v18  ;;  %v4041_v18 = vld [vmem:[#allocation12 + $0x188] ss:$16 sps:$4 sm:$0xff]  }
  0xb0   :  { %347 = vmatprep.subr.bf16.mxu1 %v3963_v19  ;;  %v4046_v19 = vld [vmem:[#allocation12 + $0x1a4] ss:$16 sps:$4 sm:$0xff]  }
  0xb1   :  { %905 = vmatpush1.bf16.msra.mxu0 %v3996_v53 }
  0xb2   :  { %906 = vmatprep.subr.bf16.mxu0 %v4004_v55 }
  0xb3   :  { %348 = vmatpush1.bf16.msra.mxu1 %v3965_v20  ;;  %v4044_v20 = vld [vmem:[#allocation12 + $0x1a0] ss:$16 sps:$4 sm:$0xff]  }
  0xb4   :  { %935 = vmatprep.subr.bf16.mxu1 %v3971_v32  ;;  %v4475_v32 = vshrl.u32 %v243_v31, 7 }
  0xb5   :  { %907 = vmatpush1.bf16.msra.mxu0 %v4002_v56 }
  0xb6   :  { %908 = vmatprep.subr.bf16.mxu0 %v4010_v59  ;;  %v4478_v33 = vsub.s32 0, %v4475_v32  ;;  %v4481_v35 = vsub.s32 1, %v4475_v32 }
  0xb9   :  { %909 = vmatpush1.bf16.msra.mxu0 %v4008_v61 }
  0xba   :  { %910 = vmatprep.subr.bf16.mxu0 %v4016_v63 }
  0xbd   :  { %911 = vmatpush1.bf16.msra.mxu0 %v4014_v1 }
  0xbe   :  { %912 = vmatprep.subr.bf16.mxu0 %v4022_v3 }
  0xc1   :  { %913 = vmatpush1.bf16.msra.mxu0 %v4020_v5 }
  0xc2   :  { %914 = vmatprep.subr.bf16.mxu0 %v4028_v7 }
  0xc5   :  { %915 = vmatpush1.bf16.msra.mxu0 %v4026_v9 }
  0xc6   :  { %916 = vmatprep.subr.bf16.mxu0 %v4034_v11 }
  0xc9   :  { %917 = vmatpush1.bf16.msra.mxu0 %v4032_v13 }
  0xca   :  { %918 = vmatprep.subr.bf16.mxu0 %v4040_v15 }
  0xcd   :  { %919 = vmatpush1.bf16.msra.mxu0 %v4038_v17 }
  0xce   :  { %920 = vmatprep.subr.bf16.mxu0 %v4046_v19 }
  0xd1   :  { %921 = vmatpush1.bf16.msra.mxu0 %v4044_v20 }
 0x16f   :  { %v215_v23 = vpop.f32.mrb[0].mxu0 }
 0x170   :  { %v216_v24 = vadd.f32 %v3537_v22, %v215_v23  ;;  %v3894_v25 = vpop.f32.mrb[1].mxu0  ;;  %v4047_v22 = vld [vmem:[#allocation12 + $0x1a8] ss:$16 sps:$4 sm:$0xff]   ;;  %v4052_v23 = vld [vmem:[#allocation12 + $0x1c4] ss:$16 sps:$4 sm:$0xff]  }
 0x171   :  { %v218_v26 = vpop.f32.mrb[2].mxu0  ;;  %v4050_v25 = vld [vmem:[#allocation12 + $0x1c0] ss:$16 sps:$4 sm:$0xff]   ;;  %922 = vmatprep.subr.bf16.mxu0 %v4052_v23 }
 0x172   :  { %vm221_vm2 = vcmp.ge.f32.partialorder %v216_v24, 0.0  ;;  %v222_v27 = vmul.f32 0.2, %v216_v24  ;;  %v3895_v28 = vpop.f32.mrb[3].mxu0  ;;  %v4053_v26 = vld [vmem:[#allocation12 + $0x1c8] ss:$16 sps:$4 sm:$0xff]   ;;  %923 = vmatpush1.bf16.msra.mxu0 %v4050_v25 }
 0x173   :  { %v4061_v28 = vld [vmem:[#allocation12 + $0x1ec] ss:$16 sps:$4 sm:$0xff]  }
 0x174   :  { %v223_v29 = vsel %vm221_vm2, %v216_v24, %v222_v27  ;;  %v4055_v24 = vld [vmem:[#allocation12 + $0x1cc] ss:$16 sps:$4 sm:$0xff]   ;;  %v4058_v27 = vld [vmem:[#allocation12 + $0x1e4] ss:$16 sps:$4 sm:$0xff]  }
 0x175   :  { %v224_v30 = vpack.c.bf16 %v223_v29, %v223_v29  ;;  %v4056_v29 = vld [vmem:[#allocation12 + $0x1e0] ss:$16 sps:$4 sm:$0xff]   ;;  %924 = vmatprep.subr.bf16.mxu0 %v4058_v27 }
 0x176   :  { %925 = vmatpush1.bf16.msra.mxu0 %v4056_v29 }
 0x177   :  { %366 = vmatmul.mubr.bf16.vlgmr.msra.gmra.mrb[0].mxu1 %v224_v30  ;;  %v4059_v30 = vld [vmem:[#allocation12 + $0x1e8] ss:$16 sps:$4 sm:$0xff]  }
 0x178   :  { %936 = vmatpush1.bf16.msra.mxu1 %v3969_v34  ;;  %v241_v34 = vld [vmem:[#allocation7] sm:$0x3] }
 0x179   :  { %937 = vmatprep.subr.bf16.mxu1 %v3977_v36  ;;  %v246_v36 = vrot.slane %v241_v34, %v4478_v33  ;;  %v250_v37 = vrot.slane %v241_v34, %v4481_v35 }
 0x17c   :  { %938 = vmatpush1.bf16.msra.mxu1 %v3975_v38 }
 0x17d   :  { %939 = vmatprep.subr.bf16.mxu1 %v3983_v40 }
 0x180   :  { %940 = vmatpush1.bf16.msra.mxu1 %v3981_v42 }
 0x181   :  { %941 = vmatprep.subr.bf16.mxu1 %v3989_v44 }
 0x184   :  { %942 = vmatpush1.bf16.msra.mxu1 %v3987_v46 }
 0x185   :  { %943 = vmatprep.subr.bf16.mxu1 %v3995_v48 }
 0x188   :  { %944 = vmatpush1.bf16.msra.mxu1 %v3993_v50 }
 0x189   :  { %945 = vmatprep.subr.bf16.mxu1 %v4001_v52 }
 0x18c   :  { %946 = vmatpush1.bf16.msra.mxu1 %v3999_v54 }
 0x18d   :  { %947 = vmatprep.subr.bf16.mxu1 %v4007_v58 }
 0x190   :  { %948 = vmatpush1.bf16.msra.mxu1 %v4005_v57 }
 0x191   :  { %949 = vmatprep.subr.bf16.mxu1 %v4013_v60 }
 0x194   :  { %950 = vmatpush1.bf16.msra.mxu1 %v4011_v62 }
 0x195   :  { %951 = vmatprep.subr.bf16.mxu1 %v4019_v0 }
 0x198   :  { %952 = vmatpush1.bf16.msra.mxu1 %v4017_v2 }
 0x199   :  { %953 = vmatprep.subr.bf16.mxu1 %v4025_v4 }
 0x19c   :  { %954 = vmatpush1.bf16.msra.mxu1 %v4023_v6 }
 0x19d   :  { %955 = vmatprep.subr.bf16.mxu1 %v4031_v8 }
 0x1a0   :  { %956 = vmatpush1.bf16.msra.mxu1 %v4029_v10 }
 0x1a1   :  { %957 = vmatprep.subr.bf16.mxu1 %v4037_v12 }
 0x1a4   :  { %958 = vmatpush1.bf16.msra.mxu1 %v4035_v14 }
 0x1a5   :  { %959 = vmatprep.subr.bf16.mxu1 %v4043_v16  ;;  %v4295_v16 = vmov 1966171168  }
 0x1a6   :  { %v417_v17 = vunpack.c.l.s4 %v4295_v16 }
 0x1a8   :  { %960 = vmatpush1.bf16.msra.mxu1 %v4041_v18  ;;  %v418_v18 = vunpack.c.0.s8 %v417_v17 }
 0x1a9   :  { %961 = vmatprep.subr.bf16.mxu1 %v4049_v21 }
 0x1aa   :  { %v4486_v20 = vsub.s32 %v418_v18, %v4475_v32 }
 0x1ac   :  { %962 = vmatpush1.bf16.msra.mxu1 %v4047_v22 }
 0x1ad   :  { %963 = vmatprep.subr.bf16.mxu1 %v4055_v24  ;;  %v408_v24 = vld [vmem:[#allocation9] sm:$0x3] }
 0x1b0   :  { %964 = vmatpush1.bf16.msra.mxu1 %v4053_v26 }
 0x1b1   :  { %965 = vmatprep.subr.bf16.mxu1 %v4061_v28 }
 0x1b4   :  { %966 = vmatpush1.bf16.msra.mxu1 %v4059_v30 }
 0x24a   :  { %v367_v38 = vpop.f32.mrb[0].mxu1 }
 0x24b   :  { %v368_v39 = vadd.f32 %v367_v38, %v246_v36  ;;  %v369_v40 = vpop.f32.mrb[1].mxu1  ;;  %v432_v38 = vld [vmem:[#allocation10] sm:$0x3] }
 0x24c   :  { %v370_v41 = vadd.f32 %v369_v40, %v250_v37  ;;  %v371_v42 = vpop.f32.mrb[2].mxu1 }
 0x24d   :  { %v374_v43 = vrot.slane %v368_v39, 4  ;;  %v388_v44 = vmul.f32 %v368_v39, %v368_v39  ;;  %v372_v45 = vpop.f32.mrb[3].mxu1 }
 0x24e   :  { %v380_v46 = vrot.slane %v370_v41, 4  ;;  %v389_v47 = vmul.f32 %v370_v41, %v370_v41 }
 0x24f   :  { %v375_v48 = vadd.f32 %v374_v43, %v368_v39  ;;  %v390_v49 = vrot.slane %v388_v44, 4 }
 0x250   :  { %v381_v50 = vadd.f32 %v380_v46, %v370_v41  ;;  %v396_v51 = vrot.slane %v389_v47, 4 }
 0x251   :  { %v376_v52 = vrot.slane %v375_v48, 2  ;;  %v391_v53 = vadd.f32 %v390_v49, %v388_v44 }
 0x252   :  { %v382_v54 = vrot.slane %v381_v50, 2  ;;  %v397_v55 = vadd.f32 %v396_v51, %v389_v47  ;;  %v1184_v51 = vld [vmem:[#allocation13] sm:$0xff] }
 0x253   :  { %v377_v56 = vadd.f32 %v376_v52, %v375_v48  ;;  %v392_v57 = vrot.slane %v391_v53, 2  ;;  %v1188_v52 = vld [vmem:[#allocation13 + $0x20] sm:$0xff] }
 0x254   :  { %v383_v58 = vadd.f32 %v382_v54, %v381_v50  ;;  %v398_v59 = vrot.slane %v397_v55, 2  ;;  %v3622_v54 = vcombine.high %v1184_v51, %v1188_v52 }
 0x255   :  { %v378_v60 = vrot.slane %v377_v56, 1  ;;  %v393_v61 = vadd.f32 %v392_v57, %v391_v53  ;;  %v1185_v53 = vld [vmem:[#allocation13 + $0x8] sm:$0xff] }
 0x256   :  { %v384_v62 = vrot.slane %v383_v58, 1  ;;  %v399_v63 = vadd.f32 %v398_v59, %v397_v55  ;;  %v1189_v55 = vld [vmem:[#allocation13 + $0x28] sm:$0xff]  ;;  %2762 = vmatprep.subr.bf16.mxu0 %v3622_v54  ;;  %v1192_v59 = vld [vmem:[#allocation13 + $0x40] sm:$0xff] }
 0x257   :  { %v379_v0 = vadd.f32 %v378_v60, %v377_v56  ;;  %v394_v1 = vrot.slane %v393_v61, 1  ;;  %v3621_v56 = vcombine.low %v1184_v51, %v1188_v52  ;;  %v3623_v57 = vcombine.low %v1185_v53, %v1189_v55  ;;  %v1196_v60 = vld [vmem:[#allocation13 + $0x60] sm:$0xff]  ;;  %v1245_v51 = vld [vmem:[#allocation13 + $0x1e8] sm:$0xff] }
 0x258   :  { %v385_v2 = vadd.f32 %v384_v62, %v383_v58  ;;  %v400_v3 = vrot.slane %v399_v63, 1  ;;  %v3624_v58 = vcombine.high %v1185_v53, %v1189_v55  ;;  %v3630_v62 = vcombine.high %v1192_v59, %v1196_v60  ;;  %v1248_v55 = vld [vmem:[#allocation13 + $0x200] sm:$0xff] }
 0x259   :  { %v386_v4 = vmul.f32 0.125, %v379_v0  ;;  %v395_v5 = vadd.f32 %v394_v1, %v393_v61  ;;  %v1193_v61 = vld [vmem:[#allocation13 + $0x48] sm:$0xff]  ;;  %v3629_v0 = vcombine.low %v1192_v59, %v1196_v60 }
 0x25a   :  { %v387_v6 = vmul.f32 0.125, %v385_v2  ;;  %v401_v7 = vadd.f32 %v400_v3, %v399_v63  ;;  %2844 = vmatprep.subr.bf16.mxu1 %v3624_v58  ;;  %v1197_v63 = vld [vmem:[#allocation13 + $0x68] sm:$0xff]  ;;  %v1200_v3 = vld [vmem:[#allocation13 + $0x80] sm:$0xff] }
 0x25b   :  { %v402_v8 = vmul.f32 0.125, %v395_v5  ;;  %v404_v9 = vmul.f32 %v386_v4, %v386_v4  ;;  %v3631_v1 = vcombine.low %v1193_v61, %v1197_v63  ;;  %v3632_v2 = vcombine.high %v1193_v61, %v1197_v63  ;;  %v1201_v5 = vld [vmem:[#allocation13 + $0x88] sm:$0xff]  ;;  %v1256_v63 = vld [vmem:[#allocation13 + $0x240] sm:$0xff] }
 0x25c   :  { %v403_v10 = vmul.f32 0.125, %v401_v7  ;;  %v405_v11 = vmul.f32 %v387_v6, %v387_v6  ;;  %v1205_v7 = vld [vmem:[#allocation13 + $0xa8] sm:$0xff] }
 0x25d   :  { %v406_v12 = vsub.f32 %v402_v8, %v404_v9  ;;  %v3639_v9 = vcombine.low %v1201_v5, %v1205_v7  ;;  %v1253_v59 = vld [vmem:[#allocation13 + $0x228] sm:$0xff] }
 0x25e   :  { %v407_v13 = vsub.f32 %v403_v10, %v405_v11  ;;  %v3640_v10 = vcombine.high %v1201_v5, %v1205_v7  ;;  %v1208_v11 = vld [vmem:[#allocation13 + $0xc0] sm:$0xff] }
 0x25f   :  { %v409_v14 = vadd.f32 0.8, %v406_v12  ;;  %v1212_v12 = vld [vmem:[#allocation13 + $0xe0] sm:$0xff] }
 0x260   :  { %v410_v15 = vadd.f32 0.8, %v407_v13  ;;  %v1209_v13 = vld [vmem:[#allocation13 + $0xc8] sm:$0xff]  ;;  %v3645_v16 = vcombine.low %v1208_v11, %v1212_v12  ;;  %v1264_v7 = vld [vmem:[#allocation13 + $0x280] sm:$0xff] }
 0x261   :  { %4062 = vrsqrt.f32 %v409_v14  ;;  %v3646_v14 = vcombine.high %v1208_v11, %v1212_v12  ;;  %v1269_v11 = vld [vmem:[#allocation13 + $0x2a8] sm:$0xff] }
 0x262   :  { %4064 = vrsqrt.f32 %v410_v15  ;;  %v1213_v15 = vld [vmem:[#allocation13 + $0xe8] sm:$0xff] }
 0x263   :  { %v3647_v17 = vcombine.low %v1209_v13, %v1213_v15  ;;  %v3648_v18 = vcombine.high %v1209_v13, %v1213_v15  ;;  %v1272_v15 = vld [vmem:[#allocation13 + $0x2c0] sm:$0xff] }
 0x26b   :  { %v4063_v19 = vpop.eup %4062 }
 0x26c   :  { %v4065_v21 = vpop.eup %4064 }
 0x26d   :  { %v415_v22 = vcombine.low %v4063_v19, %v4065_v21  ;;  %v1216_v19 = vld [vmem:[#allocation13 + $0x100] sm:$0xff] }
 0x26e   :  { %v1220_v21 = vld [vmem:[#allocation13 + $0x120] sm:$0xff] }
 0x26f   :  { %v422_v23 = vrot.slane %v415_v22, %v4486_v20  ;;  %v1217_v22 = vld [vmem:[#allocation13 + $0x108] sm:$0xff] }
 0x271   :  { %v429_v25 = vrot.slane %v422_v23, %v4486_v20  ;;  %v3654_v23 = vcombine.high %v1216_v19, %v1220_v21 }
 0x273   :  { %v431_v26 = vmul.f32 %v429_v25, %v408_v24  ;;  %v1221_v24 = vld [vmem:[#allocation13 + $0x128] sm:$0xff]  ;;  %v3653_v25 = vcombine.low %v1216_v19, %v1220_v21 }
 0x274   :  { %v1277_v19 = vld [vmem:[#allocation13 + $0x2e8] sm:$0xff] }
 0x275   :  { %v437_v27 = vrot.slane %v431_v26, %v4478_v33  ;;  %v441_v28 = vrot.slane %v431_v26, %v4481_v35  ;;  %v3655_v26 = vcombine.low %v1217_v22, %v1221_v24 }
 0x277   :  { %v444_v29 = vmul.f32 %v437_v27, %v386_v4  ;;  %v445_v30 = vmul.f32 %v441_v28, %v387_v6  ;;  %v466_v31 = vmul.f32 %v441_v28, %v370_v41  ;;  %v465_v34 = vmul.f32 %v437_v27, %v368_v39  ;;  %v1204_v4 = vld [vmem:[#allocation13 + $0xa0] sm:$0xff] }
 0x278   :  { %v3638_v6 = vcombine.high %v1200_v3, %v1204_v4  ;;  %v3637_v8 = vcombine.low %v1200_v3, %v1204_v4  ;;  %v3656_v27 = vcombine.high %v1217_v22, %v1221_v24  ;;  %v1224_v28 = vld [vmem:[#allocation13 + $0x140] sm:$0xff]  ;;  %v1261_v3 = vld [vmem:[#allocation13 + $0x268] sm:$0xff] }
 0x279   :  { %v448_v36 = vcombine.low %v444_v29, %v445_v30  ;;  %v1228_v29 = vld [vmem:[#allocation13 + $0x160] sm:$0xff]  ;;  %v1225_v30 = vld [vmem:[#allocation13 + $0x148] sm:$0xff] }
 0x27a   :  { %v1280_v24 = vld [vmem:[#allocation13 + $0x300] sm:$0xff] }
 0x27b   :  { %v455_v37 = vrot.slane %v448_v36, %v4486_v20  ;;  %v3661_v36 = vcombine.low %v1224_v28, %v1228_v29 }
 0x27d   :  { %v462_v40 = vrot.slane %v455_v37, %v4486_v20 }
 0x27f   :  { %v464_v42 = vsub.f32 %v432_v38, %v462_v40  ;;  %v1232_v40 = vld [vmem:[#allocation13 + $0x180] sm:$0xff] }
 0x281   :  { %v475_v43 = vrot.slane %v464_v42, %v4481_v35  ;;  %v471_v44 = vrot.slane %v464_v42, %v4478_v33  ;;  %v1236_v42 = vld [vmem:[#allocation13 + $0x1a0] sm:$0xff] }
 0x283   :  { %v479_v45 = vadd.f32 %v475_v43, %v466_v31  ;;  %v478_v46 = vadd.f32 %v471_v44, %v465_v34  ;;  %v3662_v31 = vcombine.high %v1224_v28, %v1228_v29  ;;  %v1229_v34 = vld [vmem:[#allocation13 + $0x168] sm:$0xff]  ;;  %v3670_v44 = vcombine.high %v1232_v40, %v1236_v42 }
 0x284   :  { %v3663_v37 = vcombine.low %v1225_v30, %v1229_v34  ;;  %v3664_v38 = vcombine.high %v1225_v30, %v1229_v34  ;;  %v1233_v43 = vld [vmem:[#allocation13 + $0x188] sm:$0xff]  ;;  %v1288_v34 = vld [vmem:[#allocation13 + $0x340] sm:$0xff] }
 0x285   :  { %vm481_vm3 = vcmp.ge.f32.partialorder %v479_v45, 0.0  ;;  %v483_v47 = vmul.f32 0.2, %v479_v45  ;;  %vm480_vm4 = vcmp.ge.f32.partialorder %v478_v46, 0.0  ;;  %v482_v48 = vmul.f32 0.2, %v478_v46 }
 0x286   :  { %v1285_v28 = vld [vmem:[#allocation13 + $0x328] sm:$0xff] }
 0x287   :  { %v485_v49 = vsel %vm481_vm3, %v479_v45, %v483_v47  ;;  %v484_v41 = vsel %vm480_vm4, %v478_v46, %v482_v48  ;;  %v1237_v45 = vld [vmem:[#allocation13 + $0x1a8] sm:$0xff]  ;;  %v3669_v46 = vcombine.low %v1232_v40, %v1236_v42 }
 0x288   :  { %v487_v39 = vpack.c.bf16 %v485_v49, %v485_v49  ;;  %v486_v50 = vpack.c.bf16 %v484_v41, %v484_v41  ;;  %v3671_v47 = vcombine.low %v1233_v43, %v1237_v45  ;;  %v3672_v48 = vcombine.high %v1233_v43, %v1237_v45  ;;  %v1240_v49 = vld [vmem:[#allocation13 + $0x1c0] sm:$0xff]  ;;  %v1293_v40 = vld [vmem:[#allocation13 + $0x368] sm:$0xff] }
 0x289   :  { %v1244_v41 = vld [vmem:[#allocation13 + $0x1e0] sm:$0xff] }
 0x28a   :  { %926 = vmatprep.mubr.bf16.mxu0 %v487_v39  ;;  %967 = vmatprep.mubr.bf16.mxu1 %v487_v39  ;;  %v1241_v39 = vld [vmem:[#allocation13 + $0x1c8] sm:$0xff]  ;;  %v3677_v52 = vcombine.low %v1240_v49, %v1244_v41  ;;  %v1296_v45 = vld [vmem:[#allocation13 + $0x380] sm:$0xff] }
 0x28b   :  { %927 = vmatmul.mubr.bf16.vlgmr.msra.gmra.mrb[4].mxu0 %v486_v50  ;;  %968 = vmatmul.mubr.bf16.vlgmr.msra.gmra.mrb[4].mxu1 %v486_v50  ;;  %v3678_v50 = vcombine.high %v1240_v49, %v1244_v41  ;;  %v3679_v53 = vcombine.low %v1241_v39, %v1245_v51  ;;  %v3680_v54 = vcombine.high %v1241_v39, %v1245_v51  ;;  %v1301_v49 = vld [vmem:[#allocation13 + $0x3a8] sm:$0xff]  ;;  %v1304_v51 = vld [vmem:[#allocation13 + $0x3c0] sm:$0xff] }
 0x28c   :  { %2763 = vmatpush1.bf16.msra.mxu0 %v3621_v56  ;;  %2845 = vmatpush1.bf16.msra.mxu1 %v3623_v57  ;;  %v1252_v56 = vld [vmem:[#allocation13 + $0x220] sm:$0xff]  ;;  %v1249_v57 = vld [vmem:[#allocation13 + $0x208] sm:$0xff] }
 0x28d   :  { %2764 = vmatprep.subr.bf16.mxu0 %v3630_v62  ;;  %2846 = vmatprep.subr.bf16.mxu1 %v3632_v2  ;;  %v3686_v58 = vcombine.high %v1248_v55, %v1252_v56  ;;  %v3685_v60 = vcombine.low %v1248_v55, %v1252_v56  ;;  %v3687_v61 = vcombine.low %v1249_v57, %v1253_v59  ;;  %v1309_v56 = vld [vmem:[#allocation13 + $0x3e8] sm:$0xff] }
 0x28e   :  { %v3688_v62 = vcombine.high %v1249_v57, %v1253_v59  ;;  %v4496_v59 = vld [vmem:[#allocation13 + $0x400] sm:$0xff] }
 0x290   :  { %2765 = vmatpush1.bf16.msra.mxu0 %v3629_v0  ;;  %2847 = vmatpush1.bf16.msra.mxu1 %v3631_v1  ;;  %v1260_v0 = vld [vmem:[#allocation13 + $0x260] sm:$0xff]  ;;  %v1257_v1 = vld [vmem:[#allocation13 + $0x248] sm:$0xff] }
 0x291   :  { %2766 = vmatprep.subr.bf16.mxu0 %v3638_v6  ;;  %2848 = vmatprep.subr.bf16.mxu1 %v3640_v10  ;;  %v3694_v2 = vcombine.high %v1256_v63, %v1260_v0  ;;  %v3693_v4 = vcombine.low %v1256_v63, %v1260_v0  ;;  %v3695_v5 = vcombine.low %v1257_v1, %v1261_v3  ;;  %v4504_v63 = vld [vmem:[#allocation13 + $0x428] sm:$0xff] }
 0x292   :  { %v3696_v6 = vcombine.high %v1257_v1, %v1261_v3  ;;  %v4513_v3 = vsub.s32 2, %v4475_v32 }
 0x294   :  { %2767 = vmatpush1.bf16.msra.mxu0 %v3637_v8  ;;  %2849 = vmatpush1.bf16.msra.mxu1 %v3639_v9  ;;  %v1268_v8 = vld [vmem:[#allocation13 + $0x2a0] sm:$0xff]  ;;  %v1265_v9 = vld [vmem:[#allocation13 + $0x288] sm:$0xff] }
 0x295   :  { %2768 = vmatprep.subr.bf16.mxu0 %v3646_v14  ;;  %2850 = vmatprep.subr.bf16.mxu1 %v3648_v18  ;;  %v3702_v10 = vcombine.high %v1264_v7, %v1268_v8  ;;  %v3701_v12 = vcombine.low %v1264_v7, %v1268_v8  ;;  %v3703_v13 = vcombine.low %v1265_v9, %v1269_v11 }
 0x296   :  { %v3704_v14 = vcombine.high %v1265_v9, %v1269_v11 }
 0x298   :  { %2769 = vmatpush1.bf16.msra.mxu0 %v3645_v16  ;;  %2851 = vmatpush1.bf16.msra.mxu1 %v3647_v17  ;;  %v1276_v16 = vld [vmem:[#allocation13 + $0x2e0] sm:$0xff]  ;;  %v1273_v17 = vld [vmem:[#allocation13 + $0x2c8] sm:$0xff] }
 0x299   :  { %2770 = vmatprep.subr.bf16.mxu0 %v3654_v23  ;;  %2852 = vmatprep.subr.bf16.mxu1 %v3656_v27  ;;  %v3710_v18 = vcombine.high %v1272_v15, %v1276_v16  ;;  %v3709_v21 = vcombine.low %v1272_v15, %v1276_v16  ;;  %v3711_v22 = vcombine.low %v1273_v17, %v1277_v19 }
 0x29a   :  { %v3712_v23 = vcombine.high %v1273_v17, %v1277_v19 }
 0x29c   :  { %2771 = vmatpush1.bf16.msra.mxu0 %v3653_v25  ;;  %2853 = vmatpush1.bf16.msra.mxu1 %v3655_v26  ;;  %v1284_v25 = vld [vmem:[#allocation13 + $0x320] sm:$0xff]  ;;  %v1281_v26 = vld [vmem:[#allocation13 + $0x308] sm:$0xff] }
 0x29d   :  { %2772 = vmatprep.subr.bf16.mxu0 %v3662_v31  ;;  %2854 = vmatprep.subr.bf16.mxu1 %v3664_v38  ;;  %v3718_v27 = vcombine.high %v1280_v24, %v1284_v25  ;;  %v3717_v29 = vcombine.low %v1280_v24, %v1284_v25  ;;  %v3719_v30 = vcombine.low %v1281_v26, %v1285_v28 }
 0x29e   :  { %v3720_v31 = vcombine.high %v1281_v26, %v1285_v28 }
 0x2a0   :  { %2773 = vmatpush1.bf16.msra.mxu0 %v3661_v36  ;;  %2855 = vmatpush1.bf16.msra.mxu1 %v3663_v37  ;;  %v1292_v36 = vld [vmem:[#allocation13 + $0x360] sm:$0xff]  ;;  %v1289_v37 = vld [vmem:[#allocation13 + $0x348] sm:$0xff] }
 0x2a1   :  { %2774 = vmatprep.subr.bf16.mxu0 %v3670_v44  ;;  %2856 = vmatprep.subr.bf16.mxu1 %v3672_v48  ;;  %v3726_v38 = vcombine.high %v1288_v34, %v1292_v36  ;;  %v3725_v42 = vcombine.low %v1288_v34, %v1292_v36  ;;  %v3727_v43 = vcombine.low %v1289_v37, %v1293_v40 }
 0x2a2   :  { %v3728_v44 = vcombine.high %v1289_v37, %v1293_v40 }
 0x2a4   :  { %2775 = vmatpush1.bf16.msra.mxu0 %v3669_v46  ;;  %2857 = vmatpush1.bf16.msra.mxu1 %v3671_v47  ;;  %v1300_v46 = vld [vmem:[#allocation13 + $0x3a0] sm:$0xff]  ;;  %v1297_v47 = vld [vmem:[#allocation13 + $0x388] sm:$0xff] }
 0x2a5   :  { %2776 = vmatprep.subr.bf16.mxu0 %v3678_v50  ;;  %2858 = vmatprep.subr.bf16.mxu1 %v3680_v54  ;;  %v3734_v48 = vcombine.high %v1296_v45, %v1300_v46  ;;  %v3733_v41 = vcombine.low %v1296_v45, %v1300_v46  ;;  %v3735_v39 = vcombine.low %v1297_v47, %v1301_v49 }
 0x2a6   :  { %v3736_v50 = vcombine.high %v1297_v47, %v1301_v49 }
 0x2a8   :  { %2777 = vmatpush1.bf16.msra.mxu0 %v3677_v52  ;;  %2859 = vmatpush1.bf16.msra.mxu1 %v3679_v53  ;;  %v1308_v52 = vld [vmem:[#allocation13 + $0x3e0] sm:$0xff]  ;;  %v1305_v53 = vld [vmem:[#allocation13 + $0x3c8] sm:$0xff] }
 0x2a9   :  { %2778 = vmatprep.subr.bf16.mxu0 %v3686_v58  ;;  %2860 = vmatprep.subr.bf16.mxu1 %v3688_v62  ;;  %v3741_v54 = vcombine.low %v1304_v51, %v1308_v52  ;;  %v3742_v55 = vcombine.high %v1304_v51, %v1308_v52  ;;  %v3743_v57 = vcombine.low %v1305_v53, %v1309_v56 }
 0x2aa   :  { %v3744_v58 = vcombine.high %v1305_v53, %v1309_v56 }
 0x2ac   :  { %2779 = vmatpush1.bf16.msra.mxu0 %v3685_v60  ;;  %2861 = vmatpush1.bf16.msra.mxu1 %v3687_v61  ;;  %v4498_v60 = vld [vmem:[#allocation13 + $0x420] sm:$0xff]  ;;  %v4500_v61 = vld [vmem:[#allocation13 + $0x408] sm:$0xff] }
 0x2ad   :  { %2780 = vmatprep.subr.bf16.mxu0 %v3694_v2  ;;  %2862 = vmatprep.subr.bf16.mxu1 %v3696_v6  ;;  %v3750_v62 = vcombine.high %v4496_v59, %v4498_v60  ;;  %v3749_v0 = vcombine.low %v4496_v59, %v4498_v60  ;;  %v3751_v1 = vcombine.low %v4500_v61, %v4504_v63 }
 0x2ae   :  { %v3752_v2 = vcombine.high %v4500_v61, %v4504_v63 }
 0x2b0   :  { %2781 = vmatpush1.bf16.msra.mxu0 %v3693_v4  ;;  %2863 = vmatpush1.bf16.msra.mxu1 %v3695_v5  ;;  %v552_v4 = vld [vmem:[%s4788_s8] sm:$0xf]  ;;  %v4519_v5 = vsub.s32 3, %v4475_v32 }
 0x2b1   :  { %2782 = vmatprep.subr.bf16.mxu0 %v3702_v10  ;;  %2864 = vmatprep.subr.bf16.mxu1 %v3704_v14  ;;  %v557_v6 = vrot.slane %v552_v4, %v4478_v33  ;;  %v565_v7 = vrot.slane %v552_v4, %v4513_v3  ;;  %v561_v8 = vrot.slane %v552_v4, %v4481_v35 }
 0x2b2   :  { %v569_v9 = vrot.slane %v552_v4, %v4519_v5 }
 0x2b4   :  { %2783 = vmatpush1.bf16.msra.mxu0 %v3701_v12  ;;  %2865 = vmatpush1.bf16.msra.mxu1 %v3703_v13 }
 0x2b5   :  { %2784 = vmatprep.subr.bf16.mxu0 %v3710_v18  ;;  %2866 = vmatprep.subr.bf16.mxu1 %v3712_v23 }
 0x2b8   :  { %2785 = vmatpush1.bf16.msra.mxu0 %v3709_v21  ;;  %2867 = vmatpush1.bf16.msra.mxu1 %v3711_v22 }
 0x2b9   :  { %2786 = vmatprep.subr.bf16.mxu0 %v3718_v27  ;;  %2868 = vmatprep.subr.bf16.mxu1 %v3720_v31 }
 0x2bc   :  { %2787 = vmatpush1.bf16.msra.mxu0 %v3717_v29  ;;  %2869 = vmatpush1.bf16.msra.mxu1 %v3719_v30 }
 0x2bd   :  { %2788 = vmatprep.subr.bf16.mxu0 %v3726_v38  ;;  %2870 = vmatprep.subr.bf16.mxu1 %v3728_v44 }
 0x2c0   :  { %2789 = vmatpush1.bf16.msra.mxu0 %v3725_v42  ;;  %2871 = vmatpush1.bf16.msra.mxu1 %v3727_v43 }
 0x2c1   :  { %2790 = vmatprep.subr.bf16.mxu0 %v3734_v48  ;;  %2872 = vmatprep.subr.bf16.mxu1 %v3736_v50 }
 0x2c4   :  { %2791 = vmatpush1.bf16.msra.mxu0 %v3733_v41  ;;  %2873 = vmatpush1.bf16.msra.mxu1 %v3735_v39 }
 0x2c5   :  { %2792 = vmatprep.subr.bf16.mxu0 %v3742_v55  ;;  %2874 = vmatprep.subr.bf16.mxu1 %v3744_v58 }
 0x2c8   :  { %2793 = vmatpush1.bf16.msra.mxu0 %v3741_v54  ;;  %2875 = vmatpush1.bf16.msra.mxu1 %v3743_v57 }
 0x2c9   :  { %2803 = vmatprep.subr.bf16.mxu0 %v3750_v62  ;;  %2885 = vmatprep.subr.bf16.mxu1 %v3752_v2 }
 0x35e   :  { %v928_v10 = vpop.f32.mrb[4].mxu0  ;;  %v969_v11 = vpop.f32.mrb[4].mxu1 }
 0x35f   :  { %v4525_v12 = vadd.f32 %v928_v10, %v557_v6  ;;  %v4527_v13 = vadd.f32 %v969_v11, %v565_v7  ;;  %v930_v14 = vpop.f32.mrb[5].mxu0  ;;  %v971_v15 = vpop.f32.mrb[5].mxu1 }
 0x360   :  { %v4529_v16 = vadd.f32 %v930_v14, %v561_v8  ;;  %v4531_v17 = vadd.f32 %v971_v15, %v569_v9  ;;  %v932_v18 = vpop.f32.mrb[6].mxu0  ;;  %v973_v19 = vpop.f32.mrb[6].mxu1 }
 0x361   :  { %v976_v21 = vrot.slane %v4525_v12, 4  ;;  %v1004_v22 = vmul.f32 %v4525_v12, %v4525_v12  ;;  %v988_v23 = vrot.slane %v4527_v13, 4  ;;  %v1006_v24 = vmul.f32 %v4527_v13, %v4527_v13  ;;  %v933_v25 = vpop.f32.mrb[7].mxu0  ;;  %v974_v26 = vpop.f32.mrb[7].mxu1 }
 0x362   :  { %v982_v27 = vrot.slane %v4529_v16, 4  ;;  %v1005_v28 = vmul.f32 %v4529_v16, %v4529_v16  ;;  %v994_v29 = vrot.slane %v4531_v17, 4  ;;  %v1007_v30 = vmul.f32 %v4531_v17, %v4531_v17 }
 0x363   :  { %v977_v31 = vadd.f32 %v976_v21, %v4525_v12  ;;  %v1008_v34 = vrot.slane %v1004_v22, 4  ;;  %v989_v36 = vadd.f32 %v988_v23, %v4527_v13  ;;  %v1020_v37 = vrot.slane %v1006_v24, 4 }
 0x364   :  { %v983_v38 = vadd.f32 %v982_v27, %v4529_v16  ;;  %v1014_v40 = vrot.slane %v1005_v28, 4  ;;  %v995_v42 = vadd.f32 %v994_v29, %v4531_v17  ;;  %v1026_v43 = vrot.slane %v1007_v30, 4 }
 0x365   :  { %v978_v44 = vrot.slane %v977_v31, 2  ;;  %v1009_v45 = vadd.f32 %v1008_v34, %v1004_v22  ;;  %v990_v46 = vrot.slane %v989_v36, 2  ;;  %v1021_v47 = vadd.f32 %v1020_v37, %v1006_v24 }
 0x366   :  { %v984_v48 = vrot.slane %v983_v38, 2  ;;  %v1015_v49 = vadd.f32 %v1014_v40, %v1005_v28  ;;  %v996_v41 = vrot.slane %v995_v42, 2  ;;  %v1027_v39 = vadd.f32 %v1026_v43, %v1007_v30 }
 0x367   :  { %v979_v50 = vadd.f32 %v978_v44, %v977_v31  ;;  %v1010_v51 = vrot.slane %v1009_v45, 2  ;;  %v991_v52 = vadd.f32 %v990_v46, %v989_v36  ;;  %v1022_v53 = vrot.slane %v1021_v47, 2 }
 0x368   :  { %v985_v54 = vadd.f32 %v984_v48, %v983_v38  ;;  %v1016_v55 = vrot.slane %v1015_v49, 2  ;;  %v997_v56 = vadd.f32 %v996_v41, %v995_v42  ;;  %v1028_v57 = vrot.slane %v1027_v39, 2 }
 0x369   :  { %v980_v58 = vrot.slane %v979_v50, 1  ;;  %v1011_v62 = vadd.f32 %v1010_v51, %v1009_v45  ;;  %v992_v2 = vrot.slane %v991_v52, 1  ;;  %v1023_v4 = vadd.f32 %v1022_v53, %v1021_v47 }
 0x36a   :  { %v986_v6 = vrot.slane %v985_v54, 1  ;;  %v1017_v7 = vadd.f32 %v1016_v55, %v1015_v49  ;;  %v998_v8 = vrot.slane %v997_v56, 1  ;;  %v1029_v9 = vadd.f32 %v1028_v57, %v1027_v39 }
 0x36b   :  { %v981_v10 = vadd.f32 %v980_v58, %v979_v50  ;;  %v1012_v11 = vrot.slane %v1011_v62, 1  ;;  %v993_v14 = vadd.f32 %v992_v2, %v991_v52  ;;  %v1024_v15 = vrot.slane %v1023_v4, 1 }
 0x36c   :  { %v987_v18 = vadd.f32 %v986_v6, %v985_v54  ;;  %v1018_v19 = vrot.slane %v1017_v7, 1  ;;  %v999_v21 = vadd.f32 %v998_v8, %v997_v56  ;;  %v1030_v22 = vrot.slane %v1029_v9, 1 }
 0x36d   :  { %v1000_v23 = vmul.f32 0.125, %v981_v10  ;;  %v1013_v24 = vadd.f32 %v1012_v11, %v1011_v62  ;;  %v1002_v25 = vmul.f32 0.125, %v993_v14  ;;  %v1025_v26 = vadd.f32 %v1024_v15, %v1023_v4  ;;  %v1044_v62 = vld [vmem:[%s4789_s9] sm:$0xf] }
 0x36e   :  { %v1001_v27 = vmul.f32 0.125, %v987_v18  ;;  %v1019_v28 = vadd.f32 %v1018_v19, %v1017_v7  ;;  %v1003_v29 = vmul.f32 0.125, %v999_v21  ;;  %v1031_v30 = vadd.f32 %v1030_v22, %v1029_v9 }
 0x36f   :  { %v1032_v31 = vmul.f32 0.125, %v1013_v24  ;;  %v1036_v34 = vmul.f32 %v1000_v23, %v1000_v23  ;;  %v1034_v36 = vmul.f32 0.125, %v1025_v26  ;;  %v1038_v37 = vmul.f32 %v1002_v25, %v1002_v25 }
 0x370   :  { %v1033_v38 = vmul.f32 0.125, %v1019_v28  ;;  %v1037_v40 = vmul.f32 %v1001_v27, %v1001_v27  ;;  %v1035_v42 = vmul.f32 0.125, %v1031_v30  ;;  %v1039_v43 = vmul.f32 %v1003_v29, %v1003_v29 }
 0x371   :  { %v1040_v44 = vsub.f32 %v1032_v31, %v1036_v34  ;;  %v1042_v45 = vsub.f32 %v1034_v36, %v1038_v37 }
 0x372   :  { %v1041_v46 = vsub.f32 %v1033_v38, %v1037_v40  ;;  %v1043_v47 = vsub.f32 %v1035_v42, %v1039_v43  ;;  %v1320_v43 = vld [vmem:[#allocation13 + $0x440] sm:$0xff] }
 0x373   :  { %v1045_v48 = vadd.f32 0.8, %v1040_v44  ;;  %v1047_v49 = vadd.f32 0.8, %v1042_v45 }
 0x374   :  { %v1046_v41 = vadd.f32 0.8, %v1041_v46  ;;  %v1048_v39 = vadd.f32 0.8, %v1043_v47  ;;  %v1324_v46 = vld [vmem:[#allocation13 + $0x460] sm:$0xff]  ;;  %v1321_v47 = vld [vmem:[#allocation13 + $0x448] sm:$0xff] }
 0x375   :  { %4066 = vrsqrt.f32 %v1045_v48  ;;  %v1325_v48 = vld [vmem:[#allocation13 + $0x468] sm:$0xff] }
 0x376   :  { %4068 = vrsqrt.f32 %v1047_v49 }
 0x377   :  { %4070 = vrsqrt.f32 %v1046_v41 }
 0x378   :  { %4072 = vrsqrt.f32 %v1048_v39 }
 0x37f   :  { %v4067_v50 = vpop.eup %4066 }
 0x380   :  { %v4069_v51 = vpop.eup %4068 }
 0x381   :  { %v4071_v52 = vpop.eup %4070 }
 0x382   :  { %v4073_v53 = vpop.eup %4072  ;;  %v1057_v54 = vcombine.low %v4067_v50, %v4071_v52  ;;  %v1328_v50 = vld [vmem:[#allocation13 + $0x480] sm:$0xff]  ;;  %v3760_v52 = vcombine.high %v1321_v47, %v1325_v48 }
 0x383   :  { %v1058_v55 = vcombine.low %v4069_v51, %v4073_v53  ;;  %v3758_v51 = vcombine.high %v1320_v43, %v1324_v46  ;;  %v1332_v53 = vld [vmem:[#allocation13 + $0x4a0] sm:$0xff] }
 0x384   :  { %v1065_v56 = vrot.slane %v1057_v54, %v4486_v20  ;;  %v1329_v54 = vld [vmem:[#allocation13 + $0x488] sm:$0xff]  ;;  %v3765_v59 = vcombine.low %v1328_v50, %v1332_v53 }
 0x385   :  { %v1072_v57 = vrot.slane %v1058_v55, %v4486_v20  ;;  %v1333_v55 = vld [vmem:[#allocation13 + $0x4a8] sm:$0xff] }
 0x386   :  { %v3767_v60 = vcombine.low %v1329_v54, %v1333_v55 }
 0x387   :  { %v1073_v58 = vcombine.low %v1065_v56, %v1072_v57  ;;  %v3757_v57 = vcombine.low %v1320_v43, %v1324_v46  ;;  %v1376_v46 = vld [vmem:[#allocation13 + $0x600] sm:$0xff] }
 0x389   :  { %v1080_v2 = vrot.slane %v1073_v58, %v4486_v20  ;;  %v3759_v58 = vcombine.low %v1321_v47, %v1325_v48  ;;  %v1380_v47 = vld [vmem:[#allocation13 + $0x620] sm:$0xff]  ;;  %v1377_v48 = vld [vmem:[#allocation13 + $0x608] sm:$0xff] }
 0x38b   :  { %v1082_v4 = vmul.f32 %v1080_v2, %v1044_v62  ;;  %v3766_v62 = vcombine.high %v1328_v50, %v1332_v53  ;;  %v3768_v2 = vcombine.high %v1329_v54, %v1333_v55  ;;  %v1384_v54 = vld [vmem:[#allocation13 + $0x640] sm:$0xff] }
 0x38c   :  { %v1388_v55 = vld [vmem:[#allocation13 + $0x660] sm:$0xff] }
 0x38d   :  { %v1088_v6 = vrot.slane %v1082_v4, %v4478_v33  ;;  %v1092_v7 = vrot.slane %v1082_v4, %v4481_v35  ;;  %v1096_v8 = vrot.slane %v1082_v4, %v4513_v3  ;;  %v1100_v9 = vrot.slane %v1082_v4, %v4519_v5  ;;  %v1336_v4 = vld [vmem:[#allocation13 + $0x4c0] sm:$0xff] }
 0x38f   :  { %v1105_v10 = vmul.f32 %v1088_v6, %v1000_v23  ;;  %v1106_v11 = vmul.f32 %v1092_v7, %v1001_v27  ;;  %v1107_v14 = vmul.f32 %v1096_v8, %v1002_v25  ;;  %v1108_v15 = vmul.f32 %v1100_v9, %v1003_v29  ;;  %v1083_v23 = vld [vmem:[%s4790_s10] sm:$0xf] }
 0x390   :  { %v1142_v18 = vmul.f32 %v1100_v9, %v4531_v17  ;;  %v1140_v19 = vmul.f32 %v1092_v7, %v4529_v16  ;;  %v1139_v21 = vmul.f32 %v1088_v6, %v4525_v12  ;;  %v1141_v22 = vmul.f32 %v1096_v8, %v4527_v13  ;;  %v1340_v6 = vld [vmem:[#allocation13 + $0x4e0] sm:$0xff]  ;;  %v1337_v7 = vld [vmem:[#allocation13 + $0x4c8] sm:$0xff] }
 0x391   :  { %v1113_v24 = vcombine.low %v1105_v10, %v1106_v11  ;;  %v1114_v26 = vcombine.low %v1107_v14, %v1108_v15  ;;  %v1341_v8 = vld [vmem:[#allocation13 + $0x4e8] sm:$0xff]  ;;  %v3774_v61 = vcombine.high %v1336_v4, %v1340_v6  ;;  %v3773_v11 = vcombine.low %v1336_v4, %v1340_v6 }
 0x392   :  { %v3776_v63 = vcombine.high %v1337_v7, %v1341_v8  ;;  %v1345_v9 = vld [vmem:[#allocation13 + $0x508] sm:$0xff]  ;;  %v3775_v14 = vcombine.low %v1337_v7, %v1341_v8  ;;  %v3822_v4 = vcombine.high %v1384_v54, %v1388_v55  ;;  %v1392_v7 = vld [vmem:[#allocation13 + $0x680] sm:$0xff] }
 0x393   :  { %v1121_v28 = vrot.slane %v1113_v24, %v4486_v20  ;;  %v1128_v30 = vrot.slane %v1114_v26, %v4486_v20  ;;  %v1349_v10 = vld [vmem:[#allocation13 + $0x528] sm:$0xff]  ;;  %v1396_v8 = vld [vmem:[#allocation13 + $0x6a0] sm:$0xff] }
 0x394   :  { %v1357_v24 = vld [vmem:[#allocation13 + $0x568] sm:$0xff] }
 0x395   :  { %v1129_v31 = vcombine.low %v1121_v28, %v1128_v30  ;;  %v3783_v28 = vcombine.low %v1345_v9, %v1349_v10 }
 0x397   :  { %v1136_v25 = vrot.slane %v1129_v31, %v4486_v20 }
 0x399   :  { %v1138_v17 = vsub.f32 %v1083_v23, %v1136_v25  ;;  %v1360_v23 = vld [vmem:[#allocation13 + $0x580] sm:$0xff] }
 0x39a   :  { %v1364_v25 = vld [vmem:[#allocation13 + $0x5a0] sm:$0xff] }
 0x39b   :  { %v1159_v16 = vrot.slane %v1138_v17, %v4519_v5  ;;  %v1151_v12 = vrot.slane %v1138_v17, %v4481_v35  ;;  %v1147_v13 = vrot.slane %v1138_v17, %v4478_v33  ;;  %v1155_v27 = vrot.slane %v1138_v17, %v4513_v3  ;;  %v1361_v17 = vld [vmem:[#allocation13 + $0x588] sm:$0xff] }
 0x39d   :  { %v1167_v29 = vadd.f32 %v1159_v16, %v1142_v18  ;;  %v1165_v34 = vadd.f32 %v1151_v12, %v1140_v19  ;;  %v1164_v36 = vadd.f32 %v1147_v13, %v1139_v21  ;;  %v4573_v37 = vadd.f32 %v1155_v27, %v1141_v22  ;;  %v1352_v19 = vld [vmem:[#allocation13 + $0x540] sm:$0xff]  ;;  %v1353_v22 = vld [vmem:[#allocation13 + $0x548] sm:$0xff] }
 0x39e   :  { %v3784_v18 = vcombine.high %v1345_v9, %v1349_v10  ;;  %v1356_v21 = vld [vmem:[#allocation13 + $0x560] sm:$0xff]  ;;  %v3792_v31 = vcombine.high %v1353_v22, %v1357_v24  ;;  %v1365_v16 = vld [vmem:[#allocation13 + $0x5a8] sm:$0xff]  ;;  %v3791_v13 = vcombine.low %v1353_v22, %v1357_v24  ;;  %v3798_v27 = vcombine.high %v1360_v23, %v1364_v25 }
 0x39f   :  { %vm1169_vm5 = vcmp.ge.f32.partialorder %v1165_v34, 0.0  ;;  %v1173_v38 = vmul.f32 0.2, %v1165_v34  ;;  %vm1168_vm6 = vcmp.ge.f32.partialorder %v1164_v36, 0.0  ;;  %v1172_v40 = vmul.f32 0.2, %v1164_v36 }
 0x3a0   :  { %vm1171_vm7 = vcmp.ge.f32.partialorder %v1167_v29, 0.0  ;;  %v1175_v42 = vmul.f32 0.2, %v1167_v29  ;;  %v3790_v30 = vcombine.high %v1352_v19, %v1356_v21  ;;  %v3789_v12 = vcombine.low %v1352_v19, %v1356_v21  ;;  %v1400_v9 = vld [vmem:[#allocation13 + $0x6c0] sm:$0xff] }
 0x3a1   :  { %v1177_v44 = vsel %vm1169_vm5, %v1165_v34, %v1173_v38  ;;  %v1176_v45 = vsel %vm1168_vm6, %v1164_v36, %v1172_v40  ;;  %v1368_v34 = vld [vmem:[#allocation13 + $0x5c0] sm:$0xff]  ;;  %v1369_v38 = vld [vmem:[#allocation13 + $0x5c8] sm:$0xff]  ;;  %v3799_v43 = vcombine.low %v1361_v17, %v1365_v16  ;;  %vm1170_vm8 = vcmp.ge.f32.partialorder %v4573_v37, 0.0 }
 0x3a2   :  { %v4575_v49 = vpack.c.bf16 %v1177_v44, %v1177_v44  ;;  %v4577_v41 = vpack.c.bf16 %v1176_v45, %v1176_v45  ;;  %v1179_v39 = vsel %vm1171_vm7, %v1167_v29, %v1175_v42  ;;  %v3800_v29 = vcombine.high %v1361_v17, %v1365_v16  ;;  %v1372_v36 = vld [vmem:[#allocation13 + $0x5e0] sm:$0xff]  ;;  %v1373_v40 = vld [vmem:[#allocation13 + $0x5e8] sm:$0xff] }
 0x3a3   :  { %v4583_v56 = vpack.c.bf16 %v1179_v39, %v1179_v39  ;;  %v3797_v42 = vcombine.low %v1360_v23, %v1364_v25  ;;  %v3806_v44 = vcombine.high %v1368_v34, %v1372_v36  ;;  %v3808_v45 = vcombine.high %v1369_v38, %v1373_v40  ;;  %v1381_v39 = vld [vmem:[#allocation13 + $0x628] sm:$0xff]  ;;  %v1404_v10 = vld [vmem:[#allocation13 + $0x6e0] sm:$0xff] }
 0x3a4   :  { %2794 = vmatprep.mubr.bf16.mxu0 %v4575_v49  ;;  %2876 = vmatprep.mubr.bf16.mxu1 %v4575_v49  ;;  %v3805_v50 = vcombine.low %v1368_v34, %v1372_v36  ;;  %v3816_v53 = vcombine.high %v1377_v48, %v1381_v39  ;;  %v3838_v19 = vcombine.high %v1400_v9, %v1404_v10  ;;  %v1408_v22 = vld [vmem:[#allocation13 + $0x700] sm:$0xff] }
 0x3a5   :  { %2795 = vmatmul.mubr.bf16.vlgmr.msra.gmra.mrb[8].mxu0 %v4577_v41  ;;  %2877 = vmatmul.mubr.bf16.vlgmr.msra.gmra.mrb[8].mxu1 %v4577_v41  ;;  %v1412_v24 = vld [vmem:[#allocation13 + $0x720] sm:$0xff] }
 0x3a6   :  { %2804 = vmatpush1.bf16.msra.mxu0 %v3749_v0  ;;  %2886 = vmatpush1.bf16.msra.mxu1 %v3751_v1  ;;  %v1344_v0 = vld [vmem:[#allocation13 + $0x500] sm:$0xff]  ;;  %v3846_v23 = vcombine.high %v1408_v22, %v1412_v24 }
 0x3a7   :  { %2835 = vmatprep.mubr.bf16.mxu0 %v4583_v56  ;;  %2917 = vmatprep.mubr.bf16.mxu1 %v4583_v56  ;;  %v1348_v1 = vld [vmem:[#allocation13 + $0x520] sm:$0xff] }
 0x3a8   :  { %2805 = vmatprep.subr.bf16.mxu0 %v3758_v51  ;;  %2887 = vmatprep.subr.bf16.mxu1 %v3760_v52  ;;  %v3782_v15 = vcombine.high %v1344_v0, %v1348_v1  ;;  %v3781_v26 = vcombine.low %v1344_v0, %v1348_v1  ;;  %v3807_v51 = vcombine.low %v1369_v38, %v1373_v40  ;;  %v1416_v17 = vld [vmem:[#allocation13 + $0x740] sm:$0xff] }
 0x3a9   :  { %v3814_v52 = vcombine.high %v1376_v46, %v1380_v47  ;;  %v3830_v0 = vcombine.high %v1392_v7, %v1396_v8  ;;  %v1420_v16 = vld [vmem:[#allocation13 + $0x760] sm:$0xff] }
 0x3aa   :  { %2806 = vmatpush1.bf16.msra.mxu0 %v3757_v57  ;;  %2888 = vmatpush1.bf16.msra.mxu1 %v3759_v58  ;;  %v1385_v57 = vld [vmem:[#allocation13 + $0x648] sm:$0xff]  ;;  %v3854_v34 = vcombine.high %v1416_v17, %v1420_v16  ;;  %v1424_v38 = vld [vmem:[#allocation13 + $0x780] sm:$0xff] }
 0x3ab   :  { %2807 = vmatprep.subr.bf16.mxu0 %v3766_v62  ;;  %2889 = vmatprep.subr.bf16.mxu1 %v3768_v2  ;;  %v1389_v58 = vld [vmem:[#allocation13 + $0x668] sm:$0xff]  ;;  %v3813_v62 = vcombine.low %v1376_v46, %v1380_v47  ;;  %v3815_v2 = vcombine.low %v1377_v48, %v1381_v39  ;;  %v1428_v40 = vld [vmem:[#allocation13 + $0x7a0] sm:$0xff] }
 0x3ac   :  { %v3824_v6 = vcombine.high %v1385_v57, %v1389_v58  ;;  %v3862_v46 = vcombine.high %v1424_v38, %v1428_v40  ;;  %v1432_v48 = vld [vmem:[#allocation13 + $0x7c0] sm:$0xff] }
 0x3ad   :  { %v1436_v39 = vld [vmem:[#allocation13 + $0x7e0] sm:$0xff] }
 0x3ae   :  { %2808 = vmatpush1.bf16.msra.mxu0 %v3765_v59  ;;  %2890 = vmatpush1.bf16.msra.mxu1 %v3767_v60  ;;  %v1393_v59 = vld [vmem:[#allocation13 + $0x688] sm:$0xff] }
 0x3af   :  { %2809 = vmatprep.subr.bf16.mxu0 %v3774_v61  ;;  %2891 = vmatprep.subr.bf16.mxu1 %v3776_v63  ;;  %v1397_v60 = vld [vmem:[#allocation13 + $0x6a8] sm:$0xff]  ;;  %v3821_v61 = vcombine.low %v1384_v54, %v1388_v55  ;;  %v3823_v63 = vcombine.low %v1385_v57, %v1389_v58  ;;  %v3870_v54 = vcombine.high %v1432_v48, %v1436_v39  ;;  %v1186_v57 = vld [vmem:[#allocation13 + $0x10] sm:$0xff]  ;;  %v1174_v58 = vmul.f32 0.2, %v4573_v37 }
 0x3b0   :  { %v3832_v1 = vcombine.high %v1393_v59, %v1397_v60 }
 0x3b2   :  { %2810 = vmatpush1.bf16.msra.mxu0 %v3773_v11  ;;  %2892 = vmatpush1.bf16.msra.mxu1 %v3775_v14  ;;  %v1401_v11 = vld [vmem:[#allocation13 + $0x6c8] sm:$0xff] }
 0x3b3   :  { %2811 = vmatprep.subr.bf16.mxu0 %v3782_v15  ;;  %2893 = vmatprep.subr.bf16.mxu1 %v3784_v18  ;;  %v1405_v14 = vld [vmem:[#allocation13 + $0x6e8] sm:$0xff]  ;;  %v3829_v15 = vcombine.low %v1392_v7, %v1396_v8  ;;  %v3831_v18 = vcombine.low %v1393_v59, %v1397_v60  ;;  %v1178_v60 = vsel %vm1170_vm8, %v4573_v37, %v1174_v58  ;;  %v1203_v37 = vld [vmem:[#allocation13 + $0x98] sm:$0xff] }
 0x3b4   :  { %v3840_v21 = vcombine.high %v1401_v11, %v1405_v14 }
 0x3b6   :  { %2812 = vmatpush1.bf16.msra.mxu0 %v3781_v26  ;;  %2894 = vmatpush1.bf16.msra.mxu1 %v3783_v28  ;;  %v1409_v26 = vld [vmem:[#allocation13 + $0x708] sm:$0xff] }
 0x3b7   :  { %2813 = vmatprep.subr.bf16.mxu0 %v3790_v30  ;;  %2895 = vmatprep.subr.bf16.mxu1 %v3792_v31  ;;  %v1413_v28 = vld [vmem:[#allocation13 + $0x728] sm:$0xff]  ;;  %v3837_v30 = vcombine.low %v1400_v9, %v1404_v10  ;;  %v3839_v31 = vcombine.low %v1401_v11, %v1405_v14  ;;  %v4596_v10 = vpack.c.bf16 %v1178_v60, %v1178_v60 }
 0x3b8   :  { %v3848_v25 = vcombine.high %v1409_v26, %v1413_v28 }
 0x3ba   :  { %2814 = vmatpush1.bf16.msra.mxu0 %v3789_v12  ;;  %2896 = vmatpush1.bf16.msra.mxu1 %v3791_v13  ;;  %v1417_v12 = vld [vmem:[#allocation13 + $0x748] sm:$0xff] }
 0x3bb   :  { %2815 = vmatprep.subr.bf16.mxu0 %v3798_v27  ;;  %2897 = vmatprep.subr.bf16.mxu1 %v3800_v29  ;;  %v1421_v13 = vld [vmem:[#allocation13 + $0x768] sm:$0xff]  ;;  %v3845_v27 = vcombine.low %v1408_v22, %v1412_v24  ;;  %v3847_v29 = vcombine.low %v1409_v26, %v1413_v28 }
 0x3bc   :  { %v3856_v36 = vcombine.high %v1417_v12, %v1421_v13 }
 0x3be   :  { %2816 = vmatpush1.bf16.msra.mxu0 %v3797_v42  ;;  %2898 = vmatpush1.bf16.msra.mxu1 %v3799_v43  ;;  %v1425_v42 = vld [vmem:[#allocation13 + $0x788] sm:$0xff] }
 0x3bf   :  { %2817 = vmatprep.subr.bf16.mxu0 %v3806_v44  ;;  %2899 = vmatprep.subr.bf16.mxu1 %v3808_v45  ;;  %v1429_v43 = vld [vmem:[#allocation13 + $0x7a8] sm:$0xff]  ;;  %v3853_v44 = vcombine.low %v1416_v17, %v1420_v16  ;;  %v3855_v45 = vcombine.low %v1417_v12, %v1421_v13 }
 0x3c0   :  { %v3864_v47 = vcombine.high %v1425_v42, %v1429_v43 }
 0x3c2   :  { %2818 = vmatpush1.bf16.msra.mxu0 %v3805_v50  ;;  %2900 = vmatpush1.bf16.msra.mxu1 %v3807_v51  ;;  %v1433_v50 = vld [vmem:[#allocation13 + $0x7c8] sm:$0xff] }
 0x3c3   :  { %2819 = vmatprep.subr.bf16.mxu0 %v3814_v52  ;;  %2901 = vmatprep.subr.bf16.mxu1 %v3816_v53  ;;  %v1437_v51 = vld [vmem:[#allocation13 + $0x7e8] sm:$0xff]  ;;  %v3861_v52 = vcombine.low %v1424_v38, %v1428_v40  ;;  %v3863_v53 = vcombine.low %v1425_v42, %v1429_v43  ;;  %v1226_v43 = vld [vmem:[#allocation13 + $0x150] sm:$0xff] }
 0x3c4   :  { %v3872_v55 = vcombine.high %v1433_v50, %v1437_v51  ;;  %v3871_v7 = vcombine.low %v1433_v50, %v1437_v51  ;;  %v1234_v51 = vld [vmem:[#allocation13 + $0x190] sm:$0xff] }
 0x3c6   :  { %2820 = vmatpush1.bf16.msra.mxu0 %v3813_v62  ;;  %2902 = vmatpush1.bf16.msra.mxu1 %v3815_v2  ;;  %v1190_v62 = vld [vmem:[#allocation13 + $0x30] sm:$0xff]  ;;  %v1187_v2 = vld [vmem:[#allocation13 + $0x18] sm:$0xff] }
 0x3c7   :  { %2821 = vmatprep.subr.bf16.mxu0 %v3822_v4  ;;  %2903 = vmatprep.subr.bf16.mxu1 %v3824_v6  ;;  %v1191_v4 = vld [vmem:[#allocation13 + $0x38] sm:$0xff]  ;;  %v3869_v6 = vcombine.low %v1432_v48, %v1436_v39  ;;  %v3626_v8 = vcombine.high %v1186_v57, %v1190_v62  ;;  %v3625_v9 = vcombine.low %v1186_v57, %v1190_v62 }
 0x3c8   :  { %v3628_v59 = vcombine.high %v1187_v2, %v1191_v4  ;;  %v3627_v11 = vcombine.low %v1187_v2, %v1191_v4  ;;  %v1242_v2 = vld [vmem:[#allocation13 + $0x1d0] sm:$0xff] }
 0x3c9   :  { %v1246_v4 = vld [vmem:[#allocation13 + $0x1f0] sm:$0xff] }
 0x3ca   :  { %2822 = vmatpush1.bf16.msra.mxu0 %v3821_v61  ;;  %2904 = vmatpush1.bf16.msra.mxu1 %v3823_v63  ;;  %v1194_v61 = vld [vmem:[#allocation13 + $0x50] sm:$0xff]  ;;  %v3682_v60 = vcombine.high %v1242_v2, %v1246_v4 }
 0x3cb   :  { %2823 = vmatprep.subr.bf16.mxu0 %v3830_v0  ;;  %2905 = vmatprep.subr.bf16.mxu1 %v3832_v1  ;;  %v1198_v63 = vld [vmem:[#allocation13 + $0x70] sm:$0xff]  ;;  %v1195_v0 = vld [vmem:[#allocation13 + $0x58] sm:$0xff] }
 0x3cc   :  { %v1199_v1 = vld [vmem:[#allocation13 + $0x78] sm:$0xff]  ;;  %v3634_v14 = vcombine.high %v1194_v61, %v1198_v63  ;;  %v3633_v22 = vcombine.low %v1194_v61, %v1198_v63  ;;  %v1250_v63 = vld [vmem:[#allocation13 + $0x210] sm:$0xff] }
 0x3cd   :  { %v3635_v24 = vcombine.low %v1195_v0, %v1199_v1 }
 0x3ce   :  { %2824 = vmatpush1.bf16.msra.mxu0 %v3829_v15  ;;  %2906 = vmatpush1.bf16.msra.mxu1 %v3831_v18  ;;  %v3636_v15 = vcombine.high %v1195_v0, %v1199_v1  ;;  %v1202_v18 = vld [vmem:[#allocation13 + $0x90] sm:$0xff]  ;;  %v1251_v1 = vld [vmem:[#allocation13 + $0x218] sm:$0xff] }
 0x3cf   :  { %2825 = vmatprep.subr.bf16.mxu0 %v3838_v19  ;;  %2907 = vmatprep.subr.bf16.mxu1 %v3840_v21  ;;  %v1206_v19 = vld [vmem:[#allocation13 + $0xb0] sm:$0xff]  ;;  %v1207_v21 = vld [vmem:[#allocation13 + $0xb8] sm:$0xff] }
 0x3d0   :  { %v3642_v26 = vcombine.high %v1202_v18, %v1206_v19  ;;  %v3644_v28 = vcombine.high %v1203_v37, %v1207_v21  ;;  %v3641_v17 = vcombine.low %v1202_v18, %v1206_v19  ;;  %v3643_v16 = vcombine.low %v1203_v37, %v1207_v21  ;;  %v1254_v0 = vld [vmem:[#allocation13 + $0x230] sm:$0xff]  ;;  %v1259_v21 = vld [vmem:[#allocation13 + $0x258] sm:$0xff] }
 0x3d1   :  { %v1258_v19 = vld [vmem:[#allocation13 + $0x250] sm:$0xff] }
 0x3d2   :  { %2826 = vmatpush1.bf16.msra.mxu0 %v3837_v30  ;;  %2908 = vmatpush1.bf16.msra.mxu1 %v3839_v31  ;;  %v1210_v30 = vld [vmem:[#allocation13 + $0xd0] sm:$0xff] }
 0x3d3   :  { %2827 = vmatprep.subr.bf16.mxu0 %v3846_v23  ;;  %2909 = vmatprep.subr.bf16.mxu1 %v3848_v25  ;;  %v1214_v31 = vld [vmem:[#allocation13 + $0xf0] sm:$0xff]  ;;  %v1211_v23 = vld [vmem:[#allocation13 + $0xd8] sm:$0xff] }
 0x3d4   :  { %v1215_v25 = vld [vmem:[#allocation13 + $0xf8] sm:$0xff]  ;;  %v3650_v12 = vcombine.high %v1210_v30, %v1214_v31  ;;  %v1262_v37 = vld [vmem:[#allocation13 + $0x270] sm:$0xff] }
 0x3d5   :  { %v3652_v13 = vcombine.high %v1211_v23, %v1215_v25  ;;  %v3651_v38 = vcombine.low %v1211_v23, %v1215_v25  ;;  %v1270_v23 = vld [vmem:[#allocation13 + $0x2b0] sm:$0xff]  ;;  %v1267_v25 = vld [vmem:[#allocation13 + $0x298] sm:$0xff] }
 0x3d6   :  { %2828 = vmatpush1.bf16.msra.mxu0 %v3845_v27  ;;  %2910 = vmatpush1.bf16.msra.mxu1 %v3847_v29  ;;  %v1218_v27 = vld [vmem:[#allocation13 + $0x110] sm:$0xff] }
 0x3d7   :  { %2829 = vmatprep.subr.bf16.mxu0 %v3854_v34  ;;  %2911 = vmatprep.subr.bf16.mxu1 %v3856_v36  ;;  %v1222_v29 = vld [vmem:[#allocation13 + $0x130] sm:$0xff]  ;;  %v1223_v34 = vld [vmem:[#allocation13 + $0x138] sm:$0xff]  ;;  %v3649_v36 = vcombine.low %v1210_v30, %v1214_v31 }
 0x3d8   :  { %v3658_v40 = vcombine.high %v1218_v27, %v1222_v29  ;;  %v1266_v31 = vld [vmem:[#allocation13 + $0x290] sm:$0xff] }
 0x3da   :  { %2830 = vmatpush1.bf16.msra.mxu0 %v3853_v44  ;;  %2912 = vmatpush1.bf16.msra.mxu1 %v3855_v45  ;;  %v1230_v44 = vld [vmem:[#allocation13 + $0x170] sm:$0xff]  ;;  %v1227_v45 = vld [vmem:[#allocation13 + $0x158] sm:$0xff] }
 0x3db   :  { %2831 = vmatprep.subr.bf16.mxu0 %v3862_v46  ;;  %2913 = vmatprep.subr.bf16.mxu1 %v3864_v47  ;;  %v1231_v46 = vld [vmem:[#allocation13 + $0x178] sm:$0xff]  ;;  %v3657_v47 = vcombine.low %v1218_v27, %v1222_v29  ;;  %v3666_v39 = vcombine.high %v1226_v43, %v1230_v44  ;;  %v1274_v29 = vld [vmem:[#allocation13 + $0x2d0] sm:$0xff] }
 0x3dc   :  { %v3668_v50 = vcombine.high %v1227_v45, %v1231_v46  ;;  %v3667_v57 = vcombine.low %v1227_v45, %v1231_v46  ;;  %v1286_v45 = vld [vmem:[#allocation13 + $0x330] sm:$0xff]  ;;  %v1283_v46 = vld [vmem:[#allocation13 + $0x318] sm:$0xff] }
 0x3de   :  { %2832 = vmatpush1.bf16.msra.mxu0 %v3861_v52  ;;  %2914 = vmatpush1.bf16.msra.mxu1 %v3863_v53  ;;  %v1238_v52 = vld [vmem:[#allocation13 + $0x1b0] sm:$0xff]  ;;  %v1235_v53 = vld [vmem:[#allocation13 + $0x198] sm:$0xff] }
 0x3df   :  { %2833 = vmatprep.subr.bf16.mxu0 %v3870_v54  ;;  %2915 = vmatprep.subr.bf16.mxu1 %v3872_v55  ;;  %v1239_v54 = vld [vmem:[#allocation13 + $0x1b8] sm:$0xff]  ;;  %v3665_v55 = vcombine.low %v1226_v43, %v1230_v44  ;;  %v3674_v58 = vcombine.high %v1234_v51, %v1238_v52  ;;  %v1282_v44 = vld [vmem:[#allocation13 + $0x310] sm:$0xff] }
 0x3e0   :  { %v3676_v62 = vcombine.high %v1235_v53, %v1239_v54 }
 0x3e2   :  { %2834 = vmatpush1.bf16.msra.mxu0 %v3869_v6  ;;  %2916 = vmatpush1.bf16.msra.mxu1 %v3871_v7  ;;  %v1243_v6 = vld [vmem:[#allocation13 + $0x1d8] sm:$0xff] }
 0x3e3   :  { %2926 = vmatprep.subr.bf16.mxu0 %v3626_v8  ;;  %3008 = vmatprep.subr.bf16.mxu1 %v3628_v59  ;;  %v1247_v7 = vld [vmem:[#allocation13 + $0x1f8] sm:$0xff]  ;;  %v3673_v8 = vcombine.low %v1234_v51, %v1238_v52  ;;  %v3675_v59 = vcombine.low %v1235_v53, %v1239_v54  ;;  %v1290_v52 = vld [vmem:[#allocation13 + $0x350] sm:$0xff] }
 0x3e4   :  { %v3684_v61 = vcombine.high %v1243_v6, %v1247_v7  ;;  %v1294_v53 = vld [vmem:[#allocation13 + $0x370] sm:$0xff]  ;;  %v1291_v54 = vld [vmem:[#allocation13 + $0x358] sm:$0xff] }
 0x3e5   :  { %2836 = vmatmul.mubr.bf16.vlgmr.msra.gmra.mrb[8].mxu0 %v4596_v10  ;;  %2918 = vmatmul.mubr.bf16.vlgmr.msra.gmra.mrb[8].mxu1 %v4596_v10 }
 0x3e6   :  { %2927 = vmatpush1.bf16.msra.mxu0 %v3625_v9  ;;  %2958 = vmatprep.mubr.bf16.mxu0 %v4575_v49  ;;  %v1255_v9 = vld [vmem:[#allocation13 + $0x238] sm:$0xff] }
 0x3e7   :  { %3009 = vmatpush1.bf16.msra.mxu1 %v3627_v11  ;;  %3040 = vmatprep.mubr.bf16.mxu1 %v4575_v49  ;;  %v1219_v49 = vld [vmem:[#allocation13 + $0x118] sm:$0xff]  ;;  %v3681_v11 = vcombine.low %v1242_v2, %v1246_v4  ;;  %v3692_v18 = vcombine.high %v1251_v1, %v1255_v9  ;;  %v1298_v4 = vld [vmem:[#allocation13 + $0x390] sm:$0xff] }
 0x3e8   :  { %2928 = vmatprep.subr.bf16.mxu0 %v3634_v14  ;;  %3010 = vmatprep.subr.bf16.mxu1 %v3636_v15  ;;  %v3660_v42 = vcombine.high %v1219_v49, %v1223_v34  ;;  %v3659_v48 = vcombine.low %v1219_v49, %v1223_v34  ;;  %v3683_v14 = vcombine.low %v1243_v6, %v1247_v7  ;;  %v1278_v49 = vld [vmem:[#allocation13 + $0x2f0] sm:$0xff]  ;;  %v1275_v34 = vld [vmem:[#allocation13 + $0x2d8] sm:$0xff] }
 0x3e9   :  { %v3690_v15 = vcombine.high %v1250_v63, %v1254_v0  ;;  %v1302_v6 = vld [vmem:[#allocation13 + $0x3b0] sm:$0xff]  ;;  %v1299_v7 = vld [vmem:[#allocation13 + $0x398] sm:$0xff] }
 0x3ea   :  { %2929 = vmatpush1.bf16.msra.mxu0 %v3633_v22  ;;  %v1263_v22 = vld [vmem:[#allocation13 + $0x278] sm:$0xff] }
 0x3eb   :  { %3011 = vmatpush1.bf16.msra.mxu1 %v3635_v24  ;;  %2930 = vmatprep.subr.bf16.mxu0 %v3642_v26  ;;  %v3689_v24 = vcombine.low %v1250_v63, %v1254_v0  ;;  %v3691_v26 = vcombine.low %v1251_v1, %v1255_v9  ;;  %v3700_v30 = vcombine.high %v1259_v21, %v1263_v22  ;;  %v1306_v0 = vld [vmem:[#allocation13 + $0x3d0] sm:$0xff]  ;;  %v1307_v9 = vld [vmem:[#allocation13 + $0x3d8] sm:$0xff] }
 0x3ec   :  { %3012 = vmatprep.subr.bf16.mxu1 %v3644_v28  ;;  %v3698_v28 = vcombine.high %v1258_v19, %v1262_v37  ;;  %v1310_v1 = vld [vmem:[#allocation13 + $0x3f0] sm:$0xff] }
 0x3ee   :  { %2931 = vmatpush1.bf16.msra.mxu0 %v3641_v17  ;;  %v1271_v17 = vld [vmem:[#allocation13 + $0x2b8] sm:$0xff] }
 0x3ef   :  { %3013 = vmatpush1.bf16.msra.mxu1 %v3643_v16  ;;  %2932 = vmatprep.subr.bf16.mxu0 %v3650_v12  ;;  %v3697_v16 = vcombine.low %v1258_v19, %v1262_v37  ;;  %v3699_v12 = vcombine.low %v1259_v21, %v1263_v22  ;;  %v3708_v27 = vcombine.high %v1267_v25, %v1271_v17  ;;  %v1314_v37 = vld [vmem:[#allocation13 + $0x410] sm:$0xff]  ;;  %v1315_v22 = vld [vmem:[#allocation13 + $0x418] sm:$0xff] }
 0x3f0   :  { %3014 = vmatprep.subr.bf16.mxu1 %v3652_v13  ;;  %v3706_v13 = vcombine.high %v1266_v31, %v1270_v23  ;;  %v1318_v21 = vld [vmem:[#allocation13 + $0x430] sm:$0xff] }
 0x3f2   :  { %2933 = vmatpush1.bf16.msra.mxu0 %v3649_v36  ;;  %v1279_v36 = vld [vmem:[#allocation13 + $0x2f8] sm:$0xff] }
 0x3f3   :  { %3015 = vmatpush1.bf16.msra.mxu1 %v3651_v38  ;;  %2934 = vmatprep.subr.bf16.mxu0 %v3658_v40  ;;  %v3705_v38 = vcombine.low %v1266_v31, %v1270_v23  ;;  %v3707_v40 = vcombine.low %v1267_v25, %v1271_v17  ;;  %v3716_v43 = vcombine.high %v1275_v34, %v1279_v36  ;;  %v1322_v23 = vld [vmem:[#allocation13 + $0x450] sm:$0xff] }
 0x3f4   :  { %3016 = vmatprep.subr.bf16.mxu1 %v3660_v42  ;;  %v3714_v42 = vcombine.high %v1274_v29, %v1278_v49  ;;  %v1326_v25 = vld [vmem:[#allocation13 + $0x470] sm:$0xff]  ;;  %v3753_v17 = vcombine.low %v1314_v37, %v1318_v21 }
 0x3f6   :  { %2935 = vmatpush1.bf16.msra.mxu0 %v3657_v47  ;;  %v1287_v47 = vld [vmem:[#allocation13 + $0x338] sm:$0xff] }
 0x3f7   :  { %3017 = vmatpush1.bf16.msra.mxu1 %v3659_v48  ;;  %2936 = vmatprep.subr.bf16.mxu0 %v3666_v39  ;;  %v3713_v48 = vcombine.low %v1274_v29, %v1278_v49  ;;  %v3715_v39 = vcombine.low %v1275_v34, %v1279_v36  ;;  %v3724_v51 = vcombine.high %v1283_v46, %v1287_v47  ;;  %v1330_v29 = vld [vmem:[#allocation13 + $0x490] sm:$0xff]  ;;  %v1331_v36 = vld [vmem:[#allocation13 + $0x498] sm:$0xff] }
 0x3f8   :  { %3018 = vmatprep.subr.bf16.mxu1 %v3668_v50  ;;  %v3722_v50 = vcombine.high %v1282_v44, %v1286_v45  ;;  %v1334_v49 = vld [vmem:[#allocation13 + $0x4b0] sm:$0xff] }
 0x3fa   :  { %2937 = vmatpush1.bf16.msra.mxu0 %v3665_v55  ;;  %v1295_v55 = vld [vmem:[#allocation13 + $0x378] sm:$0xff] }
 0x3fb   :  { %3019 = vmatpush1.bf16.msra.mxu1 %v3667_v57  ;;  %2938 = vmatprep.subr.bf16.mxu0 %v3674_v58  ;;  %v3721_v57 = vcombine.low %v1282_v44, %v1286_v45  ;;  %v3723_v58 = vcombine.low %v1283_v46, %v1287_v47  ;;  %v3732_v2 = vcombine.high %v1291_v54, %v1295_v55  ;;  %v1338_v45 = vld [vmem:[#allocation13 + $0x4d0] sm:$0xff]  ;;  %v1339_v47 = vld [vmem:[#allocation13 + $0x4d8] sm:$0xff] }
 0x3fc   :  { %3020 = vmatprep.subr.bf16.mxu1 %v3676_v62  ;;  %v3730_v62 = vcombine.high %v1290_v52, %v1294_v53  ;;  %v1342_v46 = vld [vmem:[#allocation13 + $0x4f0] sm:$0xff] }
 0x3fe   :  { %2939 = vmatpush1.bf16.msra.mxu0 %v3673_v8  ;;  %v1303_v8 = vld [vmem:[#allocation13 + $0x3b8] sm:$0xff] }
 0x3ff   :  { %3021 = vmatpush1.bf16.msra.mxu1 %v3675_v59  ;;  %2940 = vmatprep.subr.bf16.mxu0 %v3682_v60  ;;  %v3729_v59 = vcombine.low %v1290_v52, %v1294_v53  ;;  %v3731_v60 = vcombine.low %v1291_v54, %v1295_v55  ;;  %v3740_v63 = vcombine.high %v1299_v7, %v1303_v8  ;;  %v1346_v52 = vld [vmem:[#allocation13 + $0x510] sm:$0xff]  ;;  %v1347_v54 = vld [vmem:[#allocation13 + $0x518] sm:$0xff] }
 0x400   :  { %3022 = vmatprep.subr.bf16.mxu1 %v3684_v61  ;;  %v3738_v61 = vcombine.high %v1298_v4, %v1302_v6  ;;  %v1350_v53 = vld [vmem:[#allocation13 + $0x530] sm:$0xff]  ;;  %v1351_v55 = vld [vmem:[#allocation13 + $0x538] sm:$0xff] }
 0x402   :  { %2941 = vmatpush1.bf16.msra.mxu0 %v3681_v11  ;;  %v1311_v11 = vld [vmem:[#allocation13 + $0x3f8] sm:$0xff] }
 0x403   :  { %3023 = vmatpush1.bf16.msra.mxu1 %v3683_v14  ;;  %2942 = vmatprep.subr.bf16.mxu0 %v3690_v15  ;;  %v3737_v14 = vcombine.low %v1298_v4, %v1302_v6  ;;  %v3739_v15 = vcombine.low %v1299_v7, %v1303_v8  ;;  %v3748_v19 = vcombine.high %v1307_v9, %v1311_v11  ;;  %v1358_v4 = vld [vmem:[#allocation13 + $0x570] sm:$0xff]  ;;  %v1355_v6 = vld [vmem:[#allocation13 + $0x558] sm:$0xff] }
 0x404   :  { %3024 = vmatprep.subr.bf16.mxu1 %v3692_v18  ;;  %v3746_v18 = vcombine.high %v1306_v0, %v1310_v1  ;;  %v1359_v7 = vld [vmem:[#allocation13 + $0x578] sm:$0xff]  ;;  %v3785_v8 = vcombine.low %v1346_v52, %v1350_v53 }
 0x406   :  { %2943 = vmatpush1.bf16.msra.mxu0 %v3689_v24  ;;  %v1319_v24 = vld [vmem:[#allocation13 + $0x438] sm:$0xff] }
 0x407   :  { %3025 = vmatpush1.bf16.msra.mxu1 %v3691_v26  ;;  %2944 = vmatprep.subr.bf16.mxu0 %v3698_v28  ;;  %v3745_v26 = vcombine.low %v1306_v0, %v1310_v1  ;;  %v3747_v28 = vcombine.low %v1307_v9, %v1311_v11  ;;  %v3756_v31 = vcombine.high %v1315_v22, %v1319_v24  ;;  %v1366_v0 = vld [vmem:[#allocation13 + $0x5b0] sm:$0xff]  ;;  %v1363_v1 = vld [vmem:[#allocation13 + $0x598] sm:$0xff] }
 0x408   :  { %3026 = vmatprep.subr.bf16.mxu1 %v3700_v30  ;;  %v3754_v30 = vcombine.high %v1314_v37, %v1318_v21  ;;  %v1367_v9 = vld [vmem:[#allocation13 + $0x5b8] sm:$0xff]  ;;  %v1374_v37 = vld [vmem:[#allocation13 + $0x5f0] sm:$0xff] }
 0x409   :  { %v1371_v21 = vld [vmem:[#allocation13 + $0x5d8] sm:$0xff] }
 0x40a   :  { %2945 = vmatpush1.bf16.msra.mxu0 %v3697_v16  ;;  %v1323_v16 = vld [vmem:[#allocation13 + $0x458] sm:$0xff] }
 0x40b   :  { %3027 = vmatpush1.bf16.msra.mxu1 %v3699_v12  ;;  %2946 = vmatprep.subr.bf16.mxu0 %v3706_v13  ;;  %v1327_v12 = vld [vmem:[#allocation13 + $0x478] sm:$0xff]  ;;  %v3755_v13 = vcombine.low %v1315_v22, %v1319_v24 }
 0x40c   :  { %3028 = vmatprep.subr.bf16.mxu1 %v3708_v27  ;;  %v3762_v27 = vcombine.high %v1322_v23, %v1326_v25  ;;  %v3764_v34 = vcombine.high %v1323_v16, %v1327_v12  ;;  %v1375_v22 = vld [vmem:[#allocation13 + $0x5f8] sm:$0xff] }
 0x40e   :  { %2947 = vmatpush1.bf16.msra.mxu0 %v3705_v38  ;;  %v1335_v38 = vld [vmem:[#allocation13 + $0x4b8] sm:$0xff] }
 0x40f   :  { %3029 = vmatpush1.bf16.msra.mxu1 %v3707_v40  ;;  %2948 = vmatprep.subr.bf16.mxu0 %v3714_v42  ;;  %v3761_v40 = vcombine.low %v1322_v23, %v1326_v25  ;;  %v3763_v42 = vcombine.low %v1323_v16, %v1327_v12  ;;  %v3772_v44 = vcombine.high %v1331_v36, %v1335_v38  ;;  %v1382_v23 = vld [vmem:[#allocation13 + $0x630] sm:$0xff]  ;;  %v1379_v25 = vld [vmem:[#allocation13 + $0x618] sm:$0xff] }
 0x410   :  { %3030 = vmatprep.subr.bf16.mxu1 %v3716_v43  ;;  %v3770_v43 = vcombine.high %v1330_v29, %v1334_v49  ;;  %v3811_v12 = vcombine.low %v1371_v21, %v1375_v22 }
 0x412   :  { %2949 = vmatpush1.bf16.msra.mxu0 %v3713_v48  ;;  %v1343_v48 = vld [vmem:[#allocation13 + $0x4f8] sm:$0xff] }
 0x413   :  { %3031 = vmatpush1.bf16.msra.mxu1 %v3715_v39  ;;  %2950 = vmatprep.subr.bf16.mxu0 %v3722_v50  ;;  %v3769_v39 = vcombine.low %v1330_v29, %v1334_v49  ;;  %v3778_v50 = vcombine.high %v1338_v45, %v1342_v46  ;;  %v1386_v29 = vld [vmem:[#allocation13 + $0x650] sm:$0xff] }
 0x414   :  { %3032 = vmatprep.subr.bf16.mxu1 %v3724_v51  ;;  %v3780_v51 = vcombine.high %v1339_v47, %v1343_v48  ;;  %v1390_v49 = vld [vmem:[#allocation13 + $0x670] sm:$0xff] }
 0x416   :  { %2951 = vmatpush1.bf16.msra.mxu0 %v3721_v57  ;;  %v3779_v57 = vcombine.low %v1339_v47, %v1343_v48  ;;  %v1399_v47 = vld [vmem:[#allocation13 + $0x6b8] sm:$0xff]  ;;  %v3825_v48 = vcombine.low %v1386_v29, %v1390_v49 }
 0x417   :  { %3033 = vmatpush1.bf16.msra.mxu1 %v3723_v58  ;;  %2952 = vmatprep.subr.bf16.mxu0 %v3730_v62  ;;  %v3786_v58 = vcombine.high %v1346_v52, %v1350_v53  ;;  %v3788_v62 = vcombine.high %v1347_v54, %v1351_v55  ;;  %v1406_v52 = vld [vmem:[#allocation13 + $0x6f0] sm:$0xff]  ;;  %v1403_v53 = vld [vmem:[#allocation13 + $0x6d8] sm:$0xff] }
 0x418   :  { %3034 = vmatprep.subr.bf16.mxu1 %v3732_v2  ;;  %v1354_v2 = vld [vmem:[#allocation13 + $0x550] sm:$0xff] }
 0x419   :  { %v3793_v11 = vcombine.low %v1354_v2, %v1358_v4 }
 0x41a   :  { %2953 = vmatpush1.bf16.msra.mxu0 %v3729_v59  ;;  %v3787_v59 = vcombine.low %v1347_v54, %v1351_v55  ;;  %v1407_v54 = vld [vmem:[#allocation13 + $0x6f8] sm:$0xff] }
 0x41b   :  { %3035 = vmatpush1.bf16.msra.mxu1 %v3731_v60  ;;  %2954 = vmatprep.subr.bf16.mxu0 %v3738_v61  ;;  %v3794_v60 = vcombine.high %v1354_v2, %v1358_v4  ;;  %v3796_v61 = vcombine.high %v1355_v6, %v1359_v7  ;;  %v1414_v2 = vld [vmem:[#allocation13 + $0x730] sm:$0xff]  ;;  %v1411_v4 = vld [vmem:[#allocation13 + $0x718] sm:$0xff] }
 0x41c   :  { %3036 = vmatprep.subr.bf16.mxu1 %v3740_v63  ;;  %v1362_v63 = vld [vmem:[#allocation13 + $0x590] sm:$0xff] }
 0x41d   :  { %v3801_v24 = vcombine.low %v1362_v63, %v1366_v0 }
 0x41e   :  { %2955 = vmatpush1.bf16.msra.mxu0 %v3737_v14  ;;  %v3795_v14 = vcombine.low %v1355_v6, %v1359_v7  ;;  %v1415_v6 = vld [vmem:[#allocation13 + $0x738] sm:$0xff] }
 0x41f   :  { %3037 = vmatpush1.bf16.msra.mxu1 %v3739_v15  ;;  %2956 = vmatprep.subr.bf16.mxu0 %v3746_v18  ;;  %v3802_v15 = vcombine.high %v1362_v63, %v1366_v0  ;;  %v3804_v18 = vcombine.high %v1363_v1, %v1367_v9  ;;  %v1422_v63 = vld [vmem:[#allocation13 + $0x770] sm:$0xff]  ;;  %v1419_v0 = vld [vmem:[#allocation13 + $0x758] sm:$0xff] }
 0x420   :  { %3038 = vmatprep.subr.bf16.mxu1 %v3748_v19  ;;  %v1370_v19 = vld [vmem:[#allocation13 + $0x5d0] sm:$0xff] }
 0x421   :  { %v3809_v16 = vcombine.low %v1370_v19, %v1374_v37 }
 0x422   :  { %2957 = vmatpush1.bf16.msra.mxu0 %v3745_v26  ;;  %v3803_v26 = vcombine.low %v1363_v1, %v1367_v9  ;;  %v1423_v1 = vld [vmem:[#allocation13 + $0x778] sm:$0xff] }
 0x423   :  { %3039 = vmatpush1.bf16.msra.mxu1 %v3747_v28  ;;  %2967 = vmatprep.subr.bf16.mxu0 %v3754_v30  ;;  %v3810_v28 = vcombine.high %v1370_v19, %v1374_v37  ;;  %v3812_v30 = vcombine.high %v1371_v21, %v1375_v22  ;;  %v1430_v19 = vld [vmem:[#allocation13 + $0x7b0] sm:$0xff]  ;;  %v1427_v37 = vld [vmem:[#allocation13 + $0x798] sm:$0xff] }
 0x424   :  { %3049 = vmatprep.subr.bf16.mxu1 %v3756_v31  ;;  %v1378_v31 = vld [vmem:[#allocation13 + $0x610] sm:$0xff]  ;;  %v1431_v21 = vld [vmem:[#allocation13 + $0x7b8] sm:$0xff] }
 0x425   :  { %2959 = vmatmul.mubr.bf16.vlgmr.msra.gmra.mrb[12].mxu0 %v4577_v41 }
 0x426   :  { %3041 = vmatmul.mubr.bf16.vlgmr.msra.gmra.mrb[12].mxu1 %v4577_v41  ;;  %2968 = vmatpush1.bf16.msra.mxu0 %v3753_v17  ;;  %v3771_v41 = vcombine.low %v1331_v36, %v1335_v38  ;;  %v1383_v17 = vld [vmem:[#allocation13 + $0x638] sm:$0xff]  ;;  %v3817_v38 = vcombine.low %v1378_v31, %v1382_v23 }
 0x427   :  { %2999 = vmatprep.mubr.bf16.mxu0 %v4583_v56  ;;  %3050 = vmatpush1.bf16.msra.mxu1 %v3755_v13  ;;  %v3818_v13 = vcombine.high %v1378_v31, %v1382_v23  ;;  %v1391_v36 = vld [vmem:[#allocation13 + $0x678] sm:$0xff]  ;;  %v1438_v31 = vld [vmem:[#allocation13 + $0x7f0] sm:$0xff] }
 0x428   :  { %3081 = vmatprep.mubr.bf16.mxu1 %v4583_v56  ;;  %2969 = vmatprep.subr.bf16.mxu0 %v3762_v27  ;;  %v3777_v56 = vcombine.low %v1338_v45, %v1342_v46  ;;  %v3820_v27 = vcombine.high %v1379_v25, %v1383_v17  ;;  %v1398_v45 = vld [vmem:[#allocation13 + $0x6b0] sm:$0xff]  ;;  %v1395_v46 = vld [vmem:[#allocation13 + $0x698] sm:$0xff] }
 0x429   :  { %3051 = vmatprep.subr.bf16.mxu1 %v3764_v34  ;;  %v1387_v34 = vld [vmem:[#allocation13 + $0x658] sm:$0xff] }
 0x42a   :  { %2970 = vmatpush1.bf16.msra.mxu0 %v3761_v40  ;;  %v3819_v40 = vcombine.low %v1379_v25, %v1383_v17  ;;  %v1435_v23 = vld [vmem:[#allocation13 + $0x7d8] sm:$0xff] }
 0x42b   :  { %3052 = vmatpush1.bf16.msra.mxu1 %v3763_v42  ;;  %2971 = vmatprep.subr.bf16.mxu0 %v3770_v43  ;;  %v3826_v42 = vcombine.high %v1386_v29, %v1390_v49  ;;  %v3828_v43 = vcombine.high %v1387_v34, %v1391_v36  ;;  %v1439_v25 = vld [vmem:[#allocation13 + $0x7f8] sm:$0xff] }
 0x42c   :  { %3053 = vmatprep.subr.bf16.mxu1 %v3772_v44  ;;  %v1394_v44 = vld [vmem:[#allocation13 + $0x690] sm:$0xff]  ;;  %v3875_v29 = vcombine.low %v1435_v23, %v1439_v25 }
 0x42d   :  { %v3833_v55 = vcombine.low %v1394_v44, %v1398_v45  ;;  %v4611_v49 = vld [vmem:[%s4792_s12] sm:$0xff] }
 0x42e   :  { %2972 = vmatpush1.bf16.msra.mxu0 %v3769_v39  ;;  %v3827_v39 = vcombine.low %v1387_v34, %v1391_v36  ;;  %v1445_v34 = vrot.slane %v4611_v49, %v4478_v33  ;;  %v1453_v36 = vrot.slane %v4611_v49, %v4513_v3 }
 0x42f   :  { %3054 = vmatpush1.bf16.msra.mxu1 %v3771_v41  ;;  %2973 = vmatprep.subr.bf16.mxu0 %v3778_v50  ;;  %v3834_v41 = vcombine.high %v1394_v44, %v1398_v45  ;;  %v3836_v50 = vcombine.high %v1395_v46, %v1399_v47 }
 0x430   :  { %3055 = vmatprep.subr.bf16.mxu1 %v3780_v51  ;;  %v1402_v51 = vld [vmem:[#allocation13 + $0x6d0] sm:$0xff] }
 0x431   :  { %v3841_v7 = vcombine.low %v1402_v51, %v1406_v52 }
 0x432   :  { %2974 = vmatpush1.bf16.msra.mxu0 %v3777_v56  ;;  %v3835_v56 = vcombine.low %v1395_v46, %v1399_v47 }
 0x433   :  { %3056 = vmatpush1.bf16.msra.mxu1 %v3779_v57  ;;  %2975 = vmatprep.subr.bf16.mxu0 %v3786_v58  ;;  %v3842_v57 = vcombine.high %v1402_v51, %v1406_v52  ;;  %v3844_v58 = vcombine.high %v1403_v53, %v1407_v54 }
 0x434   :  { %3057 = vmatprep.subr.bf16.mxu1 %v3788_v62  ;;  %v1410_v62 = vld [vmem:[#allocation13 + $0x710] sm:$0xff] }
 0x435   :  { %v3849_v9 = vcombine.low %v1410_v62, %v1414_v2 }
 0x436   :  { %2976 = vmatpush1.bf16.msra.mxu0 %v3785_v8  ;;  %v3843_v8 = vcombine.low %v1403_v53, %v1407_v54 }
 0x437   :  { %3058 = vmatpush1.bf16.msra.mxu1 %v3787_v59  ;;  %2977 = vmatprep.subr.bf16.mxu0 %v3794_v60  ;;  %v3850_v59 = vcombine.high %v1410_v62, %v1414_v2  ;;  %v3852_v60 = vcombine.high %v1411_v4, %v1415_v6 }
 0x438   :  { %3059 = vmatprep.subr.bf16.mxu1 %v3796_v61  ;;  %v1418_v61 = vld [vmem:[#allocation13 + $0x750] sm:$0xff] }
 0x439   :  { %v3857_v22 = vcombine.low %v1418_v61, %v1422_v63 }
 0x43a   :  { %2978 = vmatpush1.bf16.msra.mxu0 %v3793_v11  ;;  %v3851_v11 = vcombine.low %v1411_v4, %v1415_v6 }
 0x43b   :  { %3060 = vmatpush1.bf16.msra.mxu1 %v3795_v14  ;;  %2979 = vmatprep.subr.bf16.mxu0 %v3802_v15  ;;  %v3858_v14 = vcombine.high %v1418_v61, %v1422_v63  ;;  %v3860_v15 = vcombine.high %v1419_v0, %v1423_v1 }
 0x43c   :  { %3061 = vmatprep.subr.bf16.mxu1 %v3804_v18  ;;  %v1426_v18 = vld [vmem:[#allocation13 + $0x790] sm:$0xff] }
 0x43d   :  { %v3865_v17 = vcombine.low %v1426_v18, %v1430_v19 }
 0x43e   :  { %2980 = vmatpush1.bf16.msra.mxu0 %v3801_v24  ;;  %v3859_v24 = vcombine.low %v1419_v0, %v1423_v1 }
 0x43f   :  { %3062 = vmatpush1.bf16.msra.mxu1 %v3803_v26  ;;  %2981 = vmatprep.subr.bf16.mxu0 %v3810_v28  ;;  %v3866_v26 = vcombine.high %v1426_v18, %v1430_v19  ;;  %v3868_v28 = vcombine.high %v1427_v37, %v1431_v21 }
 0x440   :  { %3063 = vmatprep.subr.bf16.mxu1 %v3812_v30  ;;  %v1434_v30 = vld [vmem:[#allocation13 + $0x7d0] sm:$0xff] }
 0x442   :  { %2982 = vmatpush1.bf16.msra.mxu0 %v3809_v16  ;;  %v3867_v16 = vcombine.low %v1427_v37, %v1431_v21 }
 0x443   :  { %3064 = vmatpush1.bf16.msra.mxu1 %v3811_v12  ;;  %2983 = vmatprep.subr.bf16.mxu0 %v3818_v13  ;;  %v3874_v12 = vcombine.high %v1434_v30, %v1438_v31  ;;  %v3876_v13 = vcombine.high %v1435_v23, %v1439_v25 }
 0x444   :  { %3065 = vmatprep.subr.bf16.mxu1 %v3820_v27  ;;  %v3873_v27 = vcombine.low %v1434_v30, %v1438_v31 }
 0x446   :  { %2984 = vmatpush1.bf16.msra.mxu0 %v3817_v38  ;;  %v1449_v38 = vrot.slane %v4611_v49, %v4481_v35 }
 0x447   :  { %3066 = vmatpush1.bf16.msra.mxu1 %v3819_v40  ;;  %2985 = vmatprep.subr.bf16.mxu0 %v3826_v42  ;;  %v1457_v40 = vrot.slane %v4611_v49, %v4519_v5 }
 0x448   :  { %3067 = vmatprep.subr.bf16.mxu1 %v3828_v43 }
 0x44a   :  { %2986 = vmatpush1.bf16.msra.mxu0 %v3825_v48 }
 0x44b   :  { %3068 = vmatpush1.bf16.msra.mxu1 %v3827_v39  ;;  %2987 = vmatprep.subr.bf16.mxu0 %v3834_v41 }
 0x44c   :  { %3069 = vmatprep.subr.bf16.mxu1 %v3836_v50 }
 0x44e   :  { %2988 = vmatpush1.bf16.msra.mxu0 %v3833_v55 }
 0x44f   :  { %3070 = vmatpush1.bf16.msra.mxu1 %v3835_v56  ;;  %2989 = vmatprep.subr.bf16.mxu0 %v3842_v57 }
 0x450   :  { %3071 = vmatprep.subr.bf16.mxu1 %v3844_v58 }
 0x452   :  { %2990 = vmatpush1.bf16.msra.mxu0 %v3841_v7 }
 0x453   :  { %3072 = vmatpush1.bf16.msra.mxu1 %v3843_v8  ;;  %2991 = vmatprep.subr.bf16.mxu0 %v3850_v59 }
 0x454   :  { %3073 = vmatprep.subr.bf16.mxu1 %v3852_v60 }
 0x456   :  { %2992 = vmatpush1.bf16.msra.mxu0 %v3849_v9 }
 0x457   :  { %3074 = vmatpush1.bf16.msra.mxu1 %v3851_v11  ;;  %2993 = vmatprep.subr.bf16.mxu0 %v3858_v14 }
 0x458   :  { %3075 = vmatprep.subr.bf16.mxu1 %v3860_v15 }
 0x45a   :  { %2994 = vmatpush1.bf16.msra.mxu0 %v3857_v22 }
 0x45b   :  { %3076 = vmatpush1.bf16.msra.mxu1 %v3859_v24  ;;  %2995 = vmatprep.subr.bf16.mxu0 %v3866_v26 }
 0x45c   :  { %3077 = vmatprep.subr.bf16.mxu1 %v3868_v28 }
 0x45e   :  { %2996 = vmatpush1.bf16.msra.mxu0 %v3865_v17 }
 0x45f   :  { %3078 = vmatpush1.bf16.msra.mxu1 %v3867_v16  ;;  %2997 = vmatprep.subr.bf16.mxu0 %v3874_v12 }
 0x460   :  { %3079 = vmatprep.subr.bf16.mxu1 %v3876_v13 }
 0x462   :  { %2998 = vmatpush1.bf16.msra.mxu0 %v3873_v27 }
 0x463   :  { %3080 = vmatpush1.bf16.msra.mxu1 %v3875_v29 }
 0x465   :  { %3000 = vmatmul.mubr.bf16.vlgmr.msra.gmra.mrb[12].mxu0 %v4596_v10 }
 0x466   :  { %3082 = vmatmul.mubr.bf16.vlgmr.msra.gmra.mrb[12].mxu1 %v4596_v10 }
 0x4b8   :  { %v2837_v42 = vpop.f32.mrb[8].mxu0  ;;  %v2919_v43 = vpop.f32.mrb[8].mxu1 }
 0x4b9   :  { %v4621_v10 = vadd.f32 %v2837_v42, %v1445_v34  ;;  %v4623_v44 = vadd.f32 %v2919_v43, %v1453_v36  ;;  %v2839_v45 = vpop.f32.mrb[9].mxu0  ;;  %v2921_v46 = vpop.f32.mrb[9].mxu1 }
 0x4ba   :  { %v4625_v47 = vadd.f32 %v2839_v45, %v1449_v38  ;;  %v4627_v48 = vadd.f32 %v2921_v46, %v1457_v40  ;;  %v2841_v39 = vpop.f32.mrb[10].mxu0  ;;  %v2923_v41 = vpop.f32.mrb[10].mxu1 }
 0x4bb   :  { %v3090_v50 = vrot.slane %v4621_v10, 4  ;;  %v3146_v51 = vmul.f32 %v4621_v10, %v4621_v10  ;;  %v3102_v52 = vrot.slane %v4623_v44, 4  ;;  %v3148_v53 = vmul.f32 %v4623_v44, %v4623_v44  ;;  %v2842_v54 = vpop.f32.mrb[11].mxu0  ;;  %v2924_v55 = vpop.f32.mrb[11].mxu1 }
 0x4bc   :  { %v3096_v56 = vrot.slane %v4625_v47, 4  ;;  %v3147_v57 = vmul.f32 %v4625_v47, %v4625_v47  ;;  %v3108_v58 = vrot.slane %v4627_v48, 4  ;;  %v3149_v62 = vmul.f32 %v4627_v48, %v4627_v48 }
 0x4bd   :  { %v3091_v2 = vadd.f32 %v4621_v10, %v3090_v50  ;;  %v3154_v4 = vrot.slane %v3146_v51, 4  ;;  %v3103_v6 = vadd.f32 %v4623_v44, %v3102_v52  ;;  %v3166_v7 = vrot.slane %v3148_v53, 4 }
 0x4be   :  { %v3097_v8 = vadd.f32 %v4625_v47, %v3096_v56  ;;  %v3160_v59 = vrot.slane %v3147_v57, 4  ;;  %v3109_v60 = vadd.f32 %v4627_v48, %v3108_v58  ;;  %v3172_v61 = vrot.slane %v3149_v62, 4 }
 0x4bf   :  { %v3092_v63 = vrot.slane %v3091_v2, 2  ;;  %v3155_v0 = vadd.f32 %v3154_v4, %v3146_v51  ;;  %v3104_v1 = vrot.slane %v3103_v6, 2  ;;  %v3167_v9 = vadd.f32 %v3166_v7, %v3148_v53 }
 0x4c0   :  { %v3098_v11 = vrot.slane %v3097_v8, 2  ;;  %v3161_v14 = vadd.f32 %v3160_v59, %v3147_v57  ;;  %v3110_v15 = vrot.slane %v3109_v60, 2  ;;  %v3173_v18 = vadd.f32 %v3172_v61, %v3149_v62 }
 0x4c1   :  { %v3093_v19 = vadd.f32 %v3092_v63, %v3091_v2  ;;  %v3156_v37 = vrot.slane %v3155_v0, 2  ;;  %v3105_v21 = vadd.f32 %v3104_v1, %v3103_v6  ;;  %v3168_v22 = vrot.slane %v3167_v9, 2 }
 0x4c2   :  { %v3099_v24 = vadd.f32 %v3098_v11, %v3097_v8  ;;  %v3162_v26 = vrot.slane %v3161_v14, 2  ;;  %v3111_v28 = vadd.f32 %v3110_v15, %v3109_v60  ;;  %v3174_v30 = vrot.slane %v3173_v18, 2 }
 0x4c3   :  { %v3094_v31 = vrot.slane %v3093_v19, 1  ;;  %v3157_v23 = vadd.f32 %v3156_v37, %v3155_v0  ;;  %v3106_v25 = vrot.slane %v3105_v21, 1  ;;  %v3169_v17 = vadd.f32 %v3168_v22, %v3167_v9 }
 0x4c4   :  { %v3100_v16 = vrot.slane %v3099_v24, 1  ;;  %v3163_v12 = vadd.f32 %v3162_v26, %v3161_v14  ;;  %v3112_v13 = vrot.slane %v3111_v28, 1  ;;  %v3175_v27 = vadd.f32 %v3174_v30, %v3173_v18 }
 0x4c5   :  { %v3095_v29 = vadd.f32 %v3094_v31, %v3093_v19  ;;  %v3158_v34 = vrot.slane %v3157_v23, 1  ;;  %v3107_v36 = vadd.f32 %v3106_v25, %v3105_v21  ;;  %v3170_v38 = vrot.slane %v3169_v17, 1 }
 0x4c6   :  { %v3101_v40 = vadd.f32 %v3100_v16, %v3099_v24  ;;  %v3164_v42 = vrot.slane %v3163_v12, 1  ;;  %v3113_v43 = vadd.f32 %v3112_v13, %v3111_v28  ;;  %v3176_v45 = vrot.slane %v3175_v27, 1 }
 0x4c7   :  { %v4645_v46 = vmul.f32 0.125, %v3095_v29  ;;  %v3159_v39 = vadd.f32 %v3158_v34, %v3157_v23  ;;  %v4647_v41 = vmul.f32 0.125, %v3107_v36  ;;  %v3171_v50 = vadd.f32 %v3170_v38, %v3169_v17 }
 0x4c8   :  { %v4649_v51 = vmul.f32 0.125, %v3101_v40  ;;  %v3165_v52 = vadd.f32 %v3164_v42, %v3163_v12  ;;  %v4651_v53 = vmul.f32 0.125, %v3113_v43  ;;  %v3177_v54 = vadd.f32 %v3176_v45, %v3175_v27 }
 0x4c9   :  { %v3202_v55 = vmul.f32 0.125, %v3159_v39  ;;  %v3210_v56 = vmul.f32 %v4645_v46, %v4645_v46  ;;  %v3204_v57 = vmul.f32 0.125, %v3171_v50  ;;  %v3212_v58 = vmul.f32 %v4647_v41, %v4647_v41 }
 0x4ca   :  { %v3203_v62 = vmul.f32 0.125, %v3165_v52  ;;  %v3211_v2 = vmul.f32 %v4649_v51, %v4649_v51  ;;  %v3205_v4 = vmul.f32 0.125, %v3177_v54  ;;  %v3213_v6 = vmul.f32 %v4651_v53, %v4651_v53 }
 0x4cb   :  { %v3218_v7 = vsub.f32 %v3202_v55, %v3210_v56  ;;  %v3220_v8 = vsub.f32 %v3204_v57, %v3212_v58  ;;  %v4670_v24 = vsub.s32 4, %v4475_v32  ;;  %v4673_v26 = vsub.s32 6, %v4475_v32 }
 0x4cc   :  { %v3219_v59 = vsub.f32 %v3203_v62, %v3211_v2  ;;  %v3221_v60 = vsub.f32 %v3205_v4, %v3213_v6  ;;  %v4676_v28 = vsub.s32 5, %v4475_v32  ;;  %v4679_v30 = vsub.s32 7, %v4475_v32 }
 0x4cd   :  { %v3227_v61 = vadd.f32 0.8, %v3218_v7  ;;  %v3229_v63 = vadd.f32 0.8, %v3220_v8  ;;  %v1461_v31 = vrot.slane %v4611_v49, %v4670_v24  ;;  %v1469_v23 = vrot.slane %v4611_v49, %v4673_v26 }
 0x4ce   :  { %v3228_v0 = vadd.f32 0.8, %v3219_v59  ;;  %v3230_v1 = vadd.f32 0.8, %v3221_v60  ;;  %v1465_v25 = vrot.slane %v4611_v49, %v4676_v28  ;;  %v1473_v17 = vrot.slane %v4611_v49, %v4679_v30 }
 0x4cf   :  { %4074 = vrsqrt.f32 %v3227_v61 }
 0x4d0   :  { %4076 = vrsqrt.f32 %v3229_v63 }
 0x4d1   :  { %4078 = vrsqrt.f32 %v3228_v0 }
 0x4d2   :  { %4080 = vrsqrt.f32 %v3230_v1 }
 0x4d9   :  { %v4075_v9 = vpop.eup %4074 }
 0x4da   :  { %v4077_v11 = vpop.eup %4076 }
 0x4db   :  { %v4079_v14 = vpop.eup %4078 }
 0x4dc   :  { %v4081_v15 = vpop.eup %4080  ;;  %v3251_v18 = vcombine.low %v4075_v9, %v4079_v14 }
 0x4dd   :  { %v3252_v19 = vcombine.low %v4077_v11, %v4081_v15 }
 0x4de   :  { %v4662_v37 = vrot.slane %v3251_v18, %v4486_v20 }
 0x4df   :  { %v4665_v21 = vrot.slane %v3252_v19, %v4486_v20 }
 0x4e1   :  { %v3283_v22 = vcombine.low %v4662_v37, %v4665_v21 }
 0x538   :  { %v3001_v16 = vpop.f32.mrb[12].mxu0 }
 0x539   :  { %v4689_v12 = vadd.f32 %v3001_v16, %v1461_v31  ;;  %v3083_v13 = vpop.f32.mrb[12].mxu1  ;;  %v3003_v27 = vpop.f32.mrb[13].mxu0 }
 0x53a   :  { %v4691_v29 = vadd.f32 %v3083_v13, %v1469_v23  ;;  %v4693_v32 = vadd.f32 %v3003_v27, %v1465_v25  ;;  %v3085_v34 = vpop.f32.mrb[13].mxu1  ;;  %v3005_v36 = vpop.f32.mrb[14].mxu0 }
 0x53b   :  { %v3114_v38 = vrot.slane %v4689_v12, 4  ;;  %v3150_v40 = vmul.f32 %v4689_v12, %v4689_v12  ;;  %v4698_v42 = vadd.f32 %v3085_v34, %v1473_v17  ;;  %v3087_v43 = vpop.f32.mrb[14].mxu1  ;;  %v3006_v49 = vpop.f32.mrb[15].mxu0 }
 0x53c   :  { %v3126_v45 = vrot.slane %v4691_v29, 4  ;;  %v3152_v39 = vmul.f32 %v4691_v29, %v4691_v29  ;;  %v3120_v50 = vrot.slane %v4693_v32, 4  ;;  %v3151_v52 = vmul.f32 %v4693_v32, %v4693_v32  ;;  %v3088_v54 = vpop.f32.mrb[15].mxu1 }
 0x53d   :  { %v3115_v55 = vadd.f32 %v4689_v12, %v3114_v38  ;;  %v3178_v56 = vrot.slane %v3150_v40, 4  ;;  %v3132_v57 = vrot.slane %v4698_v42, 4  ;;  %v3153_v58 = vmul.f32 %v4698_v42, %v4698_v42 }
 0x53e   :  { %v3127_v62 = vadd.f32 %v4691_v29, %v3126_v45  ;;  %v3190_v2 = vrot.slane %v3152_v39, 4  ;;  %v3121_v4 = vadd.f32 %v4693_v32, %v3120_v50  ;;  %v3184_v6 = vrot.slane %v3151_v52, 4 }
 0x53f   :  { %v3116_v7 = vrot.slane %v3115_v55, 2  ;;  %v3179_v8 = vadd.f32 %v3178_v56, %v3150_v40  ;;  %v3133_v59 = vadd.f32 %v4698_v42, %v3132_v57  ;;  %v3196_v60 = vrot.slane %v3153_v58, 4 }
 0x540   :  { %v3128_v61 = vrot.slane %v3127_v62, 2  ;;  %v3191_v63 = vadd.f32 %v3190_v2, %v3152_v39  ;;  %v3122_v0 = vrot.slane %v3121_v4, 2  ;;  %v3185_v1 = vadd.f32 %v3184_v6, %v3151_v52 }
 0x541   :  { %v3117_v9 = vadd.f32 %v3116_v7, %v3115_v55  ;;  %v3180_v11 = vrot.slane %v3179_v8, 2  ;;  %v3134_v14 = vrot.slane %v3133_v59, 2  ;;  %v3197_v15 = vadd.f32 %v3196_v60, %v3153_v58 }
 0x542   :  { %v3129_v18 = vadd.f32 %v3128_v61, %v3127_v62  ;;  %v3192_v19 = vrot.slane %v3191_v63, 2  ;;  %v3123_v31 = vadd.f32 %v3122_v0, %v3121_v4  ;;  %v3186_v23 = vrot.slane %v3185_v1, 2 }
 0x543   :  { %v3118_v25 = vrot.slane %v3117_v9, 1  ;;  %v3181_v17 = vadd.f32 %v3180_v11, %v3179_v8  ;;  %v3135_v16 = vadd.f32 %v3134_v14, %v3133_v59  ;;  %v3198_v13 = vrot.slane %v3197_v15, 2 }
 0x544   :  { %v3130_v27 = vrot.slane %v3129_v18, 1  ;;  %v3193_v34 = vadd.f32 %v3192_v19, %v3191_v63  ;;  %v3124_v36 = vrot.slane %v3123_v31, 1  ;;  %v3187_v38 = vadd.f32 %v3186_v23, %v3185_v1 }
 0x545   :  { %v3119_v40 = vadd.f32 %v3118_v25, %v3117_v9  ;;  %v3182_v43 = vrot.slane %v3181_v17, 1  ;;  %v3136_v49 = vrot.slane %v3135_v16, 1  ;;  %v3199_v45 = vadd.f32 %v3198_v13, %v3197_v15 }
 0x546   :  { %v3131_v39 = vadd.f32 %v3130_v27, %v3129_v18  ;;  %v3194_v50 = vrot.slane %v3193_v34, 1  ;;  %v3125_v52 = vadd.f32 %v3124_v36, %v3123_v31  ;;  %v3188_v54 = vrot.slane %v3187_v38, 1 }
 0x547   :  { %v3142_v55 = vmul.f32 0.125, %v3119_v40  ;;  %v3183_v56 = vadd.f32 %v3182_v43, %v3181_v17  ;;  %v3137_v57 = vadd.f32 %v3136_v49, %v3135_v16  ;;  %v3200_v58 = vrot.slane %v3199_v45, 1 }
 0x548   :  { %v3144_v62 = vmul.f32 0.125, %v3131_v39  ;;  %v3195_v2 = vadd.f32 %v3194_v50, %v3193_v34  ;;  %v3143_v4 = vmul.f32 0.125, %v3125_v52  ;;  %v3189_v6 = vadd.f32 %v3188_v54, %v3187_v38  ;;  %v3226_v50 = vld [vmem:[%s4793_s13] sm:$0xff] }
 0x549   :  { %v3206_v7 = vmul.f32 0.125, %v3183_v56  ;;  %v3214_v8 = vmul.f32 %v3142_v55, %v3142_v55  ;;  %v3145_v59 = vmul.f32 0.125, %v3137_v57  ;;  %v3201_v60 = vadd.f32 %v3200_v58, %v3199_v45 }
 0x54a   :  { %v3208_v61 = vmul.f32 0.125, %v3195_v2  ;;  %v3216_v63 = vmul.f32 %v3144_v62, %v3144_v62  ;;  %v3207_v0 = vmul.f32 0.125, %v3189_v6  ;;  %v3215_v1 = vmul.f32 %v3143_v4, %v3143_v4 }
 0x54b   :  { %v3222_v9 = vsub.f32 %v3206_v7, %v3214_v8  ;;  %v3209_v11 = vmul.f32 0.125, %v3201_v60  ;;  %v3217_v14 = vmul.f32 %v3145_v59, %v3145_v59  ;;  %v3291_v45 = vrot.slane %v3283_v22, %v4486_v20 }
 0x54c   :  { %v3224_v15 = vsub.f32 %v3208_v61, %v3216_v63  ;;  %v3223_v18 = vsub.f32 %v3207_v0, %v3215_v1 }
 0x54d   :  { %v3231_v19 = vadd.f32 0.8, %v3222_v9  ;;  %v3225_v31 = vsub.f32 %v3209_v11, %v3217_v14 }
 0x54e   :  { %v3233_v23 = vadd.f32 0.8, %v3224_v15  ;;  %v3232_v25 = vadd.f32 0.8, %v3223_v18 }
 0x54f   :  { %4082 = vrsqrt.f32 %v3231_v19  ;;  %v3234_v17 = vadd.f32 0.8, %v3225_v31 }
 0x550   :  { %4084 = vrsqrt.f32 %v3233_v23 }
 0x551   :  { %4086 = vrsqrt.f32 %v3232_v25 }
 0x552   :  { %4088 = vrsqrt.f32 %v3234_v17 }
 0x559   :  { %v4083_v16 = vpop.eup %4082 }
 0x55a   :  { %v4085_v13 = vpop.eup %4084 }
 0x55b   :  { %v4087_v27 = vpop.eup %4086 }
 0x55c   :  { %v4089_v34 = vpop.eup %4088  ;;  %v3253_v36 = vcombine.low %v4083_v16, %v4087_v27 }
 0x55d   :  { %v3254_v38 = vcombine.low %v4085_v13, %v4089_v34 }
 0x55e   :  { %v3275_v40 = vrot.slane %v3253_v36, %v4486_v20 }
 0x55f   :  { %v3282_v43 = vrot.slane %v3254_v38, %v4486_v20 }
 0x561   :  { %v3284_v49 = vcombine.low %v3275_v40, %v3282_v43 }
 0x563   :  { %v3298_v39 = vrot.slane %v3284_v49, %v4486_v20 }
 0x565   :  { %v3299_v52 = vcombine.low %v3291_v45, %v3298_v39 }
 0x567   :  { %v3301_v54 = vmul.f32 %v3299_v52, %v3226_v50 }
 0x569   :  { %v3307_v56 = vrot.slane %v3301_v54, %v4478_v33  ;;  %v3311_v57 = vrot.slane %v3301_v54, %v4481_v35  ;;  %v3315_v58 = vrot.slane %v3301_v54, %v4513_v3  ;;  %v3319_v2 = vrot.slane %v3301_v54, %v4519_v5 }
 0x56a   :  { %v3323_v6 = vrot.slane %v3301_v54, %v4670_v24  ;;  %v3327_v37 = vrot.slane %v3301_v54, %v4676_v28  ;;  %v3331_v21 = vrot.slane %v3301_v54, %v4673_v26  ;;  %v3335_v22 = vrot.slane %v3301_v54, %v4679_v30 }
 0x56b   :  { %v3344_v7 = vmul.f32 %v3307_v56, %v4645_v46  ;;  %v3345_v8 = vmul.f32 %v3311_v57, %v4649_v51  ;;  %v3346_v60 = vmul.f32 %v3315_v58, %v4647_v41  ;;  %v3347_v61 = vmul.f32 %v3319_v2, %v4651_v53 }
 0x56c   :  { %v3348_v63 = vmul.f32 %v3323_v6, %v3142_v55  ;;  %v3349_v0 = vmul.f32 %v3327_v37, %v3143_v4  ;;  %v3350_v1 = vmul.f32 %v3331_v21, %v3144_v62  ;;  %v3351_v9 = vmul.f32 %v3335_v22, %v3145_v59 }
 0x56d   :  { %v3360_v11 = vcombine.low %v3344_v7, %v3345_v8  ;;  %v3361_v14 = vcombine.low %v3346_v60, %v3347_v61  ;;  %v3411_v15 = vmul.f32 %v4621_v10, %v3307_v56  ;;  %v3412_v18 = vmul.f32 %v4625_v47, %v3311_v57 }
 0x56e   :  { %v3362_v19 = vcombine.low %v3348_v63, %v3349_v0  ;;  %v3363_v31 = vcombine.low %v3350_v1, %v3351_v9  ;;  %v3413_v46 = vmul.f32 %v4623_v44, %v3315_v58  ;;  %v3414_v51 = vmul.f32 %v4627_v48, %v3319_v2 }
 0x56f   :  { %v3370_v41 = vrot.slane %v3360_v11, %v4486_v20  ;;  %v3377_v53 = vrot.slane %v3361_v14, %v4486_v20  ;;  %v3415_v55 = vmul.f32 %v4689_v12, %v3323_v6  ;;  %v3416_v62 = vmul.f32 %v4693_v32, %v3327_v37  ;;  %v3302_v12 = vld [vmem:[%s4794_s14] sm:$0xff] }
 0x570   :  { %v3384_v4 = vrot.slane %v3362_v19, %v4486_v20  ;;  %v3391_v10 = vrot.slane %v3363_v31, %v4486_v20  ;;  %v3417_v47 = vmul.f32 %v4691_v29, %v3331_v21  ;;  %v3418_v59 = vmul.f32 %v4698_v42, %v3335_v22 }
 0x571   :  { %v3392_v23 = vcombine.low %v3370_v41, %v3377_v53 }
 0x572   :  { %v3393_v44 = vcombine.low %v3384_v4, %v3391_v10 }
 0x573   :  { %v3400_v48 = vrot.slane %v3392_v23, %v4486_v20 }
 0x574   :  { %v3407_v25 = vrot.slane %v3393_v44, %v4486_v20 }
 0x576   :  { %v3408_v17 = vcombine.low %v3400_v48, %v3407_v25 }
 0x578   :  { %v3410_v32 = vsub.f32 %v3302_v12, %v3408_v17 }
 0x57a   :  { %v3423_v16 = vrot.slane %v3410_v32, %v4478_v33  ;;  %v3427_v13 = vrot.slane %v3410_v32, %v4481_v35  ;;  %v3431_v29 = vrot.slane %v3410_v32, %v4513_v3  ;;  %v3435_v42 = vrot.slane %v3410_v32, %v4519_v5 }
 0x57b   :  { %v3439_v27 = vrot.slane %v3410_v32, %v4670_v24  ;;  %v3443_v34 = vrot.slane %v3410_v32, %v4676_v28  ;;  %v3447_v20 = vrot.slane %v3410_v32, %v4673_v26  ;;  %v3451_v36 = vrot.slane %v3410_v32, %v4679_v30 }
 0x57c   :  { %v3460_v38 = vadd.f32 %v3423_v16, %v3411_v15  ;;  %v3461_v40 = vadd.f32 %v3427_v13, %v3412_v18  ;;  %v3462_v43 = vadd.f32 %v3431_v29, %v3413_v46  ;;  %v3463_v49 = vadd.f32 %v3435_v42, %v3414_v51 }
 0x57d   :  { %v3464_v45 = vadd.f32 %v3439_v27, %v3415_v55  ;;  %v3465_v33 = vadd.f32 %v3443_v34, %v3416_v62  ;;  %v3466_v39 = vadd.f32 %v3447_v20, %v3417_v47  ;;  %v3467_v35 = vadd.f32 %v3451_v36, %v3418_v59 }
 0x57e   :  { %vm3468_vm9 = vcmp.ge.f32.partialorder %v3460_v38, 0.0  ;;  %vm3469_vm10 = vcmp.ge.f32.partialorder %v3461_v40, 0.0  ;;  %vm3470_vm11 = vcmp.ge.f32.partialorder %v3462_v43, 0.0  ;;  %vm3471_vm12 = vcmp.ge.f32.partialorder %v3463_v49, 0.0 }
 0x57f   :  { %vm3472_vm13 = vcmp.ge.f32.partialorder %v3464_v45, 0.0  ;;  %vm3473_vm14 = vcmp.ge.f32.partialorder %v3465_v33, 0.0  ;;  %vm3474_vm15 = vcmp.ge.f32.partialorder %v3466_v39, 0.0  ;;  %vm3475_vm0 = vcmp.ge.f32.partialorder %v3467_v35, 0.0 }
 0x580   :  { %v3476_v3 = vmul.f32 0.2, %v3460_v38  ;;  %v3477_v5 = vmul.f32 0.2, %v3461_v40  ;;  %v3478_v24 = vmul.f32 0.2, %v3462_v43 }
 0x581   :  { %v3479_v26 = vmul.f32 0.2, %v3463_v49  ;;  %v3480_v28 = vmul.f32 0.2, %v3464_v45  ;;  %v3481_v30 = vmul.f32 0.2, %v3465_v33 }
 0x582   :  { %v3482_v50 = vmul.f32 0.2, %v3466_v39  ;;  %v3483_v52 = vmul.f32 0.2, %v3467_v35  ;;  %v3484_v54 = vsel %vm3468_vm9, %v3460_v38, %v3476_v3  ;;  %v3485_v56 = vsel %vm3469_vm10, %v3461_v40, %v3477_v5 }
 0x583   :  { %v3486_v57 = vsel %vm3470_vm11, %v3462_v43, %v3478_v24  ;;  %v3487_v58 = vsel %vm3471_vm12, %v3463_v49, %v3479_v26  ;;  %v3488_v2 = vsel %vm3472_vm13, %v3464_v45, %v3480_v28  ;;  %v3489_v6 = vsel %vm3473_vm14, %v3465_v33, %v3481_v30 }
 0x584   :  { %v3490_v37 = vsel %vm3474_vm15, %v3466_v39, %v3482_v50  ;;  %v3491_v21 = vsel %vm3475_vm0, %v3467_v35, %v3483_v52  ;;  %v3881_v22 = vpack.c.bf16 %v3485_v56, %v3484_v54  ;;  %v3882_v7 = vpack.c.bf16 %v3487_v58, %v3486_v57 }
 0x585   :  { %v3883_v8 = vpack.c.bf16 %v3489_v6, %v3488_v2  ;;  %v3884_v60 = vpack.c.bf16 %v3491_v21, %v3490_v37 }
 0x586   :  { %3524 = vst [vmem:[%s4798_s6] sm:$0xff] %v3881_v22  ;;  %3525 = vst [vmem:[%s4798_s6 + $0x8] sm:$0xff] %v3882_v7 }
 0x587   :  { %3526 = vst [vmem:[%s4798_s6 + $0x10] sm:$0xff] %v3883_v8  ;;  %3527 = vst [vmem:[%s4798_s6 + $0x18] sm:$0xff] %v3884_v60 }
 0x588   :  { %3532 = vsyncpa [#allocation3], 1 }
 0x589   :  { %3533 = vsyncpa [#allocation5], 1 }
 0x58a   :  { %3534 = vsyncpa [#allocation8], 1 }
 0x58b   :  { %3535 = vsyncpa [#allocation11], 1 }
 0x58c   :  { %3536 = vsyncpa [#allocation14], 1 }

</bundles_post_ra>
